<compile_context>
chip_gen: v5e
topology: v5e:2x2
jax: 0.10.0
libtpu: 0.0.40
codegen_flags: <defaults>
</compile_context>

<pallas_src>
import functools

import jax
import jax.numpy as jnp
from jax.experimental import pallas as pl
from jax.experimental.pallas import tpu as pltpu


def _dws_conv_kernel(x_ref, wdw_ref, wpw_ref, o_ref, xpad_ref, *, stride):
    """One block of Nb batch elements per grid step.

    x_ref   : (Nb, H, W, C)       unpadded input block (VMEM)
    wdw_ref : (3, 3, C)           depthwise 3x3 weights (per channel)
    wpw_ref : (C, O)              pointwise 1x1 weights
    o_ref   : (Nb, Ho, Wo, O)     output block
    xpad_ref: (Nb, H+2, W+2, C)   VMEM scratch holding the padding=1 halo
    """
    Nb, H, W, C = x_ref.shape
    Ho, Wo, O = o_ref.shape[1], o_ref.shape[2], o_ref.shape[3]
    Hp, Wp = H + 2, W + 2
    dt = xpad_ref.dtype

    # ---- padding=1 halo built entirely in VMEM ------------------------------
    # Zero only the border ring (the interior is fully overwritten below), so
    # per-step zero-fill traffic is O(H + W) rows instead of O(H * W).
    xpad_ref[:, 0:1, :, :] = jnp.zeros((Nb, 1, Wp, C), dt)            # top row
    xpad_ref[:, Hp - 1:Hp, :, :] = jnp.zeros((Nb, 1, Wp, C), dt)      # bottom row
    xpad_ref[:, 1:H + 1, 0:1, :] = jnp.zeros((Nb, H, 1, C), dt)       # left col
    xpad_ref[:, 1:H + 1, Wp - 1:Wp, :] = jnp.zeros((Nb, H, 1, C), dt)  # right col
    xpad_ref[:, 1:H + 1, 1:W + 1, :] = x_ref[...]                     # interior
    xv = xpad_ref[...].astype(jnp.float32)

    # ---- depthwise 3x3 on the VPU, evaluated only at strided output pts -----
    if stride == 1:
        def tap(ky, kx):
            return xv[:, ky:ky + Ho, kx:kx + Wo, :]
    else:
        def tap(ky, kx):
            return xv[:, ky:ky + (Ho - 1) * stride + 1:stride,
                         kx:kx + (Wo - 1) * stride + 1:stride, :]

    wdw = wdw_ref[...].astype(jnp.float32)                 # (3, 3, C), one load

    # Initialize with the first tap instead of zeros + 9 adds.
    acc = tap(0, 0) * wdw[0, 0, :]
    for ky in range(3):
        for kx in range(3):
            if ky == 0 and kx == 0:
                continue
            acc = acc + tap(ky, kx) * wdw[ky, kx, :]

    # ---- pointwise 1x1 on the MXU: bf16 operands, f32 accumulate ------------
    lhs = acc.astype(jnp.bfloat16).reshape(Nb * Ho * Wo, C)   # leading-dim fold
    rhs = wpw_ref[...].astype(jnp.bfloat16)
    out = jnp.dot(lhs, rhs, preferred_element_type=jnp.float32)
    o_ref[...] = out.reshape(Nb, Ho, Wo, O).astype(o_ref.dtype)


@functools.partial(jax.jit, static_argnames=("stride", "batch_block"))
def depthwise_separable_conv(x_nchw, w_dw, w_pw, stride=1, batch_block=None):
    """x_nchw: (N,C,H,W); w_dw: (C,1,3,3) OIHW depthwise; w_pw: (O,C,1,1) OIHW."""
    N, C, H, W = x_nchw.shape
    O = w_pw.shape[0]
    Ho = (H + 2 - 3) // stride + 1
    Wo = (W + 2 - 3) // stride + 1

    # Fuse several small images per grid step (largest divisor of N <= 8).
    if batch_block is None:
        batch_block = next(nb for nb in (8, 4, 2, 1) if N % nb == 0)
    Nb = batch_block
    assert N % Nb == 0, (N, Nb)

    # Layout glue only (no padding pass): NCHW -> NHWC, OIHW -> (3,3,C)/(C,O).
    x = jnp.transpose(x_nchw, (0, 2, 3, 1))                 # (N, H, W, C)
    wdw = jnp.transpose(w_dw[:, 0, :, :], (1, 2, 0))        # (3, 3, C)
    wpw = jnp.transpose(w_pw[:, :, 0, 0], (1, 0))           # (C, O)

    kernel = functools.partial(_dws_conv_kernel, stride=stride)

    # NOTE: for production image sizes (e.g. 112x112x256+ under v7x's 64 MiB
    # VMEM) add an output-row grid axis with a halo'd input window so blocks
    # stay within the scoped-VMEM budget and both v7x TensorCores get work;
    # the toy demo shapes fit comfortably in whole-image blocks.
    out_nhwc = pl.pallas_call(
        kernel,
        out_shape=jax.ShapeDtypeStruct((N, Ho, Wo, O), x_nchw.dtype),
        grid=(N // Nb,),
        in_specs=[
            pl.BlockSpec((Nb, H, W, C), lambda n: (n, 0, 0, 0)),
            pl.BlockSpec((3, 3, C), lambda n: (0, 0, 0)),
            pl.BlockSpec((C, O), lambda n: (0, 0)),
        ],
        out_specs=pl.BlockSpec((Nb, Ho, Wo, O), lambda n: (n, 0, 0, 0)),
        scratch_shapes=[pltpu.VMEM((Nb, H + 2, W + 2, C), x_nchw.dtype)],
        compiler_params=pltpu.CompilerParams(
            dimension_semantics=("parallel",)),
    )(x, wdw, wpw)

    return jnp.transpose(out_nhwc, (0, 3, 1, 2))  # back to NCHW


def _reference(x_nchw, w_dw, w_pw, stride):
    dw = jax.lax.conv_general_dilated(
        x_nchw, w_dw, window_strides=(stride, stride),
        padding=((1, 1), (1, 1)),
        feature_group_count=x_nchw.shape[1],
        dimension_numbers=("NCHW", "OIHW", "NCHW"))
    pw = jax.lax.conv_general_dilated(
        dw, w_pw, window_strides=(1, 1), padding=((0, 0), (0, 0)),
        dimension_numbers=("NCHW", "OIHW", "NCHW"))
    return pw


if __name__ == "__main__":
    key = jax.random.PRNGKey(0)
    k_x, k_dw, k_pw = jax.random.split(key, 3)

    N, C_in, C_out, H, W = 2, 4, 8, 16, 16
    stride = 1

    x = jax.random.normal(k_x, (N, C_in, H, W), dtype=jnp.float32)
    # PyTorch parameter shapes: depthwise (C,1,3,3), pointwise (O,C,1,1), no bias.
    w_depthwise = jax.random.normal(k_dw, (C_in, 1, 3, 3), dtype=jnp.float32) * 0.1
    w_pointwise = jax.random.normal(k_pw, (C_out, C_in, 1, 1), dtype=jnp.float32) * 0.1

    out = depthwise_separable_conv(x, w_depthwise, w_pointwise, stride=stride)
    out = jax.block_until_ready(out)

    ref = _reference(x, w_depthwise, w_pointwise, stride)
    assert out.shape == ref.shape, (out.shape, ref.shape)
    # Looser tolerance than pure-f32: the pointwise matmul uses bf16 MXU operands.
    assert jnp.allclose(out, ref, atol=3e-2, rtol=3e-2), (
        "mismatch vs lax.conv reference; max abs diff "
        f"{float(jnp.max(jnp.abs(out - ref)))}")

    print("KERNEL_OK")
</pallas_src>

<mosaic_0001>
module attributes {stable_mosaic.version = 11 : i64} {
  func.func @_dws_conv_kernel(%arg0: i32, %arg1: memref<2x16x16x4xf32, #tpu.memory_space<vmem>>, %arg2: memref<3x3x4xf32, #tpu.memory_space<vmem>>, %arg3: memref<4x8xf32, #tpu.memory_space<vmem>>, %arg4: memref<2x16x16x8xf32, #tpu.memory_space<vmem>>, %arg5: memref<2x18x18x4xf32, #tpu.memory_space<vmem>>) attributes {dimension_semantics = [#tpu.dimension_semantics<parallel>], iteration_bounds = array<i64: 1>, scalar_prefetch = 0 : i64, scratch_operands = 1 : i64, tpu.core_type = #tpu.core_type<tc>, window_params = [{transform_indices = @transform_0, window_bounds = array<i64: 2, 16, 16, 4>}, {pipeline_mode = #tpu.pipeline_mode<synchronous>, transform_indices = @transform_1, window_bounds = array<i64: 3, 3, 4>}, {pipeline_mode = #tpu.pipeline_mode<synchronous>, transform_indices = @transform_2, window_bounds = array<i64: 4, 8>}, {transform_indices = @transform_3, window_bounds = array<i64: 2, 16, 16, 8>}]} {
    %cst = arith.constant 0.000000e+00 : f32
    %0 = vector.broadcast %cst : f32 to vector<2x1x18x4xf32>
    %c0 = arith.constant 0 : index
    %c0_0 = arith.constant 0 : index
    %c0_1 = arith.constant 0 : index
    %c0_2 = arith.constant 0 : index
    %1 = vector.load %arg5[%c0, %c0_0, %c0_1, %c0_2] : memref<2x18x18x4xf32, #tpu.memory_space<vmem>>, vector<2x1x18x4xf32>
    tpu.vector_store %arg5[%c0, %c0_0, %c0_1, %c0_2], %0 {strides = array<i32>} : memref<2x18x18x4xf32, #tpu.memory_space<vmem>>, vector<2x1x18x4xf32>,
    %cst_3 = arith.constant 0.000000e+00 : f32
    %2 = vector.broadcast %cst_3 : f32 to vector<2x1x18x4xf32>
    %c0_4 = arith.constant 0 : index
    %c17 = arith.constant 17 : index
    %c0_5 = arith.constant 0 : index
    %c0_6 = arith.constant 0 : index
    %3 = vector.load %arg5[%c0_4, %c17, %c0_5, %c0_6] : memref<2x18x18x4xf32, #tpu.memory_space<vmem>>, vector<2x1x18x4xf32>
    tpu.vector_store %arg5[%c0_4, %c17, %c0_5, %c0_6], %2 {strides = array<i32>} : memref<2x18x18x4xf32, #tpu.memory_space<vmem>>, vector<2x1x18x4xf32>,
    %cst_7 = arith.constant 0.000000e+00 : f32
    %4 = vector.broadcast %cst_7 : f32 to vector<2x16x1x4xf32>
    %c0_8 = arith.constant 0 : index
    %c1 = arith.constant 1 : index
    %c0_9 = arith.constant 0 : index
    %c0_10 = arith.constant 0 : index
    %5 = vector.load %arg5[%c0_8, %c1, %c0_9, %c0_10] : memref<2x18x18x4xf32, #tpu.memory_space<vmem>>, vector<2x16x1x4xf32>
    tpu.vector_store %arg5[%c0_8, %c1, %c0_9, %c0_10], %4 {strides = array<i32>} : memref<2x18x18x4xf32, #tpu.memory_space<vmem>>, vector<2x16x1x4xf32>,
    %cst_11 = arith.constant 0.000000e+00 : f32
    %6 = vector.broadcast %cst_11 : f32 to vector<2x16x1x4xf32>
    %c0_12 = arith.constant 0 : index
    %c1_13 = arith.constant 1 : index
    %c17_14 = arith.constant 17 : index
    %c0_15 = arith.constant 0 : index
    %7 = vector.load %arg5[%c0_12, %c1_13, %c17_14, %c0_15] : memref<2x18x18x4xf32, #tpu.memory_space<vmem>>, vector<2x16x1x4xf32>
    tpu.vector_store %arg5[%c0_12, %c1_13, %c17_14, %c0_15], %6 {strides = array<i32>} : memref<2x18x18x4xf32, #tpu.memory_space<vmem>>, vector<2x16x1x4xf32>,
    %c0_16 = arith.constant 0 : index
    %c0_17 = arith.constant 0 : index
    %c0_18 = arith.constant 0 : index
    %c0_19 = arith.constant 0 : index
    %8 = vector.load %arg1[%c0_16, %c0_17, %c0_18, %c0_19] : memref<2x16x16x4xf32, #tpu.memory_space<vmem>>, vector<2x16x16x4xf32>
    %c0_20 = arith.constant 0 : index
    %c1_21 = arith.constant 1 : index
    %c1_22 = arith.constant 1 : index
    %c0_23 = arith.constant 0 : index
    %9 = vector.load %arg5[%c0_20, %c1_21, %c1_22, %c0_23] : memref<2x18x18x4xf32, #tpu.memory_space<vmem>>, vector<2x16x16x4xf32>
    tpu.vector_store %arg5[%c0_20, %c1_21, %c1_22, %c0_23], %8 {strides = array<i32>} : memref<2x18x18x4xf32, #tpu.memory_space<vmem>>, vector<2x16x16x4xf32>,
    %c0_24 = arith.constant 0 : index
    %c0_25 = arith.constant 0 : index
    %c0_26 = arith.constant 0 : index
    %c0_27 = arith.constant 0 : index
    %10 = vector.load %arg5[%c0_24, %c0_25, %c0_26, %c0_27] : memref<2x18x18x4xf32, #tpu.memory_space<vmem>>, vector<2x18x18x4xf32>
    %c0_28 = arith.constant 0 : index
    %c0_29 = arith.constant 0 : index
    %c0_30 = arith.constant 0 : index
    %11 = vector.load %arg2[%c0_28, %c0_29, %c0_30] : memref<3x3x4xf32, #tpu.memory_space<vmem>>, vector<3x3x4xf32>
    %12 = vector.extract_strided_slice %10 {offsets = [0, 0, 0, 0], sizes = [2, 16, 16, 4], strides = [1, 1, 1, 1]} : vector<2x18x18x4xf32> to vector<2x16x16x4xf32>
    %13 = vector.extract_strided_slice %11 {offsets = [0, 0, 0], sizes = [1, 1, 4], strides = [1, 1, 1]} : vector<3x3x4xf32> to vector<1x1x4xf32>
    %14 = vector.shape_cast %13 : vector<1x1x4xf32> to vector<4xf32>
    %15 = vector.shape_cast %14 : vector<4xf32> to vector<1x1x1x4xf32>
    %16 = vector.broadcast %15 : vector<1x1x1x4xf32> to vector<2x16x16x4xf32>
    %17 = arith.mulf %12, %16 : vector<2x16x16x4xf32>
    %18 = vector.extract_strided_slice %10 {offsets = [0, 0, 1, 0], sizes = [2, 16, 16, 4], strides = [1, 1, 1, 1]} : vector<2x18x18x4xf32> to vector<2x16x16x4xf32>
    %19 = vector.extract_strided_slice %11 {offsets = [0, 1, 0], sizes = [1, 1, 4], strides = [1, 1, 1]} : vector<3x3x4xf32> to vector<1x1x4xf32>
    %20 = vector.shape_cast %19 : vector<1x1x4xf32> to vector<4xf32>
    %21 = vector.shape_cast %20 : vector<4xf32> to vector<1x1x1x4xf32>
    %22 = vector.broadcast %21 : vector<1x1x1x4xf32> to vector<2x16x16x4xf32>
    %23 = arith.mulf %18, %22 : vector<2x16x16x4xf32>
    %24 = arith.addf %17, %23 : vector<2x16x16x4xf32>
    %25 = vector.extract_strided_slice %10 {offsets = [0, 0, 2, 0], sizes = [2, 16, 16, 4], strides = [1, 1, 1, 1]} : vector<2x18x18x4xf32> to vector<2x16x16x4xf32>
    %26 = vector.extract_strided_slice %11 {offsets = [0, 2, 0], sizes = [1, 1, 4], strides = [1, 1, 1]} : vector<3x3x4xf32> to vector<1x1x4xf32>
    %27 = vector.shape_cast %26 : vector<1x1x4xf32> to vector<4xf32>
    %28 = vector.shape_cast %27 : vector<4xf32> to vector<1x1x1x4xf32>
    %29 = vector.broadcast %28 : vector<1x1x1x4xf32> to vector<2x16x16x4xf32>
    %30 = arith.mulf %25, %29 : vector<2x16x16x4xf32>
    %31 = arith.addf %24, %30 : vector<2x16x16x4xf32>
    %32 = vector.extract_strided_slice %10 {offsets = [0, 1, 0, 0], sizes = [2, 16, 16, 4], strides = [1, 1, 1, 1]} : vector<2x18x18x4xf32> to vector<2x16x16x4xf32>
    %33 = vector.extract_strided_slice %11 {offsets = [1, 0, 0], sizes = [1, 1, 4], strides = [1, 1, 1]} : vector<3x3x4xf32> to vector<1x1x4xf32>
    %34 = vector.shape_cast %33 : vector<1x1x4xf32> to vector<4xf32>
    %35 = vector.shape_cast %34 : vector<4xf32> to vector<1x1x1x4xf32>
    %36 = vector.broadcast %35 : vector<1x1x1x4xf32> to vector<2x16x16x4xf32>
    %37 = arith.mulf %32, %36 : vector<2x16x16x4xf32>
    %38 = arith.addf %31, %37 : vector<2x16x16x4xf32>
    %39 = vector.extract_strided_slice %10 {offsets = [0, 1, 1, 0], sizes = [2, 16, 16, 4], strides = [1, 1, 1, 1]} : vector<2x18x18x4xf32> to vector<2x16x16x4xf32>
    %40 = vector.extract_strided_slice %11 {offsets = [1, 1, 0], sizes = [1, 1, 4], strides = [1, 1, 1]} : vector<3x3x4xf32> to vector<1x1x4xf32>
    %41 = vector.shape_cast %40 : vector<1x1x4xf32> to vector<4xf32>
    %42 = vector.shape_cast %41 : vector<4xf32> to vector<1x1x1x4xf32>
    %43 = vector.broadcast %42 : vector<1x1x1x4xf32> to vector<2x16x16x4xf32>
    %44 = arith.mulf %39, %43 : vector<2x16x16x4xf32>
    %45 = arith.addf %38, %44 : vector<2x16x16x4xf32>
    %46 = vector.extract_strided_slice %10 {offsets = [0, 1, 2, 0], sizes = [2, 16, 16, 4], strides = [1, 1, 1, 1]} : vector<2x18x18x4xf32> to vector<2x16x16x4xf32>
    %47 = vector.extract_strided_slice %11 {offsets = [1, 2, 0], sizes = [1, 1, 4], strides = [1, 1, 1]} : vector<3x3x4xf32> to vector<1x1x4xf32>
    %48 = vector.shape_cast %47 : vector<1x1x4xf32> to vector<4xf32>
    %49 = vector.shape_cast %48 : vector<4xf32> to vector<1x1x1x4xf32>
    %50 = vector.broadcast %49 : vector<1x1x1x4xf32> to vector<2x16x16x4xf32>
    %51 = arith.mulf %46, %50 : vector<2x16x16x4xf32>
    %52 = arith.addf %45, %51 : vector<2x16x16x4xf32>
    %53 = vector.extract_strided_slice %10 {offsets = [0, 2, 0, 0], sizes = [2, 16, 16, 4], strides = [1, 1, 1, 1]} : vector<2x18x18x4xf32> to vector<2x16x16x4xf32>
    %54 = vector.extract_strided_slice %11 {offsets = [2, 0, 0], sizes = [1, 1, 4], strides = [1, 1, 1]} : vector<3x3x4xf32> to vector<1x1x4xf32>
    %55 = vector.shape_cast %54 : vector<1x1x4xf32> to vector<4xf32>
    %56 = vector.shape_cast %55 : vector<4xf32> to vector<1x1x1x4xf32>
    %57 = vector.broadcast %56 : vector<1x1x1x4xf32> to vector<2x16x16x4xf32>
    %58 = arith.mulf %53, %57 : vector<2x16x16x4xf32>
    %59 = arith.addf %52, %58 : vector<2x16x16x4xf32>
    %60 = vector.extract_strided_slice %10 {offsets = [0, 2, 1, 0], sizes = [2, 16, 16, 4], strides = [1, 1, 1, 1]} : vector<2x18x18x4xf32> to vector<2x16x16x4xf32>
    %61 = vector.extract_strided_slice %11 {offsets = [2, 1, 0], sizes = [1, 1, 4], strides = [1, 1, 1]} : vector<3x3x4xf32> to vector<1x1x4xf32>
    %62 = vector.shape_cast %61 : vector<1x1x4xf32> to vector<4xf32>
    %63 = vector.shape_cast %62 : vector<4xf32> to vector<1x1x1x4xf32>
    %64 = vector.broadcast %63 : vector<1x1x1x4xf32> to vector<2x16x16x4xf32>
    %65 = arith.mulf %60, %64 : vector<2x16x16x4xf32>
    %66 = arith.addf %59, %65 : vector<2x16x16x4xf32>
    %67 = vector.extract_strided_slice %10 {offsets = [0, 2, 2, 0], sizes = [2, 16, 16, 4], strides = [1, 1, 1, 1]} : vector<2x18x18x4xf32> to vector<2x16x16x4xf32>
    %68 = vector.extract_strided_slice %11 {offsets = [2, 2, 0], sizes = [1, 1, 4], strides = [1, 1, 1]} : vector<3x3x4xf32> to vector<1x1x4xf32>
    %69 = vector.shape_cast %68 : vector<1x1x4xf32> to vector<4xf32>
    %70 = vector.shape_cast %69 : vector<4xf32> to vector<1x1x1x4xf32>
    %71 = vector.broadcast %70 : vector<1x1x1x4xf32> to vector<2x16x16x4xf32>
    %72 = arith.mulf %67, %71 : vector<2x16x16x4xf32>
    %73 = arith.addf %66, %72 : vector<2x16x16x4xf32>
    %74 = arith.truncf %73 : vector<2x16x16x4xf32> to vector<2x16x16x4xbf16>
    %75 = vector.shape_cast %74 : vector<2x16x16x4xbf16> to vector<512x4xbf16>
    %c0_31 = arith.constant 0 : index
    %c0_32 = arith.constant 0 : index
    %76 = vector.load %arg3[%c0_31, %c0_32] : memref<4x8xf32, #tpu.memory_space<vmem>>, vector<4x8xf32>
    %77 = arith.truncf %76 : vector<4x8xf32> to vector<4x8xbf16>
    %cst_33 = arith.constant dense<0.000000e+00> : vector<512x8xf32>
    %78 = tpu.matmul %75, %77, %cst_33 {dimension_numbers = #tpu.dot_dimension_numbers<[1], [0], [0], [1], [0, 0, 1, 1], [], []>} : vector<512x4xbf16>, vector<4x8xbf16>, vector<512x8xf32> -> vector<512x8xf32>
    %79 = vector.shape_cast %78 : vector<512x8xf32> to vector<2x16x16x8xf32>
    %c0_34 = arith.constant 0 : index
    %c0_35 = arith.constant 0 : index
    %c0_36 = arith.constant 0 : index
    %c0_37 = arith.constant 0 : index
    %80 = vector.load %arg4[%c0_34, %c0_35, %c0_36, %c0_37] : memref<2x16x16x8xf32, #tpu.memory_space<vmem>>, vector<2x16x16x8xf32>
    tpu.vector_store %arg4[%c0_34, %c0_35, %c0_36, %c0_37], %79 {strides = array<i32>} : memref<2x16x16x8xf32, #tpu.memory_space<vmem>>, vector<2x16x16x8xf32>,
    return
  }
  func.func @transform_0(%arg0: i32) -> (i32, i32, i32, i32) {
    %c0_i32 = arith.constant 0 : i32
    %c0_i32_0 = arith.constant 0 : i32
    %c0_i32_1 = arith.constant 0 : i32
    %c0_i32_2 = arith.constant 0 : i32
    return %arg0, %c0_i32, %c0_i32_0, %c0_i32_1 : i32, i32, i32, i32
  }
  func.func @transform_1(%arg0: i32) -> (i32, i32, i32) {
    %c0_i32 = arith.constant 0 : i32
    %c0_i32_0 = arith.constant 0 : i32
    %c0_i32_1 = arith.constant 0 : i32
    %c0_i32_2 = arith.constant 0 : i32
    return %c0_i32, %c0_i32_0, %c0_i32_1 : i32, i32, i32
  }
  func.func @transform_2(%arg0: i32) -> (i32, i32) {
    %c0_i32 = arith.constant 0 : i32
    %c0_i32_0 = arith.constant 0 : i32
    %c0_i32_1 = arith.constant 0 : i32
    return %c0_i32, %c0_i32_0 : i32, i32
  }
  func.func @transform_3(%arg0: i32) -> (i32, i32, i32, i32) {
    %c0_i32 = arith.constant 0 : i32
    %c0_i32_0 = arith.constant 0 : i32
    %c0_i32_1 = arith.constant 0 : i32
    %c0_i32_2 = arith.constant 0 : i32
    return %arg0, %c0_i32, %c0_i32_0, %c0_i32_1 : i32, i32, i32, i32
  }
}

</mosaic_0001>

<bundles_post_ra>
// kernel: depthwise_separable_conv.1
= control target key start
LH: loop header
LB: loop body
LE: loop exit
PB: predicated region body
PF: predicated region fallthrough
CT: control target
= control target key end

     0   :  { %vm15_vm0 = vcmask 31744   ;;  %vm18_vm1 = vcmask 25600   ;;  %vm3868_vm2 = vcmask 1041408   ;;  %v4230_v1 = vmov 0.0   ;;  %s6857_s2 = inlined_call_operand.vmem [shape: f32[4,8], index: 2, kind: input, shape index: {}]   ;;  %s6858_s1 = inlined_call_operand.vmem [shape: f32[3,3,4], index: 1, kind: input, shape index: {}]   ;;  %s6859_s0 = inlined_call_operand.vmem [shape: f32[2,16,16,4], index: 0, kind: input, shape index: {}]   ;;  %s6860_s3 = inlined_call_operand.vmem [shape: f32[2,16,16,8], index: 3, kind: output, shape index: {}]  }
   0x1   :  { %v3610_v0 = vld [vmem:[%s6857_s2] sm:$0xf]  ;;  %16 = vst.msk [vmem:[#allocation2] sm:$0xff] %vm15_vm0, %v4230_v1  ;;  %vm31_vm3 = vcmask 24576   ;;  %v97_v8 = vld [vmem:[%s6859_s0 + $0x8] sm:$0xff]  ;;  %v98_v11 = vld [vmem:[%s6859_s0 + $0x10] sm:$0xff] }
   0x2   :  { %v3611_v2 = vpack.c.bf16 %v3610_v0, %v3610_v0  ;;  %17 = vst.msk [vmem:[#allocation2 + $0x8] sm:$0xff] %vm15_vm0, %v4230_v1  ;;  %v332_v3 = vld [vmem:[%s6858_s1] sm:$0x7]  ;;  %v333_v9 = vld [vmem:[%s6858_s1 + $0x4] sm:$0x7]  ;;  %v99_v12 = vld [vmem:[%s6859_s0 + $0x18] sm:$0xff] }
   0x3   :  { %19 = vst.msk [vmem:[#allocation2 + $0x10] sm:$0x3] %vm18_vm1, %v4230_v1  ;;  %v96_v5 = vld [vmem:[%s6859_s0] sm:$0xff]  ;;  %v4270_v6 = vperm.slane %v332_v3, 1  ;;  %v4272_v7 = vperm.slane %v332_v3, 2  ;;  %v4282_v10 = vperm.slane %v332_v3, 0 }
   0x4   :  { %v3870_v4 = vsel %vm3868_vm2, %v3611_v2, 0  ;;  %32 = vst.msk [vmem:[#allocation2 + $0x18] sm:$0x1] %vm31_vm3, %v4230_v1  ;;  %vm593_vm4 = vcmask 1046528   ;;  %vm1075_vm5 = vcmask 1045504   ;;  %v4296_v17 = vperm.slane %v333_v9, 0 }
   0x5   :  { %3879 = vmatpush.bf16.msra.mxu0 %v3870_v4  ;;  %4143 = vmatpush.bf16.msra.mxu2 %v3870_v4  ;;  %33 = vst.msk [vmem:[#allocation2 + $0x30] sm:$0x1] %vm31_vm3, %v4230_v1  ;;  %v4302_v22 = vperm.slane %v333_v9, 1  ;;  %v334_v23 = vld [vmem:[%s6858_s1 + $0x8] sm:$0x7]  ;;  %v4311_v31 = vperm.slane %v333_v9, 2 }
   0x6   :  { %4142 = vmatpush.bf16.msra.mxu1 %v3870_v4  ;;  %4144 = vmatpush.bf16.msra.mxu3 %v3870_v4  ;;  %64 = vst.msk [vmem:[#allocation2 + $0x29] sm:$0x1] %vm31_vm3, %v4230_v1  ;;  %v4319_v36 = vperm.slane %v334_v23, 0  ;;  %v4321_v37 = vperm.slane %v334_v23, 1  ;;  %v4329_v42 = vperm.slane %v334_v23, 2  ;;  %vm4041_vm6 = vcmask 64512  }
   0x7   :  { %65 = vst.msk [vmem:[#allocation2 + $0x41] sm:$0x1] %vm31_vm3, %v4230_v1 }
   0x8   :  { %160 = vst.msk [vmem:[#allocation2 + $0x19] sm:$0xff] %vm15_vm0, %v96_v5  ;;  %v224_v13 = vld [vmem:[#allocation2] sm:$0xff] }
   0x9   :  { %161 = vst.msk [vmem:[#allocation2 + $0x21] sm:$0xff] %vm15_vm0, %v97_v8  ;;  %v225_v14 = vld [vmem:[#allocation2 + $0x8] sm:$0xff]  ;;  %v401_v15 = vmul.f32 %v4270_v6, %v224_v13  ;;  %v883_v16 = vmul.f32 %v4272_v7, %v224_v13  ;;  %v336_v19 = vmul.f32 %v4282_v10, %v224_v13 }
   0xa   :  { %162 = vst.msk [vmem:[#allocation2 + $0x31] sm:$0xff] %vm15_vm0, %v98_v11  ;;  %v226_v18 = vld [vmem:[#allocation2 + $0x10] sm:$0x3]  ;;  %v402_v20 = vmul.f32 %v4270_v6, %v225_v14  ;;  %v884_v21 = vmul.f32 %v4272_v7, %v225_v14  ;;  %v337_v28 = vmul.f32 %v4282_v10, %v225_v14 }
   0xb   :  { %163 = vst.msk [vmem:[#allocation2 + $0x39] sm:$0xff] %vm15_vm0, %v99_v12  ;;  %v403_v24 = vmul.f32 %v4270_v6, %v226_v18  ;;  %v594_v25 = vrot.slane %v401_v15, 1  ;;  %v885_v26 = vmul.f32 %v4272_v7, %v226_v18  ;;  %v1076_v27 = vrot.slane %v883_v16, 2 }
   0xc   :  { %v595_v29 = vrot.slane %v402_v20, 1  ;;  %v1077_v30 = vrot.slane %v884_v21, 2  ;;  %20 = vst.msk [vmem:[#allocation2 + $0x1b0] sm:$0xff] %vm15_vm0, %v4230_v1 }
   0xd   :  { %v597_v32 = vrot.slane %v403_v24, 1  ;;  %v1079_v33 = vrot.slane %v885_v26, 2  ;;  %21 = vst.msk [vmem:[#allocation2 + $0x1b8] sm:$0xff] %vm15_vm0, %v4230_v1 }
   0xe   :  { %v596_v34 = vsel %vm593_vm4, %v594_v25, %v595_v29  ;;  %v1078_v35 = vsel %vm1075_vm5, %v1076_v27, %v1077_v30  ;;  %22 = vst.msk [vmem:[#allocation2 + $0x1c0] sm:$0x3] %vm18_vm1, %v4230_v1 }
   0xf   :  { %v4325_v38 = vld [vmem:[#allocation2 + $0x18] sm:$0xff]  ;;  %v598_v39 = vsel %vm593_vm4, %v595_v29, %v597_v32  ;;  %v818_v40 = vadd.f32 %v596_v34, %v336_v19  ;;  %v1080_v41 = vsel %vm1075_vm5, %v1077_v30, %v1079_v33  ;;  %24 = vst.msk [vmem:[#allocation2 + $0x198] sm:$0xff] %vm15_vm0, %v4230_v1 }
  0x10   :  { %v4333_v43 = vld [vmem:[#allocation2 + $0x20] sm:$0xff]  ;;  %v4335_v44 = vld [vmem:[#allocation2 + $0x28] sm:$0x3]  ;;  %v819_v45 = vadd.f32 %v598_v39, %v337_v28  ;;  %v1365_v46 = vmul.f32 %v4296_v17, %v4325_v38  ;;  %v1494_v47 = vmul.f32 %v4302_v22, %v4325_v38  ;;  %v1975_v48 = vmul.f32 %v4311_v31, %v4325_v38  ;;  %25 = vst.msk [vmem:[#allocation2 + $0x1a0] sm:$0xff] %vm15_vm0, %v4230_v1 }
  0x11   :  { %v4345_v49 = vld [vmem:[#allocation2 + $0x30] sm:$0xff]  ;;  %v1300_v50 = vadd.f32 %v1078_v35, %v818_v40  ;;  %v1366_v51 = vmul.f32 %v4296_v17, %v4333_v43  ;;  %v1495_v52 = vmul.f32 %v4302_v22, %v4333_v43  ;;  %v1496_v53 = vmul.f32 %v4302_v22, %v4335_v44  ;;  %26 = vst.msk [vmem:[#allocation2 + $0x1a8] sm:$0x3] %vm18_vm1, %v4230_v1 }
  0x12   :  { %v4355_v54 = vld [vmem:[#allocation2 + $0x38] sm:$0xff]  ;;  %v1301_v55 = vadd.f32 %v1080_v41, %v819_v45  ;;  %v1686_v56 = vrot.slane %v1494_v47, 1  ;;  %v1976_v57 = vmul.f32 %v4311_v31, %v4333_v43  ;;  %v1977_v58 = vmul.f32 %v4311_v31, %v4335_v44  ;;  %27 = vst.msk [vmem:[#allocation2 + $0x348] sm:$0xff] %vm15_vm0, %v4230_v1  ;;  %v4365_v63 = vld [vmem:[#allocation2 + $0x40] sm:$0x3] }
  0x13   :  { %v1429_v59 = vadd.f32 %v1365_v46, %v1300_v50  ;;  %v1687_v60 = vrot.slane %v1495_v52, 1  ;;  %v1689_v61 = vrot.slane %v1496_v53, 1  ;;  %v2167_v62 = vrot.slane %v1975_v48, 2  ;;  %28 = vst.msk [vmem:[#allocation2 + $0x350] sm:$0xff] %vm15_vm0, %v4230_v1 }
  0x14   :  { %v1430_v0 = vadd.f32 %v1366_v51, %v1301_v55  ;;  %v2168_v2 = vrot.slane %v1976_v57, 2  ;;  %v2170_v3 = vrot.slane %v1977_v58, 2  ;;  %v2456_v4 = vmul.f32 %v4319_v36, %v4345_v49  ;;  %29 = vst.msk [vmem:[#allocation2 + $0x358] sm:$0x3] %vm18_vm1, %v4230_v1  ;;  %v278_v55 = vld [vmem:[#allocation2 + $0x1b0] sm:$0xff] }
  0x15   :  { %v1688_v5 = vsel %vm593_vm4, %v1686_v56, %v1687_v60  ;;  %v1690_v8 = vsel %vm593_vm4, %v1687_v60, %v1689_v61  ;;  %v2457_v9 = vmul.f32 %v4319_v36, %v4355_v54  ;;  %v2585_v11 = vmul.f32 %v4321_v37, %v4345_v49  ;;  %34 = vst.msk [vmem:[#allocation2 + $0x48] sm:$0x1] %vm31_vm3, %v4230_v1  ;;  %v279_v56 = vld [vmem:[#allocation2 + $0x1b8] sm:$0xff]  ;;  %v280_v57 = vld [vmem:[#allocation2 + $0x1c0] sm:$0x3] }
  0x16   :  { %v1910_v12 = vadd.f32 %v1688_v5, %v1429_v59  ;;  %v1911_v13 = vadd.f32 %v1690_v8, %v1430_v0  ;;  %v2169_v14 = vsel %vm1075_vm5, %v2167_v62, %v2168_v2  ;;  %v2171_v15 = vsel %vm1075_vm5, %v2168_v2, %v2170_v3  ;;  %35 = vst.msk [vmem:[#allocation2 + $0x60] sm:$0x1] %vm31_vm3, %v4230_v1  ;;  %v128_v5 = vld [vmem:[%s6859_s0 + $0x100] sm:$0xff]  ;;  %v129_v8 = vld [vmem:[%s6859_s0 + $0x108] sm:$0xff] }
  0x17   :  { %v2586_v16 = vmul.f32 %v4321_v37, %v4355_v54  ;;  %v2587_v18 = vmul.f32 %v4321_v37, %v4365_v63  ;;  %v2777_v19 = vrot.slane %v2585_v11, 1  ;;  %v3066_v20 = vmul.f32 %v4329_v42, %v4345_v49  ;;  %36 = vst.msk [vmem:[#allocation2 + $0x78] sm:$0x1] %vm31_vm3, %v4230_v1  ;;  %v130_v11 = vld [vmem:[%s6859_s0 + $0x110] sm:$0xff] }
  0x18   :  { %v2391_v21 = vadd.f32 %v2169_v14, %v1910_v12  ;;  %v2392_v23 = vadd.f32 %v2171_v15, %v1911_v13  ;;  %v3067_v24 = vmul.f32 %v4329_v42, %v4355_v54  ;;  %v3068_v25 = vmul.f32 %v4329_v42, %v4365_v63  ;;  %37 = vst.msk [vmem:[#allocation2 + $0x90] sm:$0x1] %vm31_vm3, %v4230_v1 }
  0x19   :  { %v2778_v26 = vrot.slane %v2586_v16, 1  ;;  %v2780_v27 = vrot.slane %v2587_v18, 1  ;;  %v3258_v28 = vrot.slane %v3066_v20, 2  ;;  %38 = vst.msk [vmem:[#allocation2 + $0xa8] sm:$0x1] %vm31_vm3, %v4230_v1  ;;  %v449_v58 = vmul.f32 %v4270_v6, %v278_v55  ;;  %v131_v16 = vld [vmem:[%s6859_s0 + $0x118] sm:$0xff] }
  0x1a   :  { %v2520_v29 = vadd.f32 %v2456_v4, %v2391_v21  ;;  %v2521_v30 = vadd.f32 %v2457_v9, %v2392_v23  ;;  %v3259_v32 = vrot.slane %v3067_v24, 2  ;;  %v3261_v33 = vrot.slane %v3068_v25, 2  ;;  %39 = vst.msk [vmem:[#allocation2 + $0xc0] sm:$0x1] %vm31_vm3, %v4230_v1  ;;  %v111_v21 = vld [vmem:[%s6859_s0 + $0x78] sm:$0xff]  ;;  %v112_v25 = vld [vmem:[%s6859_s0 + $0x80] sm:$0xff] }
  0x1b   :  { %v2779_v34 = vsel %vm593_vm4, %v2777_v19, %v2778_v26  ;;  %v2781_v35 = vsel %vm593_vm4, %v2778_v26, %v2780_v27  ;;  %40 = vst.msk [vmem:[#allocation2 + $0xd8] sm:$0x1] %vm31_vm3, %v4230_v1  ;;  %v450_v59 = vmul.f32 %v4270_v6, %v279_v56  ;;  %v451_v60 = vmul.f32 %v4270_v6, %v280_v57  ;;  %v113_v27 = vld [vmem:[%s6859_s0 + $0x88] sm:$0xff] }
  0x1c   :  { %v3001_v39 = vadd.f32 %v2779_v34, %v2520_v29  ;;  %v3002_v40 = vadd.f32 %v2781_v35, %v2521_v30  ;;  %v3260_v41 = vsel %vm1075_vm5, %v3258_v28, %v3259_v32  ;;  %v3262_v45 = vsel %vm1075_vm5, %v3259_v32, %v3261_v33  ;;  %41 = vst.msk [vmem:[#allocation2 + $0xf0] sm:$0x1] %vm31_vm3, %v4230_v1  ;;  %v114_v28 = vld [vmem:[%s6859_s0 + $0x90] sm:$0xff]  ;;  %v115_v30 = vld [vmem:[%s6859_s0 + $0x98] sm:$0xff] }
  0x1d   :  { %42 = vst.msk [vmem:[#allocation2 + $0x108] sm:$0x1] %vm31_vm3, %v4230_v1  ;;  %v674_v61 = vrot.slane %v449_v58, 1  ;;  %v675_v62 = vrot.slane %v450_v59, 1  ;;  %v931_v0 = vmul.f32 %v4272_v7, %v278_v55  ;;  %v932_v2 = vmul.f32 %v4272_v7, %v279_v56  ;;  %v142_v34 = vld [vmem:[%s6859_s0 + $0x170] sm:$0xff] }
  0x1e   :  { %v3482_v46 = vadd.f32 %v3260_v41, %v3001_v39  ;;  %v3483_v47 = vadd.f32 %v3262_v45, %v3002_v40  ;;  %43 = vst.msk [vmem:[#allocation2 + $0x120] sm:$0x1] %vm31_vm3, %v4230_v1  ;;  %v677_v3 = vrot.slane %v451_v60, 1  ;;  %v933_v4 = vmul.f32 %v4272_v7, %v280_v57  ;;  %v145_v60 = vld [vmem:[%s6859_s0 + $0x188] sm:$0xff] }
  0x1f   :  { %44 = vst.msk [vmem:[#allocation2 + $0x138] sm:$0x1] %vm31_vm3, %v4230_v1  ;;  %v368_v9 = vmul.f32 %v4282_v10, %v278_v55  ;;  %v369_v12 = vmul.f32 %v4282_v10, %v279_v56  ;;  %v676_v13 = vsel %vm593_vm4, %v674_v61, %v675_v62  ;;  %v1156_v14 = vrot.slane %v931_v0, 2  ;;  %v146_v61 = vld [vmem:[%s6859_s0 + $0x190] sm:$0xff] }
  0x20   :  { %v3546_v48 = vpack.c.bf16 %v3482_v46, %v3482_v46  ;;  %v3547_v50 = vpack.c.bf16 %v3483_v47, %v3483_v47  ;;  %45 = vst.msk [vmem:[#allocation2 + $0x150] sm:$0x1] %vm31_vm3, %v4230_v1  ;;  %v1157_v15 = vrot.slane %v932_v2, 2  ;;  %v678_v18 = vsel %vm593_vm4, %v675_v62, %v677_v3  ;;  %v143_v46 = vld [vmem:[%s6859_s0 + $0x178] sm:$0xff] }
  0x21   :  { %46 = vst.msk [vmem:[#allocation2 + $0x168] sm:$0x1] %vm31_vm3, %v4230_v1  ;;  %v1159_v19 = vrot.slane %v933_v4, 2  ;;  %v850_v20 = vadd.f32 %v676_v13, %v368_v9  ;;  %v851_v23 = vadd.f32 %v678_v18, %v369_v12  ;;  %v147_v12 = vld [vmem:[%s6859_s0 + $0x198] sm:$0xff] }
  0x22   :  { %v3676_v51 = vunpack.c.l.b16 %v3546_v48  ;;  %v3677_v52 = vunpack.c.l.b16 %v3547_v50  ;;  %47 = vst.msk [vmem:[#allocation2 + $0x180] sm:$0x1] %vm31_vm3, %v4230_v1  ;;  %v1158_v24 = vsel %vm1075_vm5, %v1156_v14, %v1157_v15 }
  0x23   :  { %48 = vst.msk [vmem:[#allocation2 + $0x1c8] sm:$0x1] %vm31_vm3, %v4230_v1  ;;  %v1160_v26 = vsel %vm1075_vm5, %v1157_v15, %v1159_v19  ;;  %v1332_v29 = vadd.f32 %v1158_v24, %v850_v20 }
  0x24   :  { %v3740_v53 = vpack.c.b16 %v3677_v52, %v3676_v51  ;;  %49 = vst.msk [vmem:[#allocation2 + $0x1e0] sm:$0x1] %vm31_vm3, %v4230_v1  ;;  %v1333_v33 = vadd.f32 %v1160_v26, %v851_v23 }
  0x25   :  { %50 = vst.msk [vmem:[#allocation2 + $0x1f8] sm:$0x1] %vm31_vm3, %v4230_v1 }
  0x26   :  { %4110 = vmatmul.msk.bf16.vlgmr.msra.gmra.mxu0 %vm15_vm0, %v3740_v53  ;;  %51 = vst.msk [vmem:[#allocation2 + $0x210] sm:$0x1] %vm31_vm3, %v4230_v1  ;;  %v144_v53 = vld [vmem:[%s6859_s0 + $0x180] sm:$0xff] }
  0x27   :  { %52 = vst.msk [vmem:[#allocation2 + $0x228] sm:$0x1] %vm31_vm3, %v4230_v1 }
  0x28   :  { %53 = vst.msk [vmem:[#allocation2 + $0x240] sm:$0x1] %vm31_vm3, %v4230_v1 }
  0x29   :  { %54 = vst.msk [vmem:[#allocation2 + $0x258] sm:$0x1] %vm31_vm3, %v4230_v1 }
  0x2a   :  { %55 = vst.msk [vmem:[#allocation2 + $0x270] sm:$0x1] %vm31_vm3, %v4230_v1 }
  0x2b   :  { %56 = vst.msk [vmem:[#allocation2 + $0x288] sm:$0x1] %vm31_vm3, %v4230_v1 }
  0x2c   :  { %57 = vst.msk [vmem:[#allocation2 + $0x2a0] sm:$0x1] %vm31_vm3, %v4230_v1 }
  0x2d   :  { %58 = vst.msk [vmem:[#allocation2 + $0x2b8] sm:$0x1] %vm31_vm3, %v4230_v1 }
  0x2e   :  { %59 = vst.msk [vmem:[#allocation2 + $0x2d0] sm:$0x1] %vm31_vm3, %v4230_v1 }
  0x2f   :  { %60 = vst.msk [vmem:[#allocation2 + $0x2e8] sm:$0x1] %vm31_vm3, %v4230_v1 }
  0x30   :  { %61 = vst.msk [vmem:[#allocation2 + $0x300] sm:$0x1] %vm31_vm3, %v4230_v1 }
  0x31   :  { %62 = vst.msk [vmem:[#allocation2 + $0x318] sm:$0x1] %vm31_vm3, %v4230_v1 }
  0x32   :  { %63 = vst.msk [vmem:[#allocation2 + $0x330] sm:$0x1] %vm31_vm3, %v4230_v1 }
  0x33   :  { %66 = vst.msk [vmem:[#allocation2 + $0x59] sm:$0x1] %vm31_vm3, %v4230_v1 }
  0x34   :  { %67 = vst.msk [vmem:[#allocation2 + $0x71] sm:$0x1] %vm31_vm3, %v4230_v1 }
  0x35   :  { %68 = vst.msk [vmem:[#allocation2 + $0x89] sm:$0x1] %vm31_vm3, %v4230_v1 }
  0x36   :  { %69 = vst.msk [vmem:[#allocation2 + $0xa1] sm:$0x1] %vm31_vm3, %v4230_v1 }
  0x37   :  { %70 = vst.msk [vmem:[#allocation2 + $0xb9] sm:$0x1] %vm31_vm3, %v4230_v1 }
  0x38   :  { %71 = vst.msk [vmem:[#allocation2 + $0xd1] sm:$0x1] %vm31_vm3, %v4230_v1 }
  0x39   :  { %72 = vst.msk [vmem:[#allocation2 + $0xe9] sm:$0x1] %vm31_vm3, %v4230_v1 }
  0x3a   :  { %73 = vst.msk [vmem:[#allocation2 + $0x101] sm:$0x1] %vm31_vm3, %v4230_v1 }
  0x3b   :  { %74 = vst.msk [vmem:[#allocation2 + $0x119] sm:$0x1] %vm31_vm3, %v4230_v1 }
  0x3c   :  { %75 = vst.msk [vmem:[#allocation2 + $0x131] sm:$0x1] %vm31_vm3, %v4230_v1 }
  0x3d   :  { %76 = vst.msk [vmem:[#allocation2 + $0x149] sm:$0x1] %vm31_vm3, %v4230_v1 }
  0x3e   :  { %77 = vst.msk [vmem:[#allocation2 + $0x161] sm:$0x1] %vm31_vm3, %v4230_v1 }
  0x3f   :  { %78 = vst.msk [vmem:[#allocation2 + $0x179] sm:$0x1] %vm31_vm3, %v4230_v1 }
  0x40   :  { %79 = vst.msk [vmem:[#allocation2 + $0x191] sm:$0x1] %vm31_vm3, %v4230_v1 }
  0x41   :  { %80 = vst.msk [vmem:[#allocation2 + $0x1d9] sm:$0x1] %vm31_vm3, %v4230_v1 }
  0x42   :  { %81 = vst.msk [vmem:[#allocation2 + $0x1f1] sm:$0x1] %vm31_vm3, %v4230_v1 }
  0x43   :  { %82 = vst.msk [vmem:[#allocation2 + $0x209] sm:$0x1] %vm31_vm3, %v4230_v1 }
  0x44   :  { %83 = vst.msk [vmem:[#allocation2 + $0x221] sm:$0x1] %vm31_vm3, %v4230_v1 }
  0x45   :  { %84 = vst.msk [vmem:[#allocation2 + $0x239] sm:$0x1] %vm31_vm3, %v4230_v1 }
  0x46   :  { %85 = vst.msk [vmem:[#allocation2 + $0x251] sm:$0x1] %vm31_vm3, %v4230_v1 }
  0x47   :  { %86 = vst.msk [vmem:[#allocation2 + $0x269] sm:$0x1] %vm31_vm3, %v4230_v1 }
  0x48   :  { %87 = vst.msk [vmem:[#allocation2 + $0x281] sm:$0x1] %vm31_vm3, %v4230_v1 }
  0x49   :  { %88 = vst.msk [vmem:[#allocation2 + $0x299] sm:$0x1] %vm31_vm3, %v4230_v1 }
  0x4a   :  { %89 = vst.msk [vmem:[#allocation2 + $0x2b1] sm:$0x1] %vm31_vm3, %v4230_v1 }
  0x4b   :  { %90 = vst.msk [vmem:[#allocation2 + $0x2c9] sm:$0x1] %vm31_vm3, %v4230_v1 }
  0x4c   :  { %91 = vst.msk [vmem:[#allocation2 + $0x2e1] sm:$0x1] %vm31_vm3, %v4230_v1 }
  0x4d   :  { %92 = vst.msk [vmem:[#allocation2 + $0x2f9] sm:$0x1] %vm31_vm3, %v4230_v1 }
  0x4e   :  { %93 = vst.msk [vmem:[#allocation2 + $0x311] sm:$0x1] %vm31_vm3, %v4230_v1 }
  0x4f   :  { %94 = vst.msk [vmem:[#allocation2 + $0x329] sm:$0x1] %vm31_vm3, %v4230_v1 }
  0x50   :  { %95 = vst.msk [vmem:[#allocation2 + $0x341] sm:$0x1] %vm31_vm3, %v4230_v1  ;;  %v110_v1 = vld [vmem:[%s6859_s0 + $0x70] sm:$0xff] }
  0x51   :  { %192 = vst.msk [vmem:[#allocation2 + $0x1c9] sm:$0xff] %vm15_vm0, %v128_v5 }
  0x52   :  { %193 = vst.msk [vmem:[#allocation2 + $0x1d1] sm:$0xff] %vm15_vm0, %v129_v8 }
  0x53   :  { %194 = vst.msk [vmem:[#allocation2 + $0x1e1] sm:$0xff] %vm15_vm0, %v130_v11 }
  0x54   :  { %195 = vst.msk [vmem:[#allocation2 + $0x1e9] sm:$0xff] %vm15_vm0, %v131_v16 }
  0x55   :  { %174 = vst.msk [vmem:[#allocation2 + $0xc1] sm:$0xff] %vm15_vm0, %v110_v1 }
  0x56   :  { %175 = vst.msk [vmem:[#allocation2 + $0xc9] sm:$0xff] %vm15_vm0, %v111_v21 }
  0x57   :  { %176 = vst.msk [vmem:[#allocation2 + $0xd9] sm:$0xff] %vm15_vm0, %v112_v25 }
  0x58   :  { %v4563_v32 = vld [vmem:[#allocation2 + $0x1c8] sm:$0xff]  ;;  %177 = vst.msk [vmem:[#allocation2 + $0xe1] sm:$0xff] %vm15_vm0, %v113_v27 }
  0x59   :  { %v4569_v35 = vld [vmem:[#allocation2 + $0x1d0] sm:$0xff]  ;;  %v4571_v39 = vld [vmem:[#allocation2 + $0x1d8] sm:$0x3]  ;;  %v1397_v40 = vmul.f32 %v4296_v17, %v4563_v32  ;;  %v1542_v41 = vmul.f32 %v4302_v22, %v4563_v32  ;;  %v2023_v45 = vmul.f32 %v4311_v31, %v4563_v32  ;;  %178 = vst.msk [vmem:[#allocation2 + $0xf1] sm:$0xff] %vm15_vm0, %v114_v28 }
  0x5a   :  { %v4583_v47 = vld [vmem:[#allocation2 + $0x1e0] sm:$0xff]  ;;  %v1398_v48 = vmul.f32 %v4296_v17, %v4569_v35  ;;  %v1543_v50 = vmul.f32 %v4302_v22, %v4569_v35  ;;  %v1544_v51 = vmul.f32 %v4302_v22, %v4571_v39  ;;  %v2024_v52 = vmul.f32 %v4311_v31, %v4569_v35  ;;  %179 = vst.msk [vmem:[#allocation2 + $0xf9] sm:$0xff] %vm15_vm0, %v115_v30 }
  0x5b   :  { %v4597_v55 = vld [vmem:[#allocation2 + $0x1e8] sm:$0xff]  ;;  %v1461_v56 = vadd.f32 %v1397_v40, %v1332_v29  ;;  %v1766_v57 = vrot.slane %v1542_v41, 1  ;;  %v2025_v58 = vmul.f32 %v4311_v31, %v4571_v39  ;;  %v2247_v59 = vrot.slane %v2023_v45, 2  ;;  %206 = vst.msk [vmem:[#allocation2 + $0x271] sm:$0xff] %vm15_vm0, %v142_v34  ;;  %v4608_v62 = vld [vmem:[#allocation2 + $0x1f0] sm:$0x3] }
  0x5c   :  { %v1462_v0 = vadd.f32 %v1398_v48, %v1333_v33  ;;  %v1767_v2 = vrot.slane %v1543_v50, 1  ;;  %v1769_v3 = vrot.slane %v1544_v51, 1  ;;  %v2248_v4 = vrot.slane %v2024_v52, 2  ;;  %207 = vst.msk [vmem:[#allocation2 + $0x279] sm:$0xff] %vm15_vm0, %v143_v46  ;;  %v248_v30 = vld [vmem:[#allocation2 + $0xc0] sm:$0xff] }
  0x5d   :  { %v2250_v5 = vrot.slane %v2025_v58, 2  ;;  %v2488_v8 = vmul.f32 %v4319_v36, %v4583_v47  ;;  %v2489_v9 = vmul.f32 %v4319_v36, %v4597_v55  ;;  %v2633_v11 = vmul.f32 %v4321_v37, %v4583_v47  ;;  %208 = vst.msk [vmem:[#allocation2 + $0x289] sm:$0xff] %vm15_vm0, %v144_v53  ;;  %v249_v33 = vld [vmem:[#allocation2 + $0xc8] sm:$0xff]  ;;  %v250_v45 = vld [vmem:[#allocation2 + $0xd0] sm:$0x3] }
  0x5e   :  { %v1768_v13 = vsel %vm593_vm4, %v1766_v57, %v1767_v2  ;;  %v1770_v14 = vsel %vm593_vm4, %v1767_v2, %v1769_v3  ;;  %v2249_v15 = vsel %vm1075_vm5, %v2247_v59, %v2248_v4  ;;  %v2634_v16 = vmul.f32 %v4321_v37, %v4597_v55  ;;  %209 = vst.msk [vmem:[#allocation2 + $0x291] sm:$0xff] %vm15_vm0, %v145_v60 }
  0x5f   :  { %v1942_v18 = vadd.f32 %v1768_v13, %v1461_v56  ;;  %v1943_v19 = vadd.f32 %v1770_v14, %v1462_v0  ;;  %v2251_v1 = vsel %vm1075_vm5, %v2248_v4, %v2250_v5  ;;  %v2635_v20 = vmul.f32 %v4321_v37, %v4608_v62  ;;  %210 = vst.msk [vmem:[#allocation2 + $0x2a1] sm:$0xff] %vm15_vm0, %v146_v61  ;;  %v4646_v0 = vld [vmem:[#allocation2 + $0xd8] sm:$0xff] }
  0x60   :  { %v2857_v21 = vrot.slane %v2633_v11, 1  ;;  %v2858_v23 = vrot.slane %v2634_v16, 1  ;;  %v3114_v24 = vmul.f32 %v4329_v42, %v4583_v47  ;;  %v3115_v25 = vmul.f32 %v4329_v42, %v4597_v55  ;;  %211 = vst.msk [vmem:[#allocation2 + $0x2a9] sm:$0xff] %vm15_vm0, %v147_v12  ;;  %v4651_v12 = vld [vmem:[#allocation2 + $0xe0] sm:$0xff] }
  0x61   :  { %v2423_v26 = vadd.f32 %v2249_v15, %v1942_v18  ;;  %v2424_v27 = vadd.f32 %v2251_v1, %v1943_v19  ;;  %v2860_v28 = vrot.slane %v2635_v20, 1  ;;  %v3116_v29 = vmul.f32 %v4329_v42, %v4608_v62 }
  0x62   :  { %v2859_v34 = vsel %vm593_vm4, %v2857_v21, %v2858_v23  ;;  %v3338_v40 = vrot.slane %v3114_v24, 2  ;;  %v3339_v41 = vrot.slane %v3115_v25, 2  ;;  %v352_v46 = vmul.f32 %v4282_v10, %v248_v30  ;;  %v4657_v21 = vld [vmem:[#allocation2 + $0xe8] sm:$0x3] }
  0x63   :  { %v2552_v48 = vadd.f32 %v2488_v8, %v2423_v26  ;;  %v2553_v50 = vadd.f32 %v2489_v9, %v2424_v27  ;;  %v2861_v51 = vsel %vm593_vm4, %v2858_v23, %v2860_v28  ;;  %v3341_v52 = vrot.slane %v3116_v29, 2 }
  0x64   :  { %v3340_v53 = vsel %vm1075_vm5, %v3338_v40, %v3339_v41  ;;  %v353_v56 = vmul.f32 %v4282_v10, %v249_v33  ;;  %v425_v57 = vmul.f32 %v4270_v6, %v248_v30  ;;  %v426_v58 = vmul.f32 %v4270_v6, %v249_v33  ;;  %v100_v40 = vld [vmem:[%s6859_s0 + $0x20] sm:$0xff] }
  0x65   :  { %v3033_v59 = vadd.f32 %v2859_v34, %v2552_v48  ;;  %v3034_v60 = vadd.f32 %v2861_v51, %v2553_v50  ;;  %v3342_v61 = vsel %vm1075_vm5, %v3339_v41, %v3341_v52  ;;  %v427_v2 = vmul.f32 %v4270_v6, %v250_v45  ;;  %v101_v41 = vld [vmem:[%s6859_s0 + $0x28] sm:$0xff]  ;;  %164 = vst.msk [vmem:[#allocation2 + $0x49] sm:$0xff] %vm15_vm0, %v100_v40 }
  0x66   :  { %v634_v3 = vrot.slane %v425_v57, 1  ;;  %v635_v4 = vrot.slane %v426_v58, 1  ;;  %v907_v5 = vmul.f32 %v4272_v7, %v248_v30  ;;  %v908_v8 = vmul.f32 %v4272_v7, %v249_v33  ;;  %165 = vst.msk [vmem:[#allocation2 + $0x51] sm:$0xff] %vm15_vm0, %v101_v41 }
  0x67   :  { %v3514_v9 = vadd.f32 %v3340_v53, %v3033_v59  ;;  %v3515_v11 = vadd.f32 %v3342_v61, %v3034_v60  ;;  %v637_v13 = vrot.slane %v427_v2, 1  ;;  %v909_v14 = vmul.f32 %v4272_v7, %v250_v45  ;;  %v4671_v45 = vld [vmem:[#allocation2 + $0xf0] sm:$0xff] }
  0x68   :  { %v636_v15 = vsel %vm593_vm4, %v634_v3, %v635_v4  ;;  %v1116_v16 = vrot.slane %v907_v5, 2  ;;  %v1117_v18 = vrot.slane %v908_v8, 2  ;;  %v1381_v19 = vmul.f32 %v4296_v17, %v4646_v0  ;;  %v4689_v3 = vld [vmem:[#allocation2 + $0x100] sm:$0x3] }
  0x69   :  { %v3578_v1 = vpack.c.bf16 %v3514_v9, %v3514_v9  ;;  %v3579_v20 = vpack.c.bf16 %v3515_v11, %v3515_v11  ;;  %v638_v23 = vsel %vm593_vm4, %v635_v4, %v637_v13  ;;  %v834_v24 = vadd.f32 %v636_v15, %v352_v46  ;;  %v4673_v46 = vld [vmem:[#allocation2 + $0xf8] sm:$0xff]  ;;  %v132_v11 = vld [vmem:[%s6859_s0 + $0x120] sm:$0xff]  ;;  %v133_v13 = vld [vmem:[%s6859_s0 + $0x128] sm:$0xff] }
  0x6a   :  { %v835_v25 = vadd.f32 %v638_v23, %v353_v56  ;;  %v1118_v26 = vsel %vm1075_vm5, %v1116_v16, %v1117_v18  ;;  %v1119_v27 = vrot.slane %v909_v14, 2  ;;  %v1382_v28 = vmul.f32 %v4296_v17, %v4651_v12  ;;  %196 = vst.msk [vmem:[#allocation2 + $0x1f9] sm:$0xff] %vm15_vm0, %v132_v11 }
  0x6b   :  { %v3708_v29 = vunpack.c.l.b16 %v3578_v1  ;;  %v3709_v30 = vunpack.c.l.b16 %v3579_v20  ;;  %v1316_v33 = vadd.f32 %v1118_v26, %v834_v24  ;;  %v1518_v34 = vmul.f32 %v4302_v22, %v4646_v0  ;;  %197 = vst.msk [vmem:[#allocation2 + $0x201] sm:$0xff] %vm15_vm0, %v133_v13 }
  0x6c   :  { %v1120_v48 = vsel %vm1075_vm5, %v1117_v18, %v1119_v27  ;;  %v1519_v50 = vmul.f32 %v4302_v22, %v4651_v12  ;;  %v1520_v51 = vmul.f32 %v4302_v22, %v4657_v21  ;;  %v1999_v52 = vmul.f32 %v4311_v31, %v4646_v0 }
  0x6d   :  { %v3756_v53 = vpack.c.b16 %v3709_v30, %v3708_v29  ;;  %v1317_v56 = vadd.f32 %v1120_v48, %v835_v25  ;;  %v1445_v57 = vadd.f32 %v1381_v19, %v1316_v33  ;;  %v1726_v58 = vrot.slane %v1518_v34, 1 }
  0x6e   :  { %v1727_v59 = vrot.slane %v1519_v50, 1  ;;  %v1729_v60 = vrot.slane %v1520_v51, 1  ;;  %v2000_v61 = vmul.f32 %v4311_v31, %v4651_v12  ;;  %v2001_v2 = vmul.f32 %v4311_v31, %v4657_v21  ;;  %v302_v50 = vld [vmem:[#allocation2 + $0x270] sm:$0xff]  ;;  %v303_v51 = vld [vmem:[#allocation2 + $0x278] sm:$0xff] }
  0x6f   :  { %4126 = vmatmul.msk.bf16.vlgmr.msra.gmra.mxu2 %vm15_vm0, %v3756_v53  ;;  %v1446_v4 = vadd.f32 %v1382_v28, %v1317_v56  ;;  %v2207_v5 = vrot.slane %v1999_v52, 2  ;;  %v2472_v8 = vmul.f32 %v4319_v36, %v4671_v45  ;;  %v2473_v9 = vmul.f32 %v4319_v36, %v4673_v46 }
  0x70   :  { %v1728_v14 = vsel %vm593_vm4, %v1726_v58, %v1727_v59  ;;  %v1730_v15 = vsel %vm593_vm4, %v1727_v59, %v1729_v60  ;;  %v2208_v16 = vrot.slane %v2000_v61, 2  ;;  %v2210_v18 = vrot.slane %v2001_v2, 2 }
  0x71   :  { %v1926_v19 = vadd.f32 %v1728_v14, %v1445_v57  ;;  %v1927_v1 = vadd.f32 %v1730_v15, %v1446_v4  ;;  %v2609_v20 = vmul.f32 %v4321_v37, %v4671_v45  ;;  %v2610_v23 = vmul.f32 %v4321_v37, %v4673_v46  ;;  %v304_v57 = vld [vmem:[#allocation2 + $0x280] sm:$0x3]  ;;  %v4727_v14 = vld [vmem:[#allocation2 + $0x288] sm:$0xff] }
  0x72   :  { %v2209_v24 = vsel %vm1075_vm5, %v2207_v5, %v2208_v16  ;;  %v2211_v25 = vsel %vm1075_vm5, %v2208_v16, %v2210_v18  ;;  %v2611_v26 = vmul.f32 %v4321_v37, %v4689_v3  ;;  %v3090_v27 = vmul.f32 %v4329_v42, %v4671_v45 }
  0x73   :  { %v2407_v28 = vadd.f32 %v2209_v24, %v1926_v19  ;;  %v2408_v29 = vadd.f32 %v2211_v25, %v1927_v1  ;;  %v2817_v30 = vrot.slane %v2609_v20, 1  ;;  %v2818_v33 = vrot.slane %v2610_v23, 1  ;;  %v4731_v23 = vld [vmem:[#allocation2 + $0x290] sm:$0xff] }
  0x74   :  { %v2820_v34 = vrot.slane %v2611_v26, 1  ;;  %v3091_v40 = vmul.f32 %v4329_v42, %v4673_v46  ;;  %v3092_v41 = vmul.f32 %v4329_v42, %v4689_v3  ;;  %v3298_v48 = vrot.slane %v3090_v27, 2 }
  0x75   :  { %v2536_v52 = vadd.f32 %v2472_v8, %v2407_v28  ;;  %v2537_v53 = vadd.f32 %v2473_v9, %v2408_v29  ;;  %v2819_v56 = vsel %vm593_vm4, %v2817_v30, %v2818_v33  ;;  %v384_v58 = vmul.f32 %v4282_v10, %v302_v50 }
  0x76   :  { %v2821_v59 = vsel %vm593_vm4, %v2818_v33, %v2820_v34  ;;  %v3299_v60 = vrot.slane %v3091_v40, 2  ;;  %v3301_v61 = vrot.slane %v3092_v41, 2  ;;  %v385_v2 = vmul.f32 %v4282_v10, %v303_v51  ;;  %v4738_v34 = vld [vmem:[#allocation2 + $0x298] sm:$0x3] }
  0x77   :  { %v3017_v4 = vadd.f32 %v2819_v56, %v2536_v52  ;;  %v3018_v5 = vadd.f32 %v2821_v59, %v2537_v53  ;;  %v473_v11 = vmul.f32 %v4270_v6, %v302_v50  ;;  %v474_v13 = vmul.f32 %v4270_v6, %v303_v51 }
  0x78   :  { %v3300_v8 = vsel %vm1075_vm5, %v3298_v48, %v3299_v60  ;;  %v3302_v9 = vsel %vm1075_vm5, %v3299_v60, %v3301_v61  ;;  %v475_v15 = vmul.f32 %v4270_v6, %v304_v57  ;;  %v955_v16 = vmul.f32 %v4272_v7, %v302_v50 }
  0x79   :  { %v3498_v18 = vadd.f32 %v3300_v8, %v3017_v4  ;;  %v3499_v19 = vadd.f32 %v3302_v9, %v3018_v5  ;;  %v714_v1 = vrot.slane %v473_v11, 1  ;;  %v715_v20 = vrot.slane %v474_v13, 1  ;;  %v4753_v13 = vld [vmem:[#allocation2 + $0x2a8] sm:$0xff] }
  0x7a   :  { %v717_v24 = vrot.slane %v475_v15, 1  ;;  %v956_v25 = vmul.f32 %v4272_v7, %v303_v51  ;;  %v957_v26 = vmul.f32 %v4272_v7, %v304_v57  ;;  %v1196_v27 = vrot.slane %v955_v16, 2 }
  0x7b   :  { %v3562_v28 = vpack.c.bf16 %v3498_v18, %v3498_v18  ;;  %v3563_v29 = vpack.c.bf16 %v3499_v19, %v3499_v19  ;;  %v716_v30 = vsel %vm593_vm4, %v714_v1, %v715_v20  ;;  %v1413_v33 = vmul.f32 %v4296_v17, %v4727_v14 }
  0x7c   :  { %v718_v40 = vsel %vm593_vm4, %v715_v20, %v717_v24  ;;  %v866_v41 = vadd.f32 %v716_v30, %v384_v58  ;;  %v1197_v48 = vrot.slane %v956_v25, 2  ;;  %v1199_v50 = vrot.slane %v957_v26, 2  ;;  %v4749_v58 = vld [vmem:[#allocation2 + $0x2a0] sm:$0xff]  ;;  %v4762_v24 = vld [vmem:[#allocation2 + $0x2b0] sm:$0x3] }
  0x7d   :  { %v3692_v52 = vunpack.c.l.b16 %v3562_v28  ;;  %v3693_v53 = vunpack.c.l.b16 %v3563_v29  ;;  %v867_v51 = vadd.f32 %v718_v40, %v385_v2  ;;  %v1414_v56 = vmul.f32 %v4296_v17, %v4731_v23 }
  0x7e   :  { %v1198_v57 = vsel %vm1075_vm5, %v1196_v27, %v1197_v48  ;;  %v1200_v59 = vsel %vm1075_vm5, %v1197_v48, %v1199_v50  ;;  %v1566_v60 = vmul.f32 %v4302_v22, %v4727_v14  ;;  %v1567_v61 = vmul.f32 %v4302_v22, %v4731_v23  ;;  %v117_v48 = vld [vmem:[%s6859_s0 + $0xa8] sm:$0xff] }
  0x7f   :  { %v3748_v4 = vpack.c.b16 %v3693_v53, %v3692_v52  ;;  %v1348_v5 = vadd.f32 %v1198_v57, %v866_v41  ;;  %v1349_v11 = vadd.f32 %v1200_v59, %v867_v51  ;;  %v1568_v2 = vmul.f32 %v4302_v22, %v4738_v34  ;;  %v116_v41 = vld [vmem:[%s6859_s0 + $0xa0] sm:$0xff]  ;;  %181 = vst.msk [vmem:[#allocation2 + $0x111] sm:$0xff] %vm15_vm0, %v117_v48 }
  0x80   :  { %v1806_v8 = vrot.slane %v1566_v60, 1  ;;  %v1807_v9 = vrot.slane %v1567_v61, 1  ;;  %v2047_v15 = vmul.f32 %v4311_v31, %v4727_v14  ;;  %v2048_v16 = vmul.f32 %v4311_v31, %v4731_v23  ;;  %180 = vst.msk [vmem:[#allocation2 + $0x109] sm:$0xff] %vm15_vm0, %v116_v41 }
  0x81   :  { %4118 = vmatmul.msk.bf16.vlgmr.msra.gmra.mxu1 %vm15_vm0, %v3748_v4  ;;  %v1477_v18 = vadd.f32 %v1413_v33, %v1348_v5  ;;  %v1478_v19 = vadd.f32 %v1414_v56, %v1349_v11  ;;  %v1809_v1 = vrot.slane %v1568_v2, 1  ;;  %v2049_v20 = vmul.f32 %v4311_v31, %v4738_v34 }
  0x82   :  { %v1808_v25 = vsel %vm593_vm4, %v1806_v8, %v1807_v9  ;;  %v2287_v26 = vrot.slane %v2047_v15, 2  ;;  %v2288_v27 = vrot.slane %v2048_v16, 2  ;;  %v2504_v28 = vmul.f32 %v4319_v36, %v4749_v58 }
  0x83   :  { %v1810_v29 = vsel %vm593_vm4, %v1807_v9, %v1809_v1  ;;  %v1958_v30 = vadd.f32 %v1808_v25, %v1477_v18  ;;  %v2290_v40 = vrot.slane %v2049_v20, 2  ;;  %v2505_v33 = vmul.f32 %v4319_v36, %v4753_v13 }
  0x84   :  { %v1959_v50 = vadd.f32 %v1810_v29, %v1478_v19  ;;  %v2289_v52 = vsel %vm1075_vm5, %v2287_v26, %v2288_v27  ;;  %v2657_v53 = vmul.f32 %v4321_v37, %v4749_v58  ;;  %v2658_v51 = vmul.f32 %v4321_v37, %v4753_v13 }
  0x85   :  { %v2291_v56 = vsel %vm1075_vm5, %v2288_v27, %v2290_v40  ;;  %v2439_v57 = vadd.f32 %v2289_v52, %v1958_v30  ;;  %v2659_v59 = vmul.f32 %v4321_v37, %v4762_v24  ;;  %v3138_v60 = vmul.f32 %v4329_v42, %v4749_v58 }
  0x86   :  { %v2440_v61 = vadd.f32 %v2291_v56, %v1959_v50  ;;  %v2897_v4 = vrot.slane %v2657_v53, 1  ;;  %v2898_v5 = vrot.slane %v2658_v51, 1  ;;  %v3139_v11 = vmul.f32 %v4329_v42, %v4753_v13 }
  0x87   :  { %v2568_v2 = vadd.f32 %v2504_v28, %v2439_v57  ;;  %v2900_v8 = vrot.slane %v2659_v59, 1  ;;  %v3140_v9 = vmul.f32 %v4329_v42, %v4762_v24  ;;  %v3378_v15 = vrot.slane %v3138_v60, 2 }
  0x88   :  { %v2569_v16 = vadd.f32 %v2505_v33, %v2440_v61  ;;  %v2899_v18 = vsel %vm593_vm4, %v2897_v4, %v2898_v5  ;;  %v3379_v19 = vrot.slane %v3139_v11, 2  ;;  %v338_v1 = vmul.f32 %v4282_v10, %v4325_v38 }
  0x89   :  { %v2901_v20 = vsel %vm593_vm4, %v2898_v5, %v2900_v8  ;;  %v3049_v25 = vadd.f32 %v2899_v18, %v2568_v2  ;;  %v3381_v26 = vrot.slane %v3140_v9, 2  ;;  %v339_v27 = vmul.f32 %v4282_v10, %v4333_v43 }
  0x8a   :  { %v3050_v28 = vadd.f32 %v2901_v20, %v2569_v16  ;;  %v3380_v29 = vsel %vm1075_vm5, %v3378_v15, %v3379_v19  ;;  %v404_v30 = vmul.f32 %v4270_v6, %v4325_v38  ;;  %v405_v40 = vmul.f32 %v4270_v6, %v4333_v43 }
  0x8b   :  { %v3382_v33 = vsel %vm1075_vm5, %v3379_v19, %v3381_v26  ;;  %v3530_v41 = vadd.f32 %v3380_v29, %v3049_v25  ;;  %v406_v48 = vmul.f32 %v4270_v6, %v4335_v44  ;;  %v886_v50 = vmul.f32 %v4272_v7, %v4325_v38  ;;  %v4824_v29 = vld [vmem:[#allocation2 + $0x48] sm:$0xff] }
  0x8c   :  { %v3531_v52 = vadd.f32 %v3382_v33, %v3050_v28  ;;  %v599_v53 = vrot.slane %v404_v30, 1  ;;  %v600_v51 = vrot.slane %v405_v40, 1  ;;  %v887_v56 = vmul.f32 %v4272_v7, %v4333_v43 }
  0x8d   :  { %v3594_v57 = vpack.c.bf16 %v3530_v41, %v3530_v41  ;;  %v602_v59 = vrot.slane %v406_v48, 1  ;;  %v888_v60 = vmul.f32 %v4272_v7, %v4335_v44  ;;  %v1081_v61 = vrot.slane %v886_v50, 2 }
  0x8e   :  { %v3595_v4 = vpack.c.bf16 %v3531_v52, %v3531_v52  ;;  %v601_v5 = vsel %vm593_vm4, %v599_v53, %v600_v51  ;;  %v1082_v11 = vrot.slane %v887_v56, 2  ;;  %v1367_v2 = vmul.f32 %v4296_v17, %v4345_v49  ;;  %v4835_v52 = vld [vmem:[#allocation2 + $0x58] sm:$0x3] }
  0x8f   :  { %v3724_v38 = vunpack.c.l.b16 %v3594_v57  ;;  %v603_v8 = vsel %vm593_vm4, %v600_v51, %v602_v59  ;;  %v820_v9 = vadd.f32 %v601_v5, %v338_v1  ;;  %v1084_v15 = vrot.slane %v888_v60, 2  ;;  %v4826_v1 = vld [vmem:[#allocation2 + $0x50] sm:$0xff] }
  0x90   :  { %v3725_v16 = vunpack.c.l.b16 %v3595_v4  ;;  %v821_v43 = vadd.f32 %v603_v8, %v339_v27  ;;  %v1083_v18 = vsel %vm1075_vm5, %v1081_v61, %v1082_v11  ;;  %v1368_v44 = vmul.f32 %v4296_v17, %v4355_v54  ;;  %v149_v4 = vld [vmem:[%s6859_s0 + $0x1a8] sm:$0xff] }
  0x91   :  { %v1085_v19 = vsel %vm1075_vm5, %v1082_v11, %v1084_v15  ;;  %v1302_v20 = vadd.f32 %v1083_v18, %v820_v9  ;;  %v1497_v25 = vmul.f32 %v4302_v22, %v4345_v49  ;;  %v1498_v26 = vmul.f32 %v4302_v22, %v4355_v54  ;;  %213 = vst.msk [vmem:[#allocation2 + $0x2c1] sm:$0xff] %vm15_vm0, %v149_v4 }
  0x92   :  { %v3764_v28 = vpack.c.b16 %v3725_v16, %v3724_v38  ;;  %v1303_v27 = vadd.f32 %v1085_v19, %v821_v43  ;;  %v1499_v30 = vmul.f32 %v4302_v22, %v4365_v63  ;;  %v1978_v40 = vmul.f32 %v4311_v31, %v4345_v49 }
  0x93   :  { %v1431_v33 = vadd.f32 %v1367_v2, %v1302_v20  ;;  %v1691_v41 = vrot.slane %v1497_v25, 1  ;;  %v1692_v48 = vrot.slane %v1498_v26, 1  ;;  %v1979_v50 = vmul.f32 %v4311_v31, %v4355_v54  ;;  %v148_v54 = vld [vmem:[%s6859_s0 + $0x1a0] sm:$0xff] }
  0x94   :  { %4134 = vmatmul.msk.bf16.vlgmr.msra.gmra.mxu3 %vm15_vm0, %v3764_v28  ;;  %v1432_v53 = vadd.f32 %v1368_v44, %v1303_v27  ;;  %v1694_v51 = vrot.slane %v1499_v30, 1  ;;  %v1980_v56 = vmul.f32 %v4311_v31, %v4365_v63  ;;  %v2172_v57 = vrot.slane %v1978_v40, 2  ;;  %212 = vst.msk [vmem:[#allocation2 + $0x2b9] sm:$0xff] %vm15_vm0, %v148_v54 }
  0x95   :  { %v1693_v59 = vsel %vm593_vm4, %v1691_v41, %v1692_v48  ;;  %v2173_v60 = vrot.slane %v1979_v50, 2  ;;  %v2458_v49 = vmul.f32 %v4319_v36, %v4824_v29  ;;  %v2459_v61 = vmul.f32 %v4319_v36, %v4826_v1 }
  0x96   :  { %v1695_v63 = vsel %vm593_vm4, %v1692_v48, %v1694_v51  ;;  %v1912_v5 = vadd.f32 %v1693_v59, %v1431_v33  ;;  %v2175_v11 = vrot.slane %v1980_v56, 2  ;;  %v2588_v2 = vmul.f32 %v4321_v37, %v4824_v29 }
  0x97   :  { %v1913_v38 = vadd.f32 %v1695_v63, %v1432_v53  ;;  %v2174_v8 = vsel %vm1075_vm5, %v2172_v57, %v2173_v60  ;;  %v2589_v9 = vmul.f32 %v4321_v37, %v4826_v1  ;;  %v2590_v15 = vmul.f32 %v4321_v37, %v4835_v52 }
  0x98   :  { %v2176_v16 = vsel %vm1075_vm5, %v2173_v60, %v2175_v11  ;;  %v2393_v43 = vadd.f32 %v2174_v8, %v1912_v5  ;;  %v2782_v18 = vrot.slane %v2588_v2, 1  ;;  %v3069_v44 = vmul.f32 %v4329_v42, %v4824_v29 }
  0x99   :  { %v2394_v19 = vadd.f32 %v2176_v16, %v1913_v38  ;;  %v2783_v20 = vrot.slane %v2589_v9, 1  ;;  %v2785_v25 = vrot.slane %v2590_v15, 1  ;;  %v3070_v26 = vmul.f32 %v4329_v42, %v4826_v1 }
  0x9a   :  { %v2522_v28 = vadd.f32 %v2458_v49, %v2393_v43  ;;  %v3071_v27 = vmul.f32 %v4329_v42, %v4835_v52  ;;  %v3263_v30 = vrot.slane %v3069_v44, 2  ;;  %v370_v40 = vmul.f32 %v4282_v10, %v4563_v32 }
  0x9b   :  { %v2523_v33 = vadd.f32 %v2459_v61, %v2394_v19  ;;  %v2784_v41 = vsel %vm593_vm4, %v2782_v18, %v2783_v20  ;;  %v2786_v48 = vsel %vm593_vm4, %v2783_v20, %v2785_v25  ;;  %v3264_v50 = vrot.slane %v3070_v26, 2 }
  0x9c   :  { %v3003_v53 = vadd.f32 %v2784_v41, %v2522_v28  ;;  %v3266_v51 = vrot.slane %v3071_v27, 2  ;;  %v371_v56 = vmul.f32 %v4282_v10, %v4569_v35  ;;  %v452_v57 = vmul.f32 %v4270_v6, %v4563_v32 }
  0x9d   :  { %v3004_v59 = vadd.f32 %v2786_v48, %v2523_v33  ;;  %v3265_v60 = vsel %vm1075_vm5, %v3263_v30, %v3264_v50  ;;  %v453_v49 = vmul.f32 %v4270_v6, %v4569_v35  ;;  %v454_v61 = vmul.f32 %v4270_v6, %v4571_v39  ;;  %v4896_v33 = vld [vmem:[#allocation2 + $0x1f8] sm:$0xff] }
  0x9e   :  { %v3267_v54 = vsel %vm1075_vm5, %v3264_v50, %v3266_v51  ;;  %v3484_v4 = vadd.f32 %v3265_v60, %v3003_v53  ;;  %v679_v63 = vrot.slane %v452_v57, 1  ;;  %v934_v5 = vmul.f32 %v4272_v7, %v4563_v32  ;;  %v4903_v51 = vld [vmem:[#allocation2 + $0x200] sm:$0xff] }
  0x9f   :  { %v3485_v11 = vadd.f32 %v3267_v54, %v3004_v59  ;;  %v680_v2 = vrot.slane %v453_v49, 1  ;;  %v682_v38 = vrot.slane %v454_v61, 1  ;;  %v935_v8 = vmul.f32 %v4272_v7, %v4569_v35 }
  0xa0   :  { %v3548_v9 = vpack.c.bf16 %v3484_v4, %v3484_v4  ;;  %v936_v15 = vmul.f32 %v4272_v7, %v4571_v39  ;;  %v1161_v16 = vrot.slane %v934_v5, 2  ;;  %v1399_v43 = vmul.f32 %v4296_v17, %v4583_v47  ;;  %v4910_v4 = vld [vmem:[#allocation2 + $0x208] sm:$0x3] }
  0xa1   :  { %v3549_v18 = vpack.c.bf16 %v3485_v11, %v3485_v11  ;;  %v681_v44 = vsel %vm593_vm4, %v679_v63, %v680_v2  ;;  %v683_v19 = vsel %vm593_vm4, %v680_v2, %v682_v38  ;;  %v1162_v32 = vrot.slane %v935_v8, 2 }
  0xa2   :  { %v3678_v20 = vunpack.c.l.b16 %v3548_v9  ;;  %v852_v25 = vadd.f32 %v681_v44, %v370_v40  ;;  %v853_v26 = vadd.f32 %v683_v19, %v371_v56  ;;  %v1164_v28 = vrot.slane %v936_v15, 2 }
  0xa3   :  { %v3679_v27 = vunpack.c.l.b16 %v3549_v18  ;;  %v1163_v35 = vsel %vm1075_vm5, %v1161_v16, %v1162_v32  ;;  %v1400_v39 = vmul.f32 %v4296_v17, %v4597_v55  ;;  %v1545_v30 = vmul.f32 %v4302_v22, %v4583_v47 }
  0xa4   :  { %v1165_v41 = vsel %vm1075_vm5, %v1162_v32, %v1164_v28  ;;  %v1334_v48 = vadd.f32 %v1163_v35, %v852_v25  ;;  %v1546_v50 = vmul.f32 %v4302_v22, %v4597_v55  ;;  %v1547_v40 = vmul.f32 %v4302_v22, %v4608_v62 }
  0xa5   :  { %v3741_v53 = vpack.c.b16 %v3679_v27, %v3678_v20  ;;  %v1335_v56 = vadd.f32 %v1165_v41, %v853_v26  ;;  %v1771_v57 = vrot.slane %v1545_v30, 1  ;;  %v2026_v59 = vmul.f32 %v4311_v31, %v4583_v47 }
  0xa6   :  { %v1463_v60 = vadd.f32 %v1399_v43, %v1334_v48  ;;  %v1772_v49 = vrot.slane %v1546_v50, 1  ;;  %v1774_v61 = vrot.slane %v1547_v40, 1  ;;  %v2027_v54 = vmul.f32 %v4311_v31, %v4597_v55 }
  0xa7   :  { %4111 = vmatmul.msk.bf16.gmra.mxu0 %vm15_vm0, %v3741_v53  ;;  %v1464_v63 = vadd.f32 %v1400_v39, %v1335_v56  ;;  %v2028_v5 = vmul.f32 %v4311_v31, %v4608_v62  ;;  %v2252_v11 = vrot.slane %v2026_v59, 2  ;;  %v2490_v2 = vmul.f32 %v4319_v36, %v4896_v33 }
  0xa8   :  { %v1773_v47 = vsel %vm593_vm4, %v1771_v57, %v1772_v49  ;;  %v1775_v38 = vsel %vm593_vm4, %v1772_v49, %v1774_v61  ;;  %v2253_v8 = vrot.slane %v2027_v54, 2  ;;  %v2491_v55 = vmul.f32 %v4319_v36, %v4903_v51 }
  0xa9   :  { %v1944_v9 = vadd.f32 %v1773_v47, %v1463_v60  ;;  %v1945_v15 = vadd.f32 %v1775_v38, %v1464_v63  ;;  %v2255_v16 = vrot.slane %v2028_v5, 2  ;;  %v2636_v43 = vmul.f32 %v4321_v37, %v4896_v33 }
  0xaa   :  { %v2254_v62 = vsel %vm1075_vm5, %v2252_v11, %v2253_v8  ;;  %v2637_v18 = vmul.f32 %v4321_v37, %v4903_v51  ;;  %v2638_v44 = vmul.f32 %v4321_v37, %v4910_v4  ;;  %v3117_v19 = vmul.f32 %v4329_v42, %v4896_v33 }
  0xab   :  { %v2256_v32 = vsel %vm1075_vm5, %v2253_v8, %v2255_v16  ;;  %v2425_v20 = vadd.f32 %v2254_v62, %v1944_v9  ;;  %v2862_v25 = vrot.slane %v2636_v43, 1  ;;  %v3118_v26 = vmul.f32 %v4329_v42, %v4903_v51 }
  0xac   :  { %v2426_v28 = vadd.f32 %v2256_v32, %v1945_v15  ;;  %v2863_v27 = vrot.slane %v2637_v18, 1  ;;  %v2865_v35 = vrot.slane %v2638_v44, 1  ;;  %v3119_v39 = vmul.f32 %v4329_v42, %v4910_v4 }
  0xad   :  { %v2554_v30 = vadd.f32 %v2490_v2, %v2425_v20  ;;  %v3343_v41 = vrot.slane %v3117_v19, 2  ;;  %v3344_v48 = vrot.slane %v3118_v26, 2  ;;  %v354_v50 = vmul.f32 %v4282_v10, %v4646_v0 }
  0xae   :  { %v2555_v40 = vadd.f32 %v2491_v55, %v2426_v28  ;;  %v2864_v53 = vsel %vm593_vm4, %v2862_v25, %v2863_v27  ;;  %v2866_v56 = vsel %vm593_vm4, %v2863_v27, %v2865_v35  ;;  %v3346_v57 = vrot.slane %v3119_v39, 2 }
  0xaf   :  { %v3035_v59 = vadd.f32 %v2864_v53, %v2554_v30  ;;  %v3345_v60 = vsel %vm1075_vm5, %v3343_v41, %v3344_v48  ;;  %v355_v49 = vmul.f32 %v4282_v10, %v4651_v12  ;;  %v428_v61 = vmul.f32 %v4270_v6, %v4646_v0  ;;  %v102_v30 = vld [vmem:[%s6859_s0 + $0x30] sm:$0xff]  ;;  %v103_v41 = vld [vmem:[%s6859_s0 + $0x38] sm:$0xff] }
  0xb0   :  { %v3036_v54 = vadd.f32 %v2866_v56, %v2555_v40  ;;  %v3347_v63 = vsel %vm1075_vm5, %v3344_v48, %v3346_v57  ;;  %v429_v5 = vmul.f32 %v4270_v6, %v4651_v12  ;;  %v430_v11 = vmul.f32 %v4270_v6, %v4657_v21  ;;  %v4970_v48 = vld [vmem:[#allocation2 + $0x108] sm:$0xff]  ;;  %166 = vst.msk [vmem:[#allocation2 + $0x61] sm:$0xff] %vm15_vm0, %v102_v30 }
  0xb1   :  { %v3516_v2 = vadd.f32 %v3345_v60, %v3035_v59  ;;  %v639_v47 = vrot.slane %v428_v61, 1  ;;  %v910_v38 = vmul.f32 %v4272_v7, %v4646_v0  ;;  %v911_v8 = vmul.f32 %v4272_v7, %v4651_v12  ;;  %v4977_v59 = vld [vmem:[#allocation2 + $0x110] sm:$0xff]  ;;  %167 = vst.msk [vmem:[#allocation2 + $0x69] sm:$0xff] %vm15_vm0, %v103_v41 }
  0xb2   :  { %v3517_v55 = vadd.f32 %v3347_v63, %v3036_v54  ;;  %v640_v9 = vrot.slane %v429_v5, 1  ;;  %v642_v15 = vrot.slane %v430_v11, 1  ;;  %v912_v16 = vmul.f32 %v4272_v7, %v4657_v21 }
  0xb3   :  { %v3580_v43 = vpack.c.bf16 %v3516_v2, %v3516_v2  ;;  %v1121_v62 = vrot.slane %v910_v38, 2  ;;  %v1122_v18 = vrot.slane %v911_v8, 2  ;;  %v1383_v44 = vmul.f32 %v4296_v17, %v4671_v45  ;;  %v4985_v2 = vld [vmem:[#allocation2 + $0x118] sm:$0x3] }
  0xb4   :  { %v3581_v19 = vpack.c.bf16 %v3517_v55, %v3517_v55  ;;  %v641_v32 = vsel %vm593_vm4, %v639_v47, %v640_v9  ;;  %v643_v0 = vsel %vm593_vm4, %v640_v9, %v642_v15  ;;  %v1124_v20 = vrot.slane %v912_v16, 2  ;;  %v135_v55 = vld [vmem:[%s6859_s0 + $0x138] sm:$0xff] }
  0xb5   :  { %v3710_v25 = vunpack.c.l.b16 %v3580_v43  ;;  %v836_v12 = vadd.f32 %v641_v32, %v354_v50  ;;  %v837_v26 = vadd.f32 %v643_v0, %v355_v49  ;;  %v1123_v28 = vsel %vm1075_vm5, %v1121_v62, %v1122_v18  ;;  %199 = vst.msk [vmem:[#allocation2 + $0x219] sm:$0xff] %vm15_vm0, %v135_v55 }
  0xb6   :  { %v3711_v27 = vunpack.c.l.b16 %v3581_v19  ;;  %v1125_v21 = vsel %vm1075_vm5, %v1122_v18, %v1124_v20  ;;  %v1384_v35 = vmul.f32 %v4296_v17, %v4673_v46  ;;  %v1521_v39 = vmul.f32 %v4302_v22, %v4671_v45 }
  0xb7   :  { %v1318_v50 = vadd.f32 %v1123_v28, %v836_v12  ;;  %v1319_v40 = vadd.f32 %v1125_v21, %v837_v26  ;;  %v1522_v53 = vmul.f32 %v4302_v22, %v4673_v46  ;;  %v1523_v56 = vmul.f32 %v4302_v22, %v4689_v3 }
  0xb8   :  { %v3757_v57 = vpack.c.b16 %v3711_v27, %v3710_v25  ;;  %v1731_v60 = vrot.slane %v1521_v39, 1  ;;  %v2002_v49 = vmul.f32 %v4311_v31, %v4671_v45  ;;  %v2003_v61 = vmul.f32 %v4311_v31, %v4673_v46  ;;  %v134_v46 = vld [vmem:[%s6859_s0 + $0x130] sm:$0xff] }
  0xb9   :  { %v1447_v54 = vadd.f32 %v1383_v44, %v1318_v50  ;;  %v1448_v63 = vadd.f32 %v1384_v35, %v1319_v40  ;;  %v1732_v5 = vrot.slane %v1522_v53, 1  ;;  %v1734_v11 = vrot.slane %v1523_v56, 1  ;;  %198 = vst.msk [vmem:[#allocation2 + $0x211] sm:$0xff] %vm15_vm0, %v134_v46 }
  0xba   :  { %4127 = vmatmul.msk.bf16.gmra.mxu2 %vm15_vm0, %v3757_v57  ;;  %v2004_v47 = vmul.f32 %v4311_v31, %v4689_v3  ;;  %v2212_v38 = vrot.slane %v2002_v49, 2  ;;  %v2213_v8 = vrot.slane %v2003_v61, 2  ;;  %v2474_v45 = vmul.f32 %v4319_v36, %v4970_v48 }
  0xbb   :  { %v1733_v9 = vsel %vm593_vm4, %v1731_v60, %v1732_v5  ;;  %v1735_v15 = vsel %vm593_vm4, %v1732_v5, %v1734_v11  ;;  %v2475_v3 = vmul.f32 %v4319_v36, %v4977_v59  ;;  %v2612_v16 = vmul.f32 %v4321_v37, %v4970_v48 }
  0xbc   :  { %v1928_v43 = vadd.f32 %v1733_v9, %v1447_v54  ;;  %v1929_v62 = vadd.f32 %v1735_v15, %v1448_v63  ;;  %v2214_v18 = vsel %vm1075_vm5, %v2212_v38, %v2213_v8  ;;  %v2215_v44 = vrot.slane %v2004_v47, 2 }
  0xbd   :  { %v2613_v19 = vmul.f32 %v4321_v37, %v4977_v59  ;;  %v2614_v32 = vmul.f32 %v4321_v37, %v4985_v2  ;;  %v2822_v0 = vrot.slane %v2612_v16, 1  ;;  %v3093_v20 = vmul.f32 %v4329_v42, %v4970_v48 }
  0xbe   :  { %v2216_v25 = vsel %vm1075_vm5, %v2213_v8, %v2215_v44  ;;  %v2409_v12 = vadd.f32 %v2214_v18, %v1928_v43  ;;  %v3094_v26 = vmul.f32 %v4329_v42, %v4977_v59  ;;  %v3095_v28 = vmul.f32 %v4329_v42, %v4985_v2 }
  0xbf   :  { %v2410_v27 = vadd.f32 %v2216_v25, %v1929_v62  ;;  %v2823_v21 = vrot.slane %v2613_v19, 1  ;;  %v2825_v35 = vrot.slane %v2614_v32, 1  ;;  %v3303_v39 = vrot.slane %v3093_v20, 2 }
  0xc0   :  { %v2538_v30 = vadd.f32 %v2474_v45, %v2409_v12  ;;  %v3304_v41 = vrot.slane %v3094_v26, 2  ;;  %v3306_v50 = vrot.slane %v3095_v28, 2  ;;  %v386_v40 = vmul.f32 %v4282_v10, %v4727_v14 }
  0xc1   :  { %v2539_v53 = vadd.f32 %v2475_v3, %v2410_v27  ;;  %v2824_v56 = vsel %vm593_vm4, %v2822_v0, %v2823_v21  ;;  %v2826_v57 = vsel %vm593_vm4, %v2823_v21, %v2825_v35  ;;  %v387_v60 = vmul.f32 %v4282_v10, %v4731_v23  ;;  %v5049_v21 = vld [vmem:[#allocation2 + $0x2b8] sm:$0xff] }
  0xc2   :  { %v3019_v49 = vadd.f32 %v2824_v56, %v2538_v30  ;;  %v3305_v61 = vsel %vm1075_vm5, %v3303_v39, %v3304_v41  ;;  %v3307_v54 = vsel %vm1075_vm5, %v3304_v41, %v3306_v50  ;;  %v476_v63 = vmul.f32 %v4270_v6, %v4727_v14 }
  0xc3   :  { %v3020_v5 = vadd.f32 %v2826_v57, %v2539_v53  ;;  %v477_v11 = vmul.f32 %v4270_v6, %v4731_v23  ;;  %v478_v47 = vmul.f32 %v4270_v6, %v4738_v34  ;;  %v958_v38 = vmul.f32 %v4272_v7, %v4727_v14 }
  0xc4   :  { %v3500_v8 = vadd.f32 %v3305_v61, %v3019_v49  ;;  %v719_v45 = vrot.slane %v476_v63, 1  ;;  %v959_v46 = vmul.f32 %v4272_v7, %v4731_v23  ;;  %v960_v55 = vmul.f32 %v4272_v7, %v4738_v34  ;;  %v5062_v63 = vld [vmem:[#allocation2 + $0x2c8] sm:$0x3] }
  0xc5   :  { %v3501_v9 = vadd.f32 %v3307_v54, %v3020_v5  ;;  %v720_v15 = vrot.slane %v477_v11, 1  ;;  %v722_v3 = vrot.slane %v478_v47, 1  ;;  %v1201_v16 = vrot.slane %v958_v38, 2 }
  0xc6   :  { %v3564_v43 = vpack.c.bf16 %v3500_v8, %v3500_v8  ;;  %v1202_v62 = vrot.slane %v959_v46, 2  ;;  %v1204_v18 = vrot.slane %v960_v55, 2  ;;  %v1415_v44 = vmul.f32 %v4296_v17, %v4749_v58  ;;  %v119_v46 = vld [vmem:[%s6859_s0 + $0xb8] sm:$0xff] }
  0xc7   :  { %v3565_v19 = vpack.c.bf16 %v3501_v9, %v3501_v9  ;;  %v721_v14 = vsel %vm593_vm4, %v719_v45, %v720_v15  ;;  %v723_v32 = vsel %vm593_vm4, %v720_v15, %v722_v3  ;;  %v1416_v23 = vmul.f32 %v4296_v17, %v4753_v13  ;;  %183 = vst.msk [vmem:[#allocation2 + $0x129] sm:$0xff] %vm15_vm0, %v119_v46 }
  0xc8   :  { %v3694_v0 = vunpack.c.l.b16 %v3564_v43  ;;  %v868_v34 = vadd.f32 %v721_v14, %v386_v40  ;;  %v869_v20 = vadd.f32 %v723_v32, %v387_v60  ;;  %v1203_v25 = vsel %vm1075_vm5, %v1201_v16, %v1202_v62  ;;  %v5055_v40 = vld [vmem:[#allocation2 + $0x2c0] sm:$0xff] }
  0xc9   :  { %v3695_v12 = vunpack.c.l.b16 %v3565_v19  ;;  %v1205_v26 = vsel %vm1075_vm5, %v1202_v62, %v1204_v18  ;;  %v1569_v28 = vmul.f32 %v4302_v22, %v4749_v58  ;;  %v1570_v27 = vmul.f32 %v4302_v22, %v4753_v13 }
  0xca   :  { %v1350_v35 = vadd.f32 %v1203_v25, %v868_v34  ;;  %v1351_v39 = vadd.f32 %v1205_v26, %v869_v20  ;;  %v1571_v30 = vmul.f32 %v4302_v22, %v4762_v24  ;;  %v2050_v41 = vmul.f32 %v4311_v31, %v4749_v58 }
  0xcb   :  { %v3749_v50 = vpack.c.b16 %v3695_v12, %v3694_v0  ;;  %v1811_v53 = vrot.slane %v1569_v28, 1  ;;  %v1812_v56 = vrot.slane %v1570_v27, 1  ;;  %v2051_v57 = vmul.f32 %v4311_v31, %v4753_v13  ;;  %v4146_v28 = vld [vmem:[#allocation2 + $0x30] sm:$0xff] }
  0xcc   :  { %v1479_v60 = vadd.f32 %v1415_v44, %v1350_v35  ;;  %v1480_v49 = vadd.f32 %v1416_v23, %v1351_v39  ;;  %v1814_v61 = vrot.slane %v1571_v30, 1  ;;  %v2052_v54 = vmul.f32 %v4311_v31, %v4762_v24  ;;  %v118_v24 = vld [vmem:[%s6859_s0 + $0xb0] sm:$0xff] }
  0xcd   :  { %4119 = vmatmul.msk.bf16.gmra.mxu1 %vm15_vm0, %v3749_v50  ;;  %v1813_v58 = vsel %vm593_vm4, %v1811_v53, %v1812_v56  ;;  %v2292_v5 = vrot.slane %v2050_v41, 2  ;;  %v2293_v11 = vrot.slane %v2051_v57, 2  ;;  %v2506_v47 = vmul.f32 %v4319_v36, %v5049_v21  ;;  %182 = vst.msk [vmem:[#allocation2 + $0x121] sm:$0xff] %vm15_vm0, %v118_v24  ;;  %v4147_v41 = vld [vmem:[#allocation2 + $0x38] sm:$0xff] }
  0xce   :  { %v1815_v38 = vsel %vm593_vm4, %v1812_v56, %v1814_v61  ;;  %v1960_v13 = vadd.f32 %v1813_v58, %v1479_v60  ;;  %v2295_v8 = vrot.slane %v2052_v54, 2  ;;  %v2507_v45 = vmul.f32 %v4319_v36, %v5055_v40  ;;  %v4148_v54 = vld [vmem:[#allocation2 + $0x40] sm:$0x3] }
  0xcf   :  { %v1961_v55 = vadd.f32 %v1815_v38, %v1480_v49  ;;  %v2294_v9 = vsel %vm1075_vm5, %v2292_v5, %v2293_v11  ;;  %v2660_v15 = vmul.f32 %v4321_v37, %v5049_v21  ;;  %v2661_v3 = vmul.f32 %v4321_v37, %v5055_v40 }
  0xd0   :  { %v2296_v16 = vsel %vm1075_vm5, %v2293_v11, %v2295_v8  ;;  %v2441_v43 = vadd.f32 %v2294_v9, %v1960_v13  ;;  %v2662_v62 = vmul.f32 %v4321_v37, %v5062_v63  ;;  %v3141_v18 = vmul.f32 %v4329_v42, %v5049_v21 }
  0xd1   :  { %v2442_v44 = vadd.f32 %v2296_v16, %v1961_v55  ;;  %v2902_v19 = vrot.slane %v2660_v15, 1  ;;  %v2903_v14 = vrot.slane %v2661_v3, 1  ;;  %v3142_v32 = vmul.f32 %v4329_v42, %v5055_v40 }
  0xd2   :  { %v2570_v23 = vadd.f32 %v2506_v47, %v2441_v43  ;;  %v2905_v0 = vrot.slane %v2662_v62, 1  ;;  %v3143_v34 = vmul.f32 %v4329_v42, %v5062_v63  ;;  %v3383_v20 = vrot.slane %v3141_v18, 2 }
  0xd3   :  { %v2571_v25 = vadd.f32 %v2507_v45, %v2442_v44  ;;  %v2904_v12 = vsel %vm593_vm4, %v2902_v19, %v2903_v14  ;;  %v3384_v26 = vrot.slane %v3142_v32, 2  ;;  %v340_v27 = vmul.f32 %v4146_v28, %v4282_v10 }
  0xd4   :  { %v2906_v35 = vsel %vm593_vm4, %v2903_v14, %v2905_v0  ;;  %v3051_v39 = vadd.f32 %v2904_v12, %v2570_v23  ;;  %v3386_v30 = vrot.slane %v3143_v34, 2  ;;  %v341_v50 = vmul.f32 %v4147_v41, %v4282_v10  ;;  %v5116_v12 = vld [vmem:[#allocation2 + $0x60] sm:$0xff] }
  0xd5   :  { %v3052_v53 = vadd.f32 %v2906_v35, %v2571_v25  ;;  %v3385_v56 = vsel %vm1075_vm5, %v3383_v20, %v3384_v26  ;;  %v407_v57 = vmul.f32 %v4146_v28, %v4270_v6  ;;  %v408_v60 = vmul.f32 %v4147_v41, %v4270_v6 }
  0xd6   :  { %v3387_v49 = vsel %vm1075_vm5, %v3384_v26, %v3386_v30  ;;  %v3532_v61 = vadd.f32 %v3385_v56, %v3051_v39  ;;  %v409_v58 = vmul.f32 %v4148_v54, %v4270_v6  ;;  %v889_v5 = vmul.f32 %v4146_v28, %v4272_v7  ;;  %v5118_v26 = vld [vmem:[#allocation2 + $0x68] sm:$0xff] }
  0xd7   :  { %v3533_v11 = vadd.f32 %v3387_v49, %v3052_v53  ;;  %v604_v47 = vrot.slane %v407_v57, 1  ;;  %v605_v38 = vrot.slane %v408_v60, 1  ;;  %v890_v13 = vmul.f32 %v4147_v41, %v4272_v7  ;;  %v5127_v53 = vld [vmem:[#allocation2 + $0x70] sm:$0x3] }
  0xd8   :  { %v3596_v8 = vpack.c.bf16 %v3532_v61, %v3532_v61  ;;  %v607_v45 = vrot.slane %v409_v58, 1  ;;  %v891_v24 = vmul.f32 %v4148_v54, %v4272_v7  ;;  %v1086_v46 = vrot.slane %v889_v5, 2  ;;  %v151_v5 = vld [vmem:[%s6859_s0 + $0x1b8] sm:$0xff] }
  0xd9   :  { %v3597_v55 = vpack.c.bf16 %v3533_v11, %v3533_v11  ;;  %v606_v9 = vsel %vm593_vm4, %v604_v47, %v605_v38  ;;  %v1087_v15 = vrot.slane %v890_v13, 2  ;;  %v1369_v3 = vmul.f32 %v4296_v17, %v4824_v29  ;;  %215 = vst.msk [vmem:[#allocation2 + $0x2d9] sm:$0xff] %vm15_vm0, %v151_v5 }
  0xda   :  { %v3726_v16 = vunpack.c.l.b16 %v3596_v8  ;;  %v608_v43 = vsel %vm593_vm4, %v605_v38, %v607_v45  ;;  %v822_v62 = vadd.f32 %v606_v9, %v340_v27  ;;  %v1089_v18 = vrot.slane %v891_v24, 2 }
  0xdb   :  { %v3727_v44 = vunpack.c.l.b16 %v3597_v55  ;;  %v823_v19 = vadd.f32 %v608_v43, %v341_v50  ;;  %v1088_v14 = vsel %vm1075_vm5, %v1086_v46, %v1087_v15  ;;  %v1370_v32 = vmul.f32 %v4296_v17, %v4826_v1 }
  0xdc   :  { %v1090_v23 = vsel %vm1075_vm5, %v1087_v15, %v1089_v18  ;;  %v1304_v0 = vadd.f32 %v1088_v14, %v822_v62  ;;  %v1500_v34 = vmul.f32 %v4302_v22, %v4824_v29  ;;  %v1501_v20 = vmul.f32 %v4302_v22, %v4826_v1  ;;  %v4149_v14 = vld [vmem:[#allocation2 + $0x1e0] sm:$0xff] }
  0xdd   :  { %v3765_v25 = vpack.c.b16 %v3727_v44, %v3726_v16  ;;  %v1305_v28 = vadd.f32 %v1090_v23, %v823_v19  ;;  %v1502_v27 = vmul.f32 %v4302_v22, %v4835_v52  ;;  %v1981_v35 = vmul.f32 %v4311_v31, %v4824_v29 }
  0xde   :  { %v1433_v39 = vadd.f32 %v1369_v3, %v1304_v0  ;;  %v1696_v30 = vrot.slane %v1500_v34, 1  ;;  %v1697_v41 = vrot.slane %v1501_v20, 1  ;;  %v1982_v50 = vmul.f32 %v4311_v31, %v4826_v1  ;;  %v150_v1 = vld [vmem:[%s6859_s0 + $0x1b0] sm:$0xff] }
  0xdf   :  { %4135 = vmatmul.msk.bf16.gmra.mxu3 %vm15_vm0, %v3765_v25  ;;  %v1434_v56 = vadd.f32 %v1370_v32, %v1305_v28  ;;  %v1699_v57 = vrot.slane %v1502_v27, 1  ;;  %v1983_v60 = vmul.f32 %v4311_v31, %v4835_v52  ;;  %v2177_v49 = vrot.slane %v1981_v35, 2  ;;  %214 = vst.msk [vmem:[#allocation2 + $0x2d1] sm:$0xff] %vm15_vm0, %v150_v1  ;;  %v4150_v27 = vld [vmem:[#allocation2 + $0x1e8] sm:$0xff] }
  0xe0   :  { %v1698_v61 = vsel %vm593_vm4, %v1696_v30, %v1697_v41  ;;  %v2178_v54 = vrot.slane %v1982_v50, 2  ;;  %v2460_v29 = vmul.f32 %v4319_v36, %v5116_v12  ;;  %v2461_v58 = vmul.f32 %v4319_v36, %v5118_v26 }
  0xe1   :  { %v1700_v52 = vsel %vm593_vm4, %v1697_v41, %v1699_v57  ;;  %v1914_v11 = vadd.f32 %v1698_v61, %v1433_v39  ;;  %v2180_v47 = vrot.slane %v1983_v60, 2  ;;  %v2591_v38 = vmul.f32 %v4321_v37, %v5116_v12 }
  0xe2   :  { %v1915_v13 = vadd.f32 %v1700_v52, %v1434_v56  ;;  %v2179_v8 = vsel %vm1075_vm5, %v2177_v49, %v2178_v54  ;;  %v2592_v45 = vmul.f32 %v4321_v37, %v5118_v26  ;;  %v2593_v24 = vmul.f32 %v4321_v37, %v5127_v53  ;;  %v4151_v56 = vld [vmem:[#allocation2 + $0x1f0] sm:$0x3] }
  0xe3   :  { %v2181_v46 = vsel %vm1075_vm5, %v2178_v54, %v2180_v47  ;;  %v2395_v55 = vadd.f32 %v2179_v8, %v1914_v11  ;;  %v2787_v9 = vrot.slane %v2591_v38, 1  ;;  %v3072_v15 = vmul.f32 %v4329_v42, %v5116_v12 }
  0xe4   :  { %v2396_v3 = vadd.f32 %v2181_v46, %v1915_v13  ;;  %v2788_v16 = vrot.slane %v2592_v45, 1  ;;  %v2790_v43 = vrot.slane %v2593_v24, 1  ;;  %v3073_v62 = vmul.f32 %v4329_v42, %v5118_v26 }
  0xe5   :  { %v2524_v18 = vadd.f32 %v2460_v29, %v2395_v55  ;;  %v3074_v44 = vmul.f32 %v4329_v42, %v5127_v53  ;;  %v3268_v19 = vrot.slane %v3072_v15, 2  ;;  %v372_v32 = vmul.f32 %v4149_v14, %v4282_v10 }
  0xe6   :  { %v2525_v23 = vadd.f32 %v2461_v58, %v2396_v3  ;;  %v2789_v0 = vsel %vm593_vm4, %v2787_v9, %v2788_v16  ;;  %v2791_v34 = vsel %vm593_vm4, %v2788_v16, %v2790_v43  ;;  %v3269_v20 = vrot.slane %v3073_v62, 2 }
  0xe7   :  { %v3005_v25 = vadd.f32 %v2789_v0, %v2524_v18  ;;  %v3271_v28 = vrot.slane %v3074_v44, 2  ;;  %v373_v35 = vmul.f32 %v4150_v27, %v4282_v10  ;;  %v455_v39 = vmul.f32 %v4149_v14, %v4270_v6  ;;  %v5180_v18 = vld [vmem:[#allocation2 + $0x210] sm:$0xff]  ;;  %v5187_v0 = vld [vmem:[#allocation2 + $0x218] sm:$0xff] }
  0xe8   :  { %v3006_v30 = vadd.f32 %v2791_v34, %v2525_v23  ;;  %v3270_v41 = vsel %vm1075_vm5, %v3268_v19, %v3269_v20  ;;  %v456_v50 = vmul.f32 %v4150_v27, %v4270_v6  ;;  %v457_v57 = vmul.f32 %v4151_v56, %v4270_v6 }
  0xe9   :  { %v3272_v60 = vsel %vm1075_vm5, %v3269_v20, %v3271_v28  ;;  %v3486_v49 = vadd.f32 %v3270_v41, %v3005_v25  ;;  %v684_v61 = vrot.slane %v455_v39, 1  ;;  %v937_v54 = vmul.f32 %v4149_v14, %v4272_v7 }
  0xea   :  { %v3487_v29 = vadd.f32 %v3272_v60, %v3006_v30  ;;  %v685_v58 = vrot.slane %v456_v50, 1  ;;  %v687_v1 = vrot.slane %v457_v57, 1  ;;  %v938_v5 = vmul.f32 %v4150_v27, %v4272_v7  ;;  %v5194_v30 = vld [vmem:[#allocation2 + $0x220] sm:$0x3] }
  0xeb   :  { %v3550_v52 = vpack.c.bf16 %v3486_v49, %v3486_v49  ;;  %v939_v11 = vmul.f32 %v4151_v56, %v4272_v7  ;;  %v1166_v47 = vrot.slane %v937_v54, 2  ;;  %v1401_v38 = vmul.f32 %v4296_v17, %v4896_v33 }
  0xec   :  { %v3551_v13 = vpack.c.bf16 %v3487_v29, %v3487_v29  ;;  %v686_v8 = vsel %vm593_vm4, %v684_v61, %v685_v58  ;;  %v688_v45 = vsel %vm593_vm4, %v685_v58, %v687_v1  ;;  %v1167_v24 = vrot.slane %v938_v5, 2 }
  0xed   :  { %v3680_v46 = vunpack.c.l.b16 %v3550_v52  ;;  %v854_v55 = vadd.f32 %v686_v8, %v372_v32  ;;  %v855_v9 = vadd.f32 %v688_v45, %v373_v35  ;;  %v1169_v15 = vrot.slane %v939_v11, 2 }
  0xee   :  { %v3681_v3 = vunpack.c.l.b16 %v3551_v13  ;;  %v1168_v16 = vsel %vm1075_vm5, %v1166_v47, %v1167_v24  ;;  %v1402_v43 = vmul.f32 %v4296_v17, %v4903_v51  ;;  %v1548_v62 = vmul.f32 %v4302_v22, %v4896_v33 }
  0xef   :  { %v1170_v44 = vsel %vm1075_vm5, %v1167_v24, %v1169_v15  ;;  %v1336_v19 = vadd.f32 %v1168_v16, %v854_v55  ;;  %v1549_v14 = vmul.f32 %v4302_v22, %v4903_v51  ;;  %v1550_v32 = vmul.f32 %v4302_v22, %v4910_v4 }
  0xf0   :  { %v3742_v23 = vpack.c.b16 %v3681_v3, %v3680_v46  ;;  %v1337_v34 = vadd.f32 %v1170_v44, %v855_v9  ;;  %v1776_v20 = vrot.slane %v1548_v62, 1  ;;  %v2029_v25 = vmul.f32 %v4311_v31, %v4896_v33  ;;  %v4152_v3 = vld [vmem:[#allocation2 + $0xf0] sm:$0xff] }
  0xf1   :  { %v1465_v28 = vadd.f32 %v1401_v38, %v1336_v19  ;;  %v1777_v27 = vrot.slane %v1549_v14, 1  ;;  %v1779_v35 = vrot.slane %v1550_v32, 1  ;;  %v2030_v39 = vmul.f32 %v4311_v31, %v4903_v51 }
  0xf2   :  { %4112 = vmatmul.msk.bf16.gmra.mxu0 %vm15_vm0, %v3742_v23  ;;  %v1466_v41 = vadd.f32 %v1402_v43, %v1337_v34  ;;  %v2031_v50 = vmul.f32 %v4311_v31, %v4910_v4  ;;  %v2257_v56 = vrot.slane %v2029_v25, 2  ;;  %v2492_v57 = vmul.f32 %v4319_v36, %v5180_v18  ;;  %v4153_v23 = vld [vmem:[#allocation2 + $0xf8] sm:$0xff] }
  0xf3   :  { %v1778_v33 = vsel %vm593_vm4, %v1776_v20, %v1777_v27  ;;  %v1780_v60 = vsel %vm593_vm4, %v1777_v27, %v1779_v35  ;;  %v2258_v49 = vrot.slane %v2030_v39, 2  ;;  %v2493_v51 = vmul.f32 %v4319_v36, %v5187_v0  ;;  %v4154_v35 = vld [vmem:[#allocation2 + $0x100] sm:$0x3] }
  0xf4   :  { %v1946_v61 = vadd.f32 %v1778_v33, %v1465_v28  ;;  %v1947_v54 = vadd.f32 %v1780_v60, %v1466_v41  ;;  %v2260_v29 = vrot.slane %v2031_v50, 2  ;;  %v2639_v58 = vmul.f32 %v4321_v37, %v5180_v18 }
  0xf5   :  { %v2259_v4 = vsel %vm1075_vm5, %v2257_v56, %v2258_v49  ;;  %v2640_v1 = vmul.f32 %v4321_v37, %v5187_v0  ;;  %v2641_v5 = vmul.f32 %v4321_v37, %v5194_v30  ;;  %v3120_v52 = vmul.f32 %v4329_v42, %v5180_v18 }
  0xf6   :  { %v2261_v11 = vsel %vm1075_vm5, %v2258_v49, %v2260_v29  ;;  %v2427_v47 = vadd.f32 %v2259_v4, %v1946_v61  ;;  %v2867_v38 = vrot.slane %v2639_v58, 1  ;;  %v3121_v13 = vmul.f32 %v4329_v42, %v5187_v0 }
  0xf7   :  { %v2428_v8 = vadd.f32 %v2261_v11, %v1947_v54  ;;  %v2868_v45 = vrot.slane %v2640_v1, 1  ;;  %v2870_v24 = vrot.slane %v2641_v5, 1  ;;  %v3122_v46 = vmul.f32 %v4329_v42, %v5194_v30 }
  0xf8   :  { %v2556_v55 = vadd.f32 %v2492_v57, %v2427_v47  ;;  %v3348_v9 = vrot.slane %v3120_v52, 2  ;;  %v3349_v15 = vrot.slane %v3121_v13, 2  ;;  %v356_v16 = vmul.f32 %v4152_v3, %v4282_v10 }
  0xf9   :  { %v2557_v43 = vadd.f32 %v2493_v51, %v2428_v8  ;;  %v2869_v62 = vsel %vm593_vm4, %v2867_v38, %v2868_v45  ;;  %v2871_v44 = vsel %vm593_vm4, %v2868_v45, %v2870_v24  ;;  %v3351_v19 = vrot.slane %v3122_v46, 2 }
  0xfa   :  { %v3037_v14 = vadd.f32 %v2869_v62, %v2556_v55  ;;  %v3350_v32 = vsel %vm1075_vm5, %v3348_v9, %v3349_v15  ;;  %v357_v34 = vmul.f32 %v4153_v23, %v4282_v10  ;;  %v431_v20 = vmul.f32 %v4152_v3, %v4270_v6  ;;  %v104_v55 = vld [vmem:[%s6859_s0 + $0x40] sm:$0xff]  ;;  %v105_v9 = vld [vmem:[%s6859_s0 + $0x48] sm:$0xff] }
  0xfb   :  { %v3038_v25 = vadd.f32 %v2871_v44, %v2557_v43  ;;  %v3352_v28 = vsel %vm1075_vm5, %v3349_v15, %v3351_v19  ;;  %v432_v27 = vmul.f32 %v4153_v23, %v4270_v6  ;;  %v433_v39 = vmul.f32 %v4154_v35, %v4270_v6  ;;  %v5246_v15 = vld [vmem:[#allocation2 + $0x120] sm:$0xff]  ;;  %168 = vst.msk [vmem:[#allocation2 + $0x79] sm:$0xff] %vm15_vm0, %v104_v55  ;;  %v5253_v19 = vld [vmem:[#allocation2 + $0x128] sm:$0xff] }
  0xfc   :  { %v3518_v41 = vadd.f32 %v3350_v32, %v3037_v14  ;;  %v644_v50 = vrot.slane %v431_v20, 1  ;;  %v913_v56 = vmul.f32 %v4152_v3, %v4272_v7  ;;  %v914_v57 = vmul.f32 %v4153_v23, %v4272_v7  ;;  %169 = vst.msk [vmem:[#allocation2 + $0x81] sm:$0xff] %vm15_vm0, %v105_v9  ;;  %v4155_v55 = vld [vmem:[#allocation2 + $0x2a0] sm:$0xff] }
  0xfd   :  { %v3519_v33 = vadd.f32 %v3352_v28, %v3038_v25  ;;  %v645_v60 = vrot.slane %v432_v27, 1  ;;  %v647_v49 = vrot.slane %v433_v39, 1  ;;  %v915_v51 = vmul.f32 %v4154_v35, %v4272_v7  ;;  %v5261_v27 = vld [vmem:[#allocation2 + $0x130] sm:$0x3] }
  0xfe   :  { %v3582_v61 = vpack.c.bf16 %v3518_v41, %v3518_v41  ;;  %v1126_v54 = vrot.slane %v913_v56, 2  ;;  %v1127_v29 = vrot.slane %v914_v57, 2  ;;  %v1385_v58 = vmul.f32 %v4296_v17, %v4970_v48 }
  0xff   :  { %v3583_v4 = vpack.c.bf16 %v3519_v33, %v3519_v33  ;;  %v646_v1 = vsel %vm593_vm4, %v644_v50, %v645_v60  ;;  %v648_v5 = vsel %vm593_vm4, %v645_v60, %v647_v49  ;;  %v1129_v52 = vrot.slane %v915_v51, 2  ;;  %v137_v50 = vld [vmem:[%s6859_s0 + $0x148] sm:$0xff] }
 0x100   :  { %v3712_v11 = vunpack.c.l.b16 %v3582_v61  ;;  %v838_v47 = vadd.f32 %v646_v1, %v356_v16  ;;  %v839_v38 = vadd.f32 %v648_v5, %v357_v34  ;;  %v1128_v13 = vsel %vm1075_vm5, %v1126_v54, %v1127_v29  ;;  %201 = vst.msk [vmem:[#allocation2 + $0x231] sm:$0xff] %vm15_vm0, %v137_v50 }
 0x101   :  { %v3713_v8 = vunpack.c.l.b16 %v3583_v4  ;;  %v1130_v45 = vsel %vm1075_vm5, %v1127_v29, %v1129_v52  ;;  %v1386_v24 = vmul.f32 %v4296_v17, %v4977_v59  ;;  %v1524_v46 = vmul.f32 %v4302_v22, %v4970_v48 }
 0x102   :  { %v1320_v3 = vadd.f32 %v1128_v13, %v838_v47  ;;  %v1321_v16 = vadd.f32 %v1130_v45, %v839_v38  ;;  %v1525_v43 = vmul.f32 %v4302_v22, %v4977_v59  ;;  %v1526_v62 = vmul.f32 %v4302_v22, %v4985_v2 }
 0x103   :  { %v3758_v44 = vpack.c.b16 %v3713_v8, %v3712_v11  ;;  %v1736_v14 = vrot.slane %v1524_v46, 1  ;;  %v2005_v32 = vmul.f32 %v4311_v31, %v4970_v48  ;;  %v2006_v23 = vmul.f32 %v4311_v31, %v4977_v59  ;;  %v136_v59 = vld [vmem:[%s6859_s0 + $0x140] sm:$0xff] }
 0x104   :  { %v1449_v34 = vadd.f32 %v1385_v58, %v1320_v3  ;;  %v1450_v20 = vadd.f32 %v1386_v24, %v1321_v16  ;;  %v1737_v25 = vrot.slane %v1525_v43, 1  ;;  %v1739_v28 = vrot.slane %v1526_v62, 1  ;;  %200 = vst.msk [vmem:[#allocation2 + $0x229] sm:$0xff] %vm15_vm0, %v136_v59  ;;  %v4156_v62 = vld [vmem:[#allocation2 + $0x2a8] sm:$0xff] }
 0x105   :  { %4128 = vmatmul.msk.bf16.gmra.mxu2 %vm15_vm0, %v3758_v44  ;;  %v2007_v35 = vmul.f32 %v4311_v31, %v4985_v2  ;;  %v2217_v39 = vrot.slane %v2005_v32, 2  ;;  %v2218_v41 = vrot.slane %v2006_v23, 2  ;;  %v2476_v48 = vmul.f32 %v4319_v36, %v5246_v15 }
 0x106   :  { %v1738_v56 = vsel %vm593_vm4, %v1736_v14, %v1737_v25  ;;  %v1740_v57 = vsel %vm593_vm4, %v1737_v25, %v1739_v28  ;;  %v2477_v2 = vmul.f32 %v4319_v36, %v5253_v19  ;;  %v2615_v33 = vmul.f32 %v4321_v37, %v5246_v15  ;;  %v4157_v28 = vld [vmem:[#allocation2 + $0x2b0] sm:$0x3] }
 0x107   :  { %v1930_v60 = vadd.f32 %v1738_v56, %v1449_v34  ;;  %v1931_v49 = vadd.f32 %v1740_v57, %v1450_v20  ;;  %v2219_v51 = vsel %vm1075_vm5, %v2217_v39, %v2218_v41  ;;  %v2220_v61 = vrot.slane %v2007_v35, 2 }
 0x108   :  { %v2616_v54 = vmul.f32 %v4321_v37, %v5253_v19  ;;  %v2617_v29 = vmul.f32 %v4321_v37, %v5261_v27  ;;  %v2827_v58 = vrot.slane %v2615_v33, 1  ;;  %v3096_v4 = vmul.f32 %v4329_v42, %v5246_v15 }
 0x109   :  { %v2221_v1 = vsel %vm1075_vm5, %v2218_v41, %v2220_v61  ;;  %v2411_v5 = vadd.f32 %v2219_v51, %v1930_v60  ;;  %v3097_v52 = vmul.f32 %v4329_v42, %v5253_v19  ;;  %v3098_v11 = vmul.f32 %v4329_v42, %v5261_v27 }
 0x10a   :  { %v2412_v47 = vadd.f32 %v2221_v1, %v1931_v49  ;;  %v2828_v38 = vrot.slane %v2616_v54, 1  ;;  %v2830_v13 = vrot.slane %v2617_v29, 1  ;;  %v3308_v8 = vrot.slane %v3096_v4, 2 }
 0x10b   :  { %v2540_v45 = vadd.f32 %v2476_v48, %v2411_v5  ;;  %v3309_v24 = vrot.slane %v3097_v52, 2  ;;  %v3311_v46 = vrot.slane %v3098_v11, 2  ;;  %v388_v9 = vmul.f32 %v4155_v55, %v4282_v10 }
 0x10c   :  { %v2541_v3 = vadd.f32 %v2477_v2, %v2412_v47  ;;  %v2829_v16 = vsel %vm593_vm4, %v2827_v58, %v2828_v38  ;;  %v2831_v43 = vsel %vm593_vm4, %v2828_v38, %v2830_v13  ;;  %v389_v44 = vmul.f32 %v4156_v62, %v4282_v10 }
 0x10d   :  { %v3021_v14 = vadd.f32 %v2829_v16, %v2540_v45  ;;  %v3310_v32 = vsel %vm1075_vm5, %v3308_v8, %v3309_v24  ;;  %v3312_v23 = vsel %vm1075_vm5, %v3309_v24, %v3311_v46  ;;  %v479_v34 = vmul.f32 %v4155_v55, %v4270_v6  ;;  %v5317_v45 = vld [vmem:[#allocation2 + $0x2d0] sm:$0xff]  ;;  %v5323_v16 = vld [vmem:[#allocation2 + $0x2d8] sm:$0xff] }
 0x10e   :  { %v3022_v20 = vadd.f32 %v2831_v43, %v2541_v3  ;;  %v480_v25 = vmul.f32 %v4156_v62, %v4270_v6  ;;  %v481_v35 = vmul.f32 %v4157_v28, %v4270_v6  ;;  %v961_v39 = vmul.f32 %v4155_v55, %v4272_v7 }
 0x10f   :  { %v3502_v41 = vadd.f32 %v3310_v32, %v3021_v14  ;;  %v724_v48 = vrot.slane %v479_v34, 1  ;;  %v962_v59 = vmul.f32 %v4156_v62, %v4272_v7  ;;  %v963_v50 = vmul.f32 %v4157_v28, %v4272_v7 }
 0x110   :  { %v3503_v56 = vadd.f32 %v3312_v23, %v3022_v20  ;;  %v725_v57 = vrot.slane %v480_v25, 1  ;;  %v727_v2 = vrot.slane %v481_v35, 1  ;;  %v1206_v33 = vrot.slane %v961_v39, 2  ;;  %v5330_v20 = vld [vmem:[#allocation2 + $0x2e0] sm:$0x3] }
 0x111   :  { %v3566_v60 = vpack.c.bf16 %v3502_v41, %v3502_v41  ;;  %v1207_v49 = vrot.slane %v962_v59, 2  ;;  %v1209_v51 = vrot.slane %v963_v50, 2  ;;  %v1417_v61 = vmul.f32 %v4296_v17, %v5049_v21  ;;  %v121_v59 = vld [vmem:[%s6859_s0 + $0xc8] sm:$0xff] }
 0x112   :  { %v3567_v54 = vpack.c.bf16 %v3503_v56, %v3503_v56  ;;  %v726_v29 = vsel %vm593_vm4, %v724_v48, %v725_v57  ;;  %v728_v58 = vsel %vm593_vm4, %v725_v57, %v727_v2  ;;  %v1418_v4 = vmul.f32 %v4296_v17, %v5055_v40  ;;  %185 = vst.msk [vmem:[#allocation2 + $0x141] sm:$0xff] %vm15_vm0, %v121_v59 }
 0x113   :  { %v3696_v1 = vunpack.c.l.b16 %v3566_v60  ;;  %v870_v5 = vadd.f32 %v726_v29, %v388_v9  ;;  %v871_v52 = vadd.f32 %v728_v58, %v389_v44  ;;  %v1208_v11 = vsel %vm1075_vm5, %v1206_v33, %v1207_v49 }
 0x114   :  { %v3697_v47 = vunpack.c.l.b16 %v3567_v54  ;;  %v1210_v38 = vsel %vm1075_vm5, %v1207_v49, %v1209_v51  ;;  %v1572_v13 = vmul.f32 %v4302_v22, %v5049_v21  ;;  %v1573_v8 = vmul.f32 %v4302_v22, %v5055_v40 }
 0x115   :  { %v1352_v24 = vadd.f32 %v1208_v11, %v870_v5  ;;  %v1353_v46 = vadd.f32 %v1210_v38, %v871_v52  ;;  %v1574_v55 = vmul.f32 %v4302_v22, %v5062_v63  ;;  %v2053_v9 = vmul.f32 %v4311_v31, %v5049_v21 }
 0x116   :  { %v3750_v3 = vpack.c.b16 %v3697_v47, %v3696_v1  ;;  %v1816_v43 = vrot.slane %v1572_v13, 1  ;;  %v1817_v62 = vrot.slane %v1573_v8, 1  ;;  %v2054_v44 = vmul.f32 %v4311_v31, %v5055_v40  ;;  %v4158_v13 = vld [vmem:[#allocation2 + $0x48] sm:$0xff] }
 0x117   :  { %v1481_v14 = vadd.f32 %v1417_v61, %v1352_v24  ;;  %v1482_v32 = vadd.f32 %v1418_v4, %v1353_v46  ;;  %v1819_v23 = vrot.slane %v1574_v55, 1  ;;  %v2055_v34 = vmul.f32 %v4311_v31, %v5062_v63  ;;  %v120_v63 = vld [vmem:[%s6859_s0 + $0xc0] sm:$0xff] }
 0x118   :  { %4120 = vmatmul.msk.bf16.gmra.mxu1 %vm15_vm0, %v3750_v3  ;;  %v1818_v21 = vsel %vm593_vm4, %v1816_v43, %v1817_v62  ;;  %v2297_v25 = vrot.slane %v2053_v9, 2  ;;  %v2298_v28 = vrot.slane %v2054_v44, 2  ;;  %v2508_v35 = vmul.f32 %v4319_v36, %v5317_v45  ;;  %184 = vst.msk [vmem:[#allocation2 + $0x139] sm:$0xff] %vm15_vm0, %v120_v63  ;;  %v4159_v9 = vld [vmem:[#allocation2 + $0x50] sm:$0xff] }
 0x119   :  { %v1820_v39 = vsel %vm593_vm4, %v1817_v62, %v1819_v23  ;;  %v1962_v40 = vadd.f32 %v1818_v21, %v1481_v14  ;;  %v2300_v41 = vrot.slane %v2055_v34, 2  ;;  %v2509_v48 = vmul.f32 %v4319_v36, %v5323_v16  ;;  %v4160_v34 = vld [vmem:[#allocation2 + $0x58] sm:$0x3] }
 0x11a   :  { %v1963_v50 = vadd.f32 %v1820_v39, %v1482_v32  ;;  %v2299_v56 = vsel %vm1075_vm5, %v2297_v25, %v2298_v28  ;;  %v2663_v57 = vmul.f32 %v4321_v37, %v5317_v45  ;;  %v2664_v2 = vmul.f32 %v4321_v37, %v5323_v16 }
 0x11b   :  { %v2301_v33 = vsel %vm1075_vm5, %v2298_v28, %v2300_v41  ;;  %v2443_v60 = vadd.f32 %v2299_v56, %v1962_v40  ;;  %v2665_v49 = vmul.f32 %v4321_v37, %v5330_v20  ;;  %v3144_v51 = vmul.f32 %v4329_v42, %v5317_v45 }
 0x11c   :  { %v2444_v61 = vadd.f32 %v2301_v33, %v1963_v50  ;;  %v2907_v54 = vrot.slane %v2663_v57, 1  ;;  %v2908_v29 = vrot.slane %v2664_v2, 1  ;;  %v3145_v58 = vmul.f32 %v4329_v42, %v5323_v16 }
 0x11d   :  { %v2572_v4 = vadd.f32 %v2508_v35, %v2443_v60  ;;  %v2910_v1 = vrot.slane %v2665_v49, 1  ;;  %v3146_v5 = vmul.f32 %v4329_v42, %v5330_v20  ;;  %v3388_v52 = vrot.slane %v3144_v51, 2 }
 0x11e   :  { %v2573_v11 = vadd.f32 %v2509_v48, %v2444_v61  ;;  %v2909_v47 = vsel %vm593_vm4, %v2907_v54, %v2908_v29  ;;  %v3389_v38 = vrot.slane %v3145_v58, 2  ;;  %v342_v8 = vmul.f32 %v4158_v13, %v4282_v10 }
 0x11f   :  { %v2911_v24 = vsel %vm593_vm4, %v2908_v29, %v2910_v1  ;;  %v3053_v46 = vadd.f32 %v2909_v47, %v2572_v4  ;;  %v3391_v55 = vrot.slane %v3146_v5, 2  ;;  %v343_v3 = vmul.f32 %v4159_v9, %v4282_v10  ;;  %v5384_v47 = vld [vmem:[#allocation2 + $0x78] sm:$0xff] }
 0x120   :  { %v3054_v43 = vadd.f32 %v2911_v24, %v2573_v11  ;;  %v3390_v62 = vsel %vm1075_vm5, %v3388_v52, %v3389_v38  ;;  %v410_v44 = vmul.f32 %v4158_v13, %v4270_v6  ;;  %v411_v14 = vmul.f32 %v4159_v9, %v4270_v6 }
 0x121   :  { %v3392_v32 = vsel %vm1075_vm5, %v3389_v38, %v3391_v55  ;;  %v3534_v23 = vadd.f32 %v3390_v62, %v3053_v46  ;;  %v412_v21 = vmul.f32 %v4160_v34, %v4270_v6  ;;  %v892_v25 = vmul.f32 %v4158_v13, %v4272_v7  ;;  %v5386_v38 = vld [vmem:[#allocation2 + $0x80] sm:$0xff] }
 0x122   :  { %v3535_v28 = vadd.f32 %v3392_v32, %v3054_v43  ;;  %v609_v35 = vrot.slane %v410_v44, 1  ;;  %v610_v39 = vrot.slane %v411_v14, 1  ;;  %v893_v40 = vmul.f32 %v4159_v9, %v4272_v7  ;;  %v5395_v43 = vld [vmem:[#allocation2 + $0x88] sm:$0x3] }
 0x123   :  { %v3598_v41 = vpack.c.bf16 %v3534_v23, %v3534_v23  ;;  %v612_v48 = vrot.slane %v412_v21, 1  ;;  %v894_v63 = vmul.f32 %v4160_v34, %v4272_v7  ;;  %v1091_v59 = vrot.slane %v892_v25, 2  ;;  %v153_v25 = vld [vmem:[%s6859_s0 + $0x1c8] sm:$0xff] }
 0x124   :  { %v3599_v50 = vpack.c.bf16 %v3535_v28, %v3535_v28  ;;  %v611_v56 = vsel %vm593_vm4, %v609_v35, %v610_v39  ;;  %v1092_v57 = vrot.slane %v893_v40, 2  ;;  %v1371_v2 = vmul.f32 %v4296_v17, %v5116_v12  ;;  %217 = vst.msk [vmem:[#allocation2 + $0x2f1] sm:$0xff] %vm15_vm0, %v153_v25 }
 0x125   :  { %v3728_v33 = vunpack.c.l.b16 %v3598_v41  ;;  %v613_v60 = vsel %vm593_vm4, %v610_v39, %v612_v48  ;;  %v824_v49 = vadd.f32 %v611_v56, %v342_v8  ;;  %v1094_v51 = vrot.slane %v894_v63, 2 }
 0x126   :  { %v3729_v61 = vunpack.c.l.b16 %v3599_v50  ;;  %v825_v54 = vadd.f32 %v613_v60, %v343_v3  ;;  %v1093_v29 = vsel %vm1075_vm5, %v1091_v59, %v1092_v57  ;;  %v1372_v58 = vmul.f32 %v4296_v17, %v5118_v26 }
 0x127   :  { %v1095_v4 = vsel %vm1075_vm5, %v1092_v57, %v1094_v51  ;;  %v1306_v1 = vadd.f32 %v1093_v29, %v824_v49  ;;  %v1503_v5 = vmul.f32 %v4302_v22, %v5116_v12  ;;  %v1504_v52 = vmul.f32 %v4302_v22, %v5118_v26  ;;  %v4161_v29 = vld [vmem:[#allocation2 + $0x1f8] sm:$0xff] }
 0x128   :  { %v3766_v11 = vpack.c.b16 %v3729_v61, %v3728_v33  ;;  %v1307_v13 = vadd.f32 %v1095_v4, %v825_v54  ;;  %v1505_v8 = vmul.f32 %v4302_v22, %v5127_v53  ;;  %v1984_v24 = vmul.f32 %v4311_v31, %v5116_v12 }
 0x129   :  { %v1435_v46 = vadd.f32 %v1371_v2, %v1306_v1  ;;  %v1701_v55 = vrot.slane %v1503_v5, 1  ;;  %v1702_v9 = vrot.slane %v1504_v52, 1  ;;  %v1985_v3 = vmul.f32 %v4311_v31, %v5118_v26  ;;  %v152_v26 = vld [vmem:[%s6859_s0 + $0x1c0] sm:$0xff] }
 0x12a   :  { %4136 = vmatmul.msk.bf16.gmra.mxu3 %vm15_vm0, %v3766_v11  ;;  %v1436_v62 = vadd.f32 %v1372_v58, %v1307_v13  ;;  %v1704_v44 = vrot.slane %v1505_v8, 1  ;;  %v1986_v14 = vmul.f32 %v4311_v31, %v5127_v53  ;;  %v2182_v32 = vrot.slane %v1984_v24, 2  ;;  %216 = vst.msk [vmem:[#allocation2 + $0x2e9] sm:$0xff] %vm15_vm0, %v152_v26  ;;  %v4162_v8 = vld [vmem:[#allocation2 + $0x200] sm:$0xff] }
 0x12b   :  { %v1703_v23 = vsel %vm593_vm4, %v1701_v55, %v1702_v9  ;;  %v2183_v34 = vrot.slane %v1985_v3, 2  ;;  %v2462_v12 = vmul.f32 %v4319_v36, %v5384_v47  ;;  %v2463_v21 = vmul.f32 %v4319_v36, %v5386_v38 }
 0x12c   :  { %v1705_v53 = vsel %vm593_vm4, %v1702_v9, %v1704_v44  ;;  %v1916_v28 = vadd.f32 %v1703_v23, %v1435_v46  ;;  %v2185_v35 = vrot.slane %v1986_v14, 2  ;;  %v2594_v39 = vmul.f32 %v4321_v37, %v5384_v47 }
 0x12d   :  { %v1917_v40 = vadd.f32 %v1705_v53, %v1436_v62  ;;  %v2184_v41 = vsel %vm1075_vm5, %v2182_v32, %v2183_v34  ;;  %v2595_v48 = vmul.f32 %v4321_v37, %v5386_v38  ;;  %v2596_v63 = vmul.f32 %v4321_v37, %v5395_v43  ;;  %v4163_v62 = vld [vmem:[#allocation2 + $0x208] sm:$0x3] }
 0x12e   :  { %v2186_v59 = vsel %vm1075_vm5, %v2183_v34, %v2185_v35  ;;  %v2397_v50 = vadd.f32 %v2184_v41, %v1916_v28  ;;  %v2792_v56 = vrot.slane %v2594_v39, 1  ;;  %v3075_v57 = vmul.f32 %v4329_v42, %v5384_v47 }
 0x12f   :  { %v2398_v2 = vadd.f32 %v2186_v59, %v1917_v40  ;;  %v2793_v33 = vrot.slane %v2595_v48, 1  ;;  %v2795_v60 = vrot.slane %v2596_v63, 1  ;;  %v3076_v49 = vmul.f32 %v4329_v42, %v5386_v38 }
 0x130   :  { %v2526_v51 = vadd.f32 %v2462_v12, %v2397_v50  ;;  %v3077_v61 = vmul.f32 %v4329_v42, %v5395_v43  ;;  %v3273_v54 = vrot.slane %v3075_v57, 2  ;;  %v374_v58 = vmul.f32 %v4161_v29, %v4282_v10 }
 0x131   :  { %v2527_v4 = vadd.f32 %v2463_v21, %v2398_v2  ;;  %v2794_v1 = vsel %vm593_vm4, %v2792_v56, %v2793_v33  ;;  %v2796_v5 = vsel %vm593_vm4, %v2793_v33, %v2795_v60  ;;  %v3274_v52 = vrot.slane %v3076_v49, 2 }
 0x132   :  { %v3007_v11 = vadd.f32 %v2794_v1, %v2526_v51  ;;  %v3276_v13 = vrot.slane %v3077_v61, 2  ;;  %v375_v24 = vmul.f32 %v4162_v8, %v4282_v10  ;;  %v458_v46 = vmul.f32 %v4161_v29, %v4270_v6  ;;  %v5448_v51 = vld [vmem:[#allocation2 + $0x228] sm:$0xff]  ;;  %v5455_v1 = vld [vmem:[#allocation2 + $0x230] sm:$0xff] }
 0x133   :  { %v3008_v55 = vadd.f32 %v2796_v5, %v2527_v4  ;;  %v3275_v9 = vsel %vm1075_vm5, %v3273_v54, %v3274_v52  ;;  %v459_v3 = vmul.f32 %v4162_v8, %v4270_v6  ;;  %v460_v44 = vmul.f32 %v4163_v62, %v4270_v6 }
 0x134   :  { %v3277_v14 = vsel %vm1075_vm5, %v3274_v52, %v3276_v13  ;;  %v3488_v32 = vadd.f32 %v3275_v9, %v3007_v11  ;;  %v689_v23 = vrot.slane %v458_v46, 1  ;;  %v940_v34 = vmul.f32 %v4161_v29, %v4272_v7 }
 0x135   :  { %v3489_v12 = vadd.f32 %v3277_v14, %v3008_v55  ;;  %v690_v21 = vrot.slane %v459_v3, 1  ;;  %v692_v26 = vrot.slane %v460_v44, 1  ;;  %v941_v25 = vmul.f32 %v4162_v8, %v4272_v7  ;;  %v5462_v55 = vld [vmem:[#allocation2 + $0x238] sm:$0x3] }
 0x136   :  { %v3552_v53 = vpack.c.bf16 %v3488_v32, %v3488_v32  ;;  %v942_v28 = vmul.f32 %v4163_v62, %v4272_v7  ;;  %v1171_v35 = vrot.slane %v940_v34, 2  ;;  %v1403_v39 = vmul.f32 %v4296_v17, %v5180_v18 }
 0x137   :  { %v3553_v40 = vpack.c.bf16 %v3489_v12, %v3489_v12  ;;  %v691_v41 = vsel %vm593_vm4, %v689_v23, %v690_v21  ;;  %v693_v48 = vsel %vm593_vm4, %v690_v21, %v692_v26  ;;  %v1172_v63 = vrot.slane %v941_v25, 2 }
 0x138   :  { %v3682_v59 = vunpack.c.l.b16 %v3552_v53  ;;  %v856_v50 = vadd.f32 %v691_v41, %v374_v58  ;;  %v857_v56 = vadd.f32 %v693_v48, %v375_v24  ;;  %v1174_v57 = vrot.slane %v942_v28, 2 }
 0x139   :  { %v3683_v2 = vunpack.c.l.b16 %v3553_v40  ;;  %v1173_v33 = vsel %vm1075_vm5, %v1171_v35, %v1172_v63  ;;  %v1404_v60 = vmul.f32 %v4296_v17, %v5187_v0  ;;  %v1551_v49 = vmul.f32 %v4302_v22, %v5180_v18 }
 0x13a   :  { %v1175_v61 = vsel %vm1075_vm5, %v1172_v63, %v1174_v57  ;;  %v1338_v54 = vadd.f32 %v1173_v33, %v856_v50  ;;  %v1552_v29 = vmul.f32 %v4302_v22, %v5187_v0  ;;  %v1553_v58 = vmul.f32 %v4302_v22, %v5194_v30 }
 0x13b   :  { %v3743_v4 = vpack.c.b16 %v3683_v2, %v3682_v59  ;;  %v1339_v5 = vadd.f32 %v1175_v61, %v857_v56  ;;  %v1781_v52 = vrot.slane %v1551_v49, 1  ;;  %v2032_v11 = vmul.f32 %v4311_v31, %v5180_v18  ;;  %v4164_v2 = vld [vmem:[#allocation2 + $0x108] sm:$0xff] }
 0x13c   :  { %v1467_v13 = vadd.f32 %v1403_v39, %v1338_v54  ;;  %v1782_v8 = vrot.slane %v1552_v29, 1  ;;  %v1784_v24 = vrot.slane %v1553_v58, 1  ;;  %v2033_v46 = vmul.f32 %v4311_v31, %v5187_v0 }
 0x13d   :  { %4113 = vmatmul.msk.bf16.gmra.mxu0 %vm15_vm0, %v3743_v4  ;;  %v1468_v9 = vadd.f32 %v1404_v60, %v1339_v5  ;;  %v2034_v3 = vmul.f32 %v4311_v31, %v5194_v30  ;;  %v2262_v62 = vrot.slane %v2032_v11, 2  ;;  %v2494_v44 = vmul.f32 %v4319_v36, %v5448_v51  ;;  %v4165_v4 = vld [vmem:[#allocation2 + $0x110] sm:$0xff] }
 0x13e   :  { %v1783_v18 = vsel %vm593_vm4, %v1781_v52, %v1782_v8  ;;  %v1785_v14 = vsel %vm593_vm4, %v1782_v8, %v1784_v24  ;;  %v2263_v32 = vrot.slane %v2033_v46, 2  ;;  %v2495_v0 = vmul.f32 %v4319_v36, %v5455_v1  ;;  %v4166_v24 = vld [vmem:[#allocation2 + $0x118] sm:$0x3] }
 0x13f   :  { %v1948_v23 = vadd.f32 %v1783_v18, %v1467_v13  ;;  %v1949_v34 = vadd.f32 %v1785_v14, %v1468_v9  ;;  %v2265_v12 = vrot.slane %v2034_v3, 2  ;;  %v2642_v21 = vmul.f32 %v4321_v37, %v5448_v51 }
 0x140   :  { %v2264_v30 = vsel %vm1075_vm5, %v2262_v62, %v2263_v32  ;;  %v2643_v26 = vmul.f32 %v4321_v37, %v5455_v1  ;;  %v2644_v25 = vmul.f32 %v4321_v37, %v5462_v55  ;;  %v3123_v53 = vmul.f32 %v4329_v42, %v5448_v51 }
 0x141   :  { %v2266_v28 = vsel %vm1075_vm5, %v2263_v32, %v2265_v12  ;;  %v2429_v35 = vadd.f32 %v2264_v30, %v1948_v23  ;;  %v2872_v39 = vrot.slane %v2642_v21, 1  ;;  %v3124_v40 = vmul.f32 %v4329_v42, %v5455_v1 }
 0x142   :  { %v2430_v41 = vadd.f32 %v2266_v28, %v1949_v34  ;;  %v2873_v48 = vrot.slane %v2643_v26, 1  ;;  %v2875_v63 = vrot.slane %v2644_v25, 1  ;;  %v3125_v59 = vmul.f32 %v4329_v42, %v5462_v55 }
 0x143   :  { %v2558_v50 = vadd.f32 %v2494_v44, %v2429_v35  ;;  %v3353_v56 = vrot.slane %v3123_v53, 2  ;;  %v3354_v57 = vrot.slane %v3124_v40, 2  ;;  %v358_v33 = vmul.f32 %v4164_v2, %v4282_v10 }
 0x144   :  { %v2559_v60 = vadd.f32 %v2495_v0, %v2430_v41  ;;  %v2874_v49 = vsel %vm593_vm4, %v2872_v39, %v2873_v48  ;;  %v2876_v61 = vsel %vm593_vm4, %v2873_v48, %v2875_v63  ;;  %v3356_v54 = vrot.slane %v3125_v59, 2 }
 0x145   :  { %v3039_v29 = vadd.f32 %v2874_v49, %v2558_v50  ;;  %v3355_v58 = vsel %vm1075_vm5, %v3353_v56, %v3354_v57  ;;  %v359_v5 = vmul.f32 %v4165_v4, %v4282_v10  ;;  %v434_v52 = vmul.f32 %v4164_v2, %v4270_v6  ;;  %v106_v50 = vld [vmem:[%s6859_s0 + $0x50] sm:$0xff]  ;;  %v107_v56 = vld [vmem:[%s6859_s0 + $0x58] sm:$0xff] }
 0x146   :  { %v3040_v11 = vadd.f32 %v2876_v61, %v2559_v60  ;;  %v3357_v13 = vsel %vm1075_vm5, %v3354_v57, %v3356_v54  ;;  %v435_v8 = vmul.f32 %v4165_v4, %v4270_v6  ;;  %v436_v46 = vmul.f32 %v4166_v24, %v4270_v6  ;;  %v5514_v57 = vld [vmem:[#allocation2 + $0x138] sm:$0xff]  ;;  %170 = vst.msk [vmem:[#allocation2 + $0x91] sm:$0xff] %vm15_vm0, %v106_v50  ;;  %v5521_v54 = vld [vmem:[#allocation2 + $0x140] sm:$0xff] }
 0x147   :  { %v3520_v9 = vadd.f32 %v3355_v58, %v3039_v29  ;;  %v649_v3 = vrot.slane %v434_v52, 1  ;;  %v916_v62 = vmul.f32 %v4164_v2, %v4272_v7  ;;  %v917_v44 = vmul.f32 %v4165_v4, %v4272_v7  ;;  %171 = vst.msk [vmem:[#allocation2 + $0x99] sm:$0xff] %vm15_vm0, %v107_v56  ;;  %v4167_v50 = vld [vmem:[#allocation2 + $0x2b8] sm:$0xff] }
 0x148   :  { %v3521_v18 = vadd.f32 %v3357_v13, %v3040_v11  ;;  %v650_v14 = vrot.slane %v435_v8, 1  ;;  %v652_v32 = vrot.slane %v436_v46, 1  ;;  %v918_v0 = vmul.f32 %v4166_v24, %v4272_v7  ;;  %v5529_v8 = vld [vmem:[#allocation2 + $0x148] sm:$0x3] }
 0x149   :  { %v3584_v23 = vpack.c.bf16 %v3520_v9, %v3520_v9  ;;  %v1131_v34 = vrot.slane %v916_v62, 2  ;;  %v1132_v12 = vrot.slane %v917_v44, 2  ;;  %v1387_v21 = vmul.f32 %v4296_v17, %v5246_v15 }
 0x14a   :  { %v3585_v30 = vpack.c.bf16 %v3521_v18, %v3521_v18  ;;  %v651_v26 = vsel %vm593_vm4, %v649_v3, %v650_v14  ;;  %v653_v25 = vsel %vm593_vm4, %v650_v14, %v652_v32  ;;  %v1134_v53 = vrot.slane %v918_v0, 2  ;;  %v139_v3 = vld [vmem:[%s6859_s0 + $0x158] sm:$0xff] }
 0x14b   :  { %v3714_v28 = vunpack.c.l.b16 %v3584_v23  ;;  %v840_v35 = vadd.f32 %v651_v26, %v358_v33  ;;  %v841_v39 = vadd.f32 %v653_v25, %v359_v5  ;;  %v1133_v40 = vsel %vm1075_vm5, %v1131_v34, %v1132_v12  ;;  %203 = vst.msk [vmem:[#allocation2 + $0x249] sm:$0xff] %vm15_vm0, %v139_v3 }
 0x14c   :  { %v3715_v41 = vunpack.c.l.b16 %v3585_v30  ;;  %v1135_v48 = vsel %vm1075_vm5, %v1132_v12, %v1134_v53  ;;  %v1388_v63 = vmul.f32 %v4296_v17, %v5253_v19  ;;  %v1527_v59 = vmul.f32 %v4302_v22, %v5246_v15 }
 0x14d   :  { %v1322_v2 = vadd.f32 %v1133_v40, %v840_v35  ;;  %v1323_v33 = vadd.f32 %v1135_v48, %v841_v39  ;;  %v1528_v60 = vmul.f32 %v4302_v22, %v5253_v19  ;;  %v1529_v49 = vmul.f32 %v4302_v22, %v5261_v27 }
 0x14e   :  { %v3759_v61 = vpack.c.b16 %v3715_v41, %v3714_v28  ;;  %v1741_v29 = vrot.slane %v1527_v59, 1  ;;  %v2008_v58 = vmul.f32 %v4311_v31, %v5246_v15  ;;  %v2009_v4 = vmul.f32 %v4311_v31, %v5253_v19  ;;  %v138_v19 = vld [vmem:[%s6859_s0 + $0x150] sm:$0xff] }
 0x14f   :  { %v1451_v5 = vadd.f32 %v1387_v21, %v1322_v2  ;;  %v1452_v52 = vadd.f32 %v1388_v63, %v1323_v33  ;;  %v1742_v11 = vrot.slane %v1528_v60, 1  ;;  %v1744_v13 = vrot.slane %v1529_v49, 1  ;;  %202 = vst.msk [vmem:[#allocation2 + $0x241] sm:$0xff] %vm15_vm0, %v138_v19  ;;  %v4168_v49 = vld [vmem:[#allocation2 + $0x2c0] sm:$0xff] }
 0x150   :  { %4129 = vmatmul.msk.bf16.gmra.mxu2 %vm15_vm0, %v3759_v61  ;;  %v2010_v24 = vmul.f32 %v4311_v31, %v5261_v27  ;;  %v2222_v46 = vrot.slane %v2008_v58, 2  ;;  %v2223_v9 = vrot.slane %v2009_v4, 2  ;;  %v2478_v15 = vmul.f32 %v4319_v36, %v5514_v57 }
 0x151   :  { %v1743_v62 = vsel %vm593_vm4, %v1741_v29, %v1742_v11  ;;  %v1745_v44 = vsel %vm593_vm4, %v1742_v11, %v1744_v13  ;;  %v2479_v27 = vmul.f32 %v4319_v36, %v5521_v54  ;;  %v2618_v18 = vmul.f32 %v4321_v37, %v5514_v57  ;;  %v4169_v13 = vld [vmem:[#allocation2 + $0x2c8] sm:$0x3] }
 0x152   :  { %v1932_v14 = vadd.f32 %v1743_v62, %v1451_v5  ;;  %v1933_v32 = vadd.f32 %v1745_v44, %v1452_v52  ;;  %v2224_v0 = vsel %vm1075_vm5, %v2222_v46, %v2223_v9  ;;  %v2225_v23 = vrot.slane %v2010_v24, 2 }
 0x153   :  { %v2619_v34 = vmul.f32 %v4321_v37, %v5521_v54  ;;  %v2620_v12 = vmul.f32 %v4321_v37, %v5529_v8  ;;  %v2832_v21 = vrot.slane %v2618_v18, 1  ;;  %v3099_v30 = vmul.f32 %v4329_v42, %v5514_v57 }
 0x154   :  { %v2226_v26 = vsel %vm1075_vm5, %v2223_v9, %v2225_v23  ;;  %v2413_v25 = vadd.f32 %v2224_v0, %v1932_v14  ;;  %v3100_v53 = vmul.f32 %v4329_v42, %v5521_v54  ;;  %v3101_v28 = vmul.f32 %v4329_v42, %v5529_v8 }
 0x155   :  { %v2414_v35 = vadd.f32 %v2226_v26, %v1933_v32  ;;  %v2833_v39 = vrot.slane %v2619_v34, 1  ;;  %v2835_v40 = vrot.slane %v2620_v12, 1  ;;  %v3313_v41 = vrot.slane %v3099_v30, 2 }
 0x156   :  { %v2542_v48 = vadd.f32 %v2478_v15, %v2413_v25  ;;  %v3314_v63 = vrot.slane %v3100_v53, 2  ;;  %v3316_v59 = vrot.slane %v3101_v28, 2  ;;  %v390_v56 = vmul.f32 %v4167_v50, %v4282_v10 }
 0x157   :  { %v2543_v2 = vadd.f32 %v2479_v27, %v2414_v35  ;;  %v2834_v33 = vsel %vm593_vm4, %v2832_v21, %v2833_v39  ;;  %v2836_v60 = vsel %vm593_vm4, %v2833_v39, %v2835_v40  ;;  %v391_v61 = vmul.f32 %v4168_v49, %v4282_v10 }
 0x158   :  { %v3023_v29 = vadd.f32 %v2834_v33, %v2542_v48  ;;  %v3315_v58 = vsel %vm1075_vm5, %v3313_v41, %v3314_v63  ;;  %v3317_v4 = vsel %vm1075_vm5, %v3314_v63, %v3316_v59  ;;  %v482_v5 = vmul.f32 %v4167_v50, %v4270_v6  ;;  %v5585_v48 = vld [vmem:[#allocation2 + $0x2e8] sm:$0xff]  ;;  %v5591_v33 = vld [vmem:[#allocation2 + $0x2f0] sm:$0xff] }
 0x159   :  { %v3024_v52 = vadd.f32 %v2836_v60, %v2543_v2  ;;  %v483_v11 = vmul.f32 %v4168_v49, %v4270_v6  ;;  %v484_v24 = vmul.f32 %v4169_v13, %v4270_v6  ;;  %v964_v46 = vmul.f32 %v4167_v50, %v4272_v7 }
 0x15a   :  { %v3504_v9 = vadd.f32 %v3315_v58, %v3023_v29  ;;  %v729_v15 = vrot.slane %v482_v5, 1  ;;  %v965_v19 = vmul.f32 %v4168_v49, %v4272_v7  ;;  %v966_v3 = vmul.f32 %v4169_v13, %v4272_v7 }
 0x15b   :  { %v3505_v62 = vadd.f32 %v3317_v4, %v3024_v52  ;;  %v730_v44 = vrot.slane %v483_v11, 1  ;;  %v732_v27 = vrot.slane %v484_v24, 1  ;;  %v1211_v18 = vrot.slane %v964_v46, 2  ;;  %v5598_v52 = vld [vmem:[#allocation2 + $0x2f8] sm:$0x3] }
 0x15c   :  { %v3568_v14 = vpack.c.bf16 %v3504_v9, %v3504_v9  ;;  %v1212_v32 = vrot.slane %v965_v19, 2  ;;  %v1214_v0 = vrot.slane %v966_v3, 2  ;;  %v1419_v23 = vmul.f32 %v4296_v17, %v5317_v45  ;;  %v123_v19 = vld [vmem:[%s6859_s0 + $0xd8] sm:$0xff] }
 0x15d   :  { %v3569_v34 = vpack.c.bf16 %v3505_v62, %v3505_v62  ;;  %v731_v12 = vsel %vm593_vm4, %v729_v15, %v730_v44  ;;  %v733_v21 = vsel %vm593_vm4, %v730_v44, %v732_v27  ;;  %v1420_v30 = vmul.f32 %v4296_v17, %v5323_v16  ;;  %187 = vst.msk [vmem:[#allocation2 + $0x159] sm:$0xff] %vm15_vm0, %v123_v19 }
 0x15e   :  { %v3698_v26 = vunpack.c.l.b16 %v3568_v14  ;;  %v872_v25 = vadd.f32 %v731_v12, %v390_v56  ;;  %v873_v53 = vadd.f32 %v733_v21, %v391_v61  ;;  %v1213_v28 = vsel %vm1075_vm5, %v1211_v18, %v1212_v32 }
 0x15f   :  { %v3699_v35 = vunpack.c.l.b16 %v3569_v34  ;;  %v1215_v39 = vsel %vm1075_vm5, %v1212_v32, %v1214_v0  ;;  %v1575_v40 = vmul.f32 %v4302_v22, %v5317_v45  ;;  %v1576_v41 = vmul.f32 %v4302_v22, %v5323_v16 }
 0x160   :  { %v1354_v63 = vadd.f32 %v1213_v28, %v872_v25  ;;  %v1355_v59 = vadd.f32 %v1215_v39, %v873_v53  ;;  %v1577_v50 = vmul.f32 %v4302_v22, %v5330_v20  ;;  %v2056_v56 = vmul.f32 %v4311_v31, %v5317_v45 }
 0x161   :  { %v3751_v2 = vpack.c.b16 %v3699_v35, %v3698_v26  ;;  %v1821_v60 = vrot.slane %v1575_v40, 1  ;;  %v1822_v49 = vrot.slane %v1576_v41, 1  ;;  %v2057_v61 = vmul.f32 %v4311_v31, %v5323_v16  ;;  %v4170_v40 = vld [vmem:[#allocation2 + $0x60] sm:$0xff] }
 0x162   :  { %v1483_v29 = vadd.f32 %v1419_v23, %v1354_v63  ;;  %v1484_v58 = vadd.f32 %v1420_v30, %v1355_v59  ;;  %v1824_v4 = vrot.slane %v1577_v50, 1  ;;  %v2058_v5 = vmul.f32 %v4311_v31, %v5330_v20  ;;  %v122_v20 = vld [vmem:[%s6859_s0 + $0xd0] sm:$0xff] }
 0x163   :  { %4121 = vmatmul.msk.bf16.gmra.mxu1 %vm15_vm0, %v3751_v2  ;;  %v1823_v45 = vsel %vm593_vm4, %v1821_v60, %v1822_v49  ;;  %v2302_v11 = vrot.slane %v2056_v56, 2  ;;  %v2303_v13 = vrot.slane %v2057_v61, 2  ;;  %v2510_v24 = vmul.f32 %v4319_v36, %v5585_v48  ;;  %186 = vst.msk [vmem:[#allocation2 + $0x151] sm:$0xff] %vm15_vm0, %v122_v20  ;;  %v4171_v56 = vld [vmem:[#allocation2 + $0x68] sm:$0xff] }
 0x164   :  { %v1825_v46 = vsel %vm593_vm4, %v1822_v49, %v1824_v4  ;;  %v1964_v16 = vadd.f32 %v1823_v45, %v1483_v29  ;;  %v2305_v9 = vrot.slane %v2058_v5, 2  ;;  %v2511_v15 = vmul.f32 %v4319_v36, %v5591_v33  ;;  %v4172_v5 = vld [vmem:[#allocation2 + $0x70] sm:$0x3] }
 0x165   :  { %v1965_v3 = vadd.f32 %v1825_v46, %v1484_v58  ;;  %v2304_v62 = vsel %vm1075_vm5, %v2302_v11, %v2303_v13  ;;  %v2666_v44 = vmul.f32 %v4321_v37, %v5585_v48  ;;  %v2667_v27 = vmul.f32 %v4321_v37, %v5591_v33 }
 0x166   :  { %v2306_v18 = vsel %vm1075_vm5, %v2303_v13, %v2305_v9  ;;  %v2445_v14 = vadd.f32 %v2304_v62, %v1964_v16  ;;  %v2668_v32 = vmul.f32 %v4321_v37, %v5598_v52  ;;  %v3147_v0 = vmul.f32 %v4329_v42, %v5585_v48 }
 0x167   :  { %v2446_v23 = vadd.f32 %v2306_v18, %v1965_v3  ;;  %v2912_v34 = vrot.slane %v2666_v44, 1  ;;  %v2913_v12 = vrot.slane %v2667_v27, 1  ;;  %v3148_v21 = vmul.f32 %v4329_v42, %v5591_v33 }
 0x168   :  { %v2574_v30 = vadd.f32 %v2510_v24, %v2445_v14  ;;  %v2915_v26 = vrot.slane %v2668_v32, 1  ;;  %v3149_v25 = vmul.f32 %v4329_v42, %v5598_v52  ;;  %v3393_v53 = vrot.slane %v3147_v0, 2 }
 0x169   :  { %v2575_v28 = vadd.f32 %v2511_v15, %v2446_v23  ;;  %v2914_v35 = vsel %vm593_vm4, %v2912_v34, %v2913_v12  ;;  %v3394_v39 = vrot.slane %v3148_v21, 2  ;;  %v344_v41 = vmul.f32 %v4170_v40, %v4282_v10 }
 0x16a   :  { %v2916_v63 = vsel %vm593_vm4, %v2913_v12, %v2915_v26  ;;  %v3055_v59 = vadd.f32 %v2914_v35, %v2574_v30  ;;  %v3396_v50 = vrot.slane %v3149_v25, 2  ;;  %v345_v2 = vmul.f32 %v4171_v56, %v4282_v10  ;;  %v5652_v35 = vld [vmem:[#allocation2 + $0x90] sm:$0xff] }
 0x16b   :  { %v3056_v60 = vadd.f32 %v2916_v63, %v2575_v28  ;;  %v3395_v49 = vsel %vm1075_vm5, %v3393_v53, %v3394_v39  ;;  %v413_v61 = vmul.f32 %v4170_v40, %v4270_v6  ;;  %v414_v29 = vmul.f32 %v4171_v56, %v4270_v6 }
 0x16c   :  { %v3397_v58 = vsel %vm1075_vm5, %v3394_v39, %v3396_v50  ;;  %v3536_v4 = vadd.f32 %v3395_v49, %v3055_v59  ;;  %v415_v45 = vmul.f32 %v4172_v5, %v4270_v6  ;;  %v895_v11 = vmul.f32 %v4170_v40, %v4272_v7  ;;  %v5654_v39 = vld [vmem:[#allocation2 + $0x98] sm:$0xff] }
 0x16d   :  { %v3537_v13 = vadd.f32 %v3397_v58, %v3056_v60  ;;  %v614_v24 = vrot.slane %v413_v61, 1  ;;  %v615_v46 = vrot.slane %v414_v29, 1  ;;  %v896_v16 = vmul.f32 %v4171_v56, %v4272_v7  ;;  %v5663_v60 = vld [vmem:[#allocation2 + $0xa0] sm:$0x3] }
 0x16e   :  { %v3600_v9 = vpack.c.bf16 %v3536_v4, %v3536_v4  ;;  %v617_v15 = vrot.slane %v415_v45, 1  ;;  %v897_v20 = vmul.f32 %v4172_v5, %v4272_v7  ;;  %v1096_v19 = vrot.slane %v895_v11, 2  ;;  %v155_v11 = vld [vmem:[%s6859_s0 + $0x1d8] sm:$0xff] }
 0x16f   :  { %v3601_v3 = vpack.c.bf16 %v3537_v13, %v3537_v13  ;;  %v616_v62 = vsel %vm593_vm4, %v614_v24, %v615_v46  ;;  %v1097_v44 = vrot.slane %v896_v16, 2  ;;  %v1373_v27 = vmul.f32 %v4296_v17, %v5384_v47  ;;  %219 = vst.msk [vmem:[#allocation2 + $0x309] sm:$0xff] %vm15_vm0, %v155_v11 }
 0x170   :  { %v3730_v18 = vunpack.c.l.b16 %v3600_v9  ;;  %v618_v14 = vsel %vm593_vm4, %v615_v46, %v617_v15  ;;  %v826_v32 = vadd.f32 %v616_v62, %v344_v41  ;;  %v1099_v0 = vrot.slane %v897_v20, 2 }
 0x171   :  { %v3731_v23 = vunpack.c.l.b16 %v3601_v3  ;;  %v827_v34 = vadd.f32 %v618_v14, %v345_v2  ;;  %v1098_v12 = vsel %vm1075_vm5, %v1096_v19, %v1097_v44  ;;  %v1374_v21 = vmul.f32 %v4296_v17, %v5386_v38 }
 0x172   :  { %v1100_v30 = vsel %vm1075_vm5, %v1097_v44, %v1099_v0  ;;  %v1308_v26 = vadd.f32 %v1098_v12, %v826_v32  ;;  %v1506_v25 = vmul.f32 %v4302_v22, %v5384_v47  ;;  %v1507_v53 = vmul.f32 %v4302_v22, %v5386_v38  ;;  %v4173_v12 = vld [vmem:[#allocation2 + $0x210] sm:$0xff] }
 0x173   :  { %v3767_v28 = vpack.c.b16 %v3731_v23, %v3730_v18  ;;  %v1309_v40 = vadd.f32 %v1100_v30, %v827_v34  ;;  %v1508_v41 = vmul.f32 %v4302_v22, %v5395_v43  ;;  %v1987_v63 = vmul.f32 %v4311_v31, %v5384_v47 }
 0x174   :  { %v1437_v59 = vadd.f32 %v1373_v27, %v1308_v26  ;;  %v1706_v50 = vrot.slane %v1506_v25, 1  ;;  %v1707_v56 = vrot.slane %v1507_v53, 1  ;;  %v1988_v2 = vmul.f32 %v4311_v31, %v5386_v38  ;;  %v154_v38 = vld [vmem:[%s6859_s0 + $0x1d0] sm:$0xff] }
 0x175   :  { %4137 = vmatmul.msk.bf16.gmra.mxu3 %vm15_vm0, %v3767_v28  ;;  %v1438_v49 = vadd.f32 %v1374_v21, %v1309_v40  ;;  %v1709_v61 = vrot.slane %v1508_v41, 1  ;;  %v1989_v29 = vmul.f32 %v4311_v31, %v5395_v43  ;;  %v2187_v58 = vrot.slane %v1987_v63, 2  ;;  %218 = vst.msk [vmem:[#allocation2 + $0x301] sm:$0xff] %vm15_vm0, %v154_v38  ;;  %v4174_v41 = vld [vmem:[#allocation2 + $0x218] sm:$0xff] }
 0x176   :  { %v1708_v4 = vsel %vm593_vm4, %v1706_v50, %v1707_v56  ;;  %v2188_v5 = vrot.slane %v1988_v2, 2  ;;  %v2464_v47 = vmul.f32 %v4319_v36, %v5652_v35  ;;  %v2465_v45 = vmul.f32 %v4319_v36, %v5654_v39 }
 0x177   :  { %v1710_v43 = vsel %vm593_vm4, %v1707_v56, %v1709_v61  ;;  %v1918_v13 = vadd.f32 %v1708_v4, %v1437_v59  ;;  %v2190_v24 = vrot.slane %v1989_v29, 2  ;;  %v2597_v46 = vmul.f32 %v4321_v37, %v5652_v35 }
 0x178   :  { %v1919_v16 = vadd.f32 %v1710_v43, %v1438_v49  ;;  %v2189_v9 = vsel %vm1075_vm5, %v2187_v58, %v2188_v5  ;;  %v2598_v15 = vmul.f32 %v4321_v37, %v5654_v39  ;;  %v2599_v20 = vmul.f32 %v4321_v37, %v5663_v60  ;;  %v4175_v49 = vld [vmem:[#allocation2 + $0x220] sm:$0x3] }
 0x179   :  { %v2191_v19 = vsel %vm1075_vm5, %v2188_v5, %v2190_v24  ;;  %v2399_v3 = vadd.f32 %v2189_v9, %v1918_v13  ;;  %v2797_v62 = vrot.slane %v2597_v46, 1  ;;  %v3078_v44 = vmul.f32 %v4329_v42, %v5652_v35 }
 0x17a   :  { %v2400_v27 = vadd.f32 %v2191_v19, %v1919_v16  ;;  %v2798_v18 = vrot.slane %v2598_v15, 1  ;;  %v2800_v14 = vrot.slane %v2599_v20, 1  ;;  %v3079_v32 = vmul.f32 %v4329_v42, %v5654_v39 }
 0x17b   :  { %v2528_v0 = vadd.f32 %v2464_v47, %v2399_v3  ;;  %v3080_v23 = vmul.f32 %v4329_v42, %v5663_v60  ;;  %v3278_v34 = vrot.slane %v3078_v44, 2  ;;  %v376_v21 = vmul.f32 %v4173_v12, %v4282_v10 }
 0x17c   :  { %v2529_v30 = vadd.f32 %v2465_v45, %v2400_v27  ;;  %v2799_v26 = vsel %vm593_vm4, %v2797_v62, %v2798_v18  ;;  %v2801_v25 = vsel %vm593_vm4, %v2798_v18, %v2800_v14  ;;  %v3279_v53 = vrot.slane %v3079_v32, 2 }
 0x17d   :  { %v3009_v28 = vadd.f32 %v2799_v26, %v2528_v0  ;;  %v3281_v40 = vrot.slane %v3080_v23, 2  ;;  %v377_v63 = vmul.f32 %v4174_v41, %v4282_v10  ;;  %v461_v59 = vmul.f32 %v4173_v12, %v4270_v6  ;;  %v5716_v0 = vld [vmem:[#allocation2 + $0x240] sm:$0xff]  ;;  %v5723_v26 = vld [vmem:[#allocation2 + $0x248] sm:$0xff] }
 0x17e   :  { %v3010_v50 = vadd.f32 %v2801_v25, %v2529_v30  ;;  %v3280_v56 = vsel %vm1075_vm5, %v3278_v34, %v3279_v53  ;;  %v462_v2 = vmul.f32 %v4174_v41, %v4270_v6  ;;  %v463_v61 = vmul.f32 %v4175_v49, %v4270_v6 }
 0x17f   :  { %v3282_v29 = vsel %vm1075_vm5, %v3279_v53, %v3281_v40  ;;  %v3490_v58 = vadd.f32 %v3280_v56, %v3009_v28  ;;  %v694_v4 = vrot.slane %v461_v59, 1  ;;  %v943_v5 = vmul.f32 %v4173_v12, %v4272_v7 }
 0x180   :  { %v3491_v47 = vadd.f32 %v3282_v29, %v3010_v50  ;;  %v695_v45 = vrot.slane %v462_v2, 1  ;;  %v697_v38 = vrot.slane %v463_v61, 1  ;;  %v944_v11 = vmul.f32 %v4174_v41, %v4272_v7  ;;  %v5730_v50 = vld [vmem:[#allocation2 + $0x250] sm:$0x3] }
 0x181   :  { %v3554_v43 = vpack.c.bf16 %v3490_v58, %v3490_v58  ;;  %v945_v13 = vmul.f32 %v4175_v49, %v4272_v7  ;;  %v1176_v24 = vrot.slane %v943_v5, 2  ;;  %v1405_v46 = vmul.f32 %v4296_v17, %v5448_v51 }
 0x182   :  { %v3555_v16 = vpack.c.bf16 %v3491_v47, %v3491_v47  ;;  %v696_v9 = vsel %vm593_vm4, %v694_v4, %v695_v45  ;;  %v698_v15 = vsel %vm593_vm4, %v695_v45, %v697_v38  ;;  %v1177_v20 = vrot.slane %v944_v11, 2 }
 0x183   :  { %v3684_v19 = vunpack.c.l.b16 %v3554_v43  ;;  %v858_v3 = vadd.f32 %v696_v9, %v376_v21  ;;  %v859_v62 = vadd.f32 %v698_v15, %v377_v63  ;;  %v1179_v44 = vrot.slane %v945_v13, 2 }
 0x184   :  { %v3685_v27 = vunpack.c.l.b16 %v3555_v16  ;;  %v1178_v18 = vsel %vm1075_vm5, %v1176_v24, %v1177_v20  ;;  %v1406_v14 = vmul.f32 %v4296_v17, %v5455_v1  ;;  %v1554_v32 = vmul.f32 %v4302_v22, %v5448_v51 }
 0x185   :  { %v1180_v23 = vsel %vm1075_vm5, %v1177_v20, %v1179_v44  ;;  %v1340_v34 = vadd.f32 %v1178_v18, %v858_v3  ;;  %v1555_v12 = vmul.f32 %v4302_v22, %v5455_v1  ;;  %v1556_v21 = vmul.f32 %v4302_v22, %v5462_v55 }
 0x186   :  { %v3744_v30 = vpack.c.b16 %v3685_v27, %v3684_v19  ;;  %v1341_v25 = vadd.f32 %v1180_v23, %v859_v62  ;;  %v1786_v53 = vrot.slane %v1554_v32, 1  ;;  %v2035_v28 = vmul.f32 %v4311_v31, %v5448_v51  ;;  %v4176_v27 = vld [vmem:[#allocation2 + $0x120] sm:$0xff] }
 0x187   :  { %v1469_v40 = vadd.f32 %v1405_v46, %v1340_v34  ;;  %v1787_v41 = vrot.slane %v1555_v12, 1  ;;  %v1789_v63 = vrot.slane %v1556_v21, 1  ;;  %v2036_v59 = vmul.f32 %v4311_v31, %v5455_v1 }
 0x188   :  { %4114 = vmatmul.msk.bf16.gmra.mxu0 %vm15_vm0, %v3744_v30  ;;  %v1470_v56 = vadd.f32 %v1406_v14, %v1341_v25  ;;  %v2037_v2 = vmul.f32 %v4311_v31, %v5462_v55  ;;  %v2267_v49 = vrot.slane %v2035_v28, 2  ;;  %v2496_v61 = vmul.f32 %v4319_v36, %v5716_v0  ;;  %v4177_v30 = vld [vmem:[#allocation2 + $0x128] sm:$0xff] }
 0x189   :  { %v1788_v51 = vsel %vm593_vm4, %v1786_v53, %v1787_v41  ;;  %v1790_v29 = vsel %vm593_vm4, %v1787_v41, %v1789_v63  ;;  %v2268_v58 = vrot.slane %v2036_v59, 2  ;;  %v2497_v1 = vmul.f32 %v4319_v36, %v5723_v26  ;;  %v4178_v63 = vld [vmem:[#allocation2 + $0x130] sm:$0x3] }
 0x18a   :  { %v1950_v4 = vadd.f32 %v1788_v51, %v1469_v40  ;;  %v1951_v5 = vadd.f32 %v1790_v29, %v1470_v56  ;;  %v2270_v47 = vrot.slane %v2037_v2, 2  ;;  %v2645_v45 = vmul.f32 %v4321_v37, %v5716_v0 }
 0x18b   :  { %v2269_v55 = vsel %vm1075_vm5, %v2267_v49, %v2268_v58  ;;  %v2646_v38 = vmul.f32 %v4321_v37, %v5723_v26  ;;  %v2647_v11 = vmul.f32 %v4321_v37, %v5730_v50  ;;  %v3126_v43 = vmul.f32 %v4329_v42, %v5716_v0 }
 0x18c   :  { %v2271_v13 = vsel %vm1075_vm5, %v2268_v58, %v2270_v47  ;;  %v2431_v24 = vadd.f32 %v2269_v55, %v1950_v4  ;;  %v2877_v46 = vrot.slane %v2645_v45, 1  ;;  %v3127_v16 = vmul.f32 %v4329_v42, %v5723_v26 }
 0x18d   :  { %v2432_v9 = vadd.f32 %v2271_v13, %v1951_v5  ;;  %v2878_v15 = vrot.slane %v2646_v38, 1  ;;  %v2880_v20 = vrot.slane %v2647_v11, 1  ;;  %v3128_v19 = vmul.f32 %v4329_v42, %v5730_v50 }
 0x18e   :  { %v2560_v3 = vadd.f32 %v2496_v61, %v2431_v24  ;;  %v3358_v62 = vrot.slane %v3126_v43, 2  ;;  %v3359_v44 = vrot.slane %v3127_v16, 2  ;;  %v360_v18 = vmul.f32 %v4176_v27, %v4282_v10 }
 0x18f   :  { %v2561_v14 = vadd.f32 %v2497_v1, %v2432_v9  ;;  %v2879_v32 = vsel %vm593_vm4, %v2877_v46, %v2878_v15  ;;  %v2881_v23 = vsel %vm593_vm4, %v2878_v15, %v2880_v20  ;;  %v3361_v34 = vrot.slane %v3128_v19, 2 }
 0x190   :  { %v3041_v12 = vadd.f32 %v2879_v32, %v2560_v3  ;;  %v3360_v21 = vsel %vm1075_vm5, %v3358_v62, %v3359_v44  ;;  %v361_v25 = vmul.f32 %v4177_v30, %v4282_v10  ;;  %v437_v53 = vmul.f32 %v4176_v27, %v4270_v6  ;;  %v108_v3 = vld [vmem:[%s6859_s0 + $0x60] sm:$0xff]  ;;  %v109_v62 = vld [vmem:[%s6859_s0 + $0x68] sm:$0xff] }
 0x191   :  { %v3042_v28 = vadd.f32 %v2881_v23, %v2561_v14  ;;  %v3362_v40 = vsel %vm1075_vm5, %v3359_v44, %v3361_v34  ;;  %v438_v41 = vmul.f32 %v4177_v30, %v4270_v6  ;;  %v439_v59 = vmul.f32 %v4178_v63, %v4270_v6  ;;  %v5782_v44 = vld [vmem:[#allocation2 + $0x150] sm:$0xff]  ;;  %172 = vst.msk [vmem:[#allocation2 + $0xa9] sm:$0xff] %vm15_vm0, %v108_v3  ;;  %v5789_v34 = vld [vmem:[#allocation2 + $0x158] sm:$0xff] }
 0x192   :  { %v3522_v56 = vadd.f32 %v3360_v21, %v3041_v12  ;;  %v654_v2 = vrot.slane %v437_v53, 1  ;;  %v919_v49 = vmul.f32 %v4176_v27, %v4272_v7  ;;  %v920_v61 = vmul.f32 %v4177_v30, %v4272_v7  ;;  %173 = vst.msk [vmem:[#allocation2 + $0xb1] sm:$0xff] %vm15_vm0, %v109_v62  ;;  %v4179_v3 = vld [vmem:[#allocation2 + $0x2d0] sm:$0xff] }
 0x193   :  { %v3523_v51 = vadd.f32 %v3362_v40, %v3042_v28  ;;  %v655_v29 = vrot.slane %v438_v41, 1  ;;  %v657_v58 = vrot.slane %v439_v59, 1  ;;  %v921_v1 = vmul.f32 %v4178_v63, %v4272_v7  ;;  %v5797_v41 = vld [vmem:[#allocation2 + $0x160] sm:$0x3] }
 0x194   :  { %v3586_v4 = vpack.c.bf16 %v3522_v56, %v3522_v56  ;;  %v1136_v5 = vrot.slane %v919_v49, 2  ;;  %v1137_v47 = vrot.slane %v920_v61, 2  ;;  %v1389_v45 = vmul.f32 %v4296_v17, %v5514_v57 }
 0x195   :  { %v3587_v55 = vpack.c.bf16 %v3523_v51, %v3523_v51  ;;  %v656_v38 = vsel %vm593_vm4, %v654_v2, %v655_v29  ;;  %v658_v11 = vsel %vm593_vm4, %v655_v29, %v657_v58  ;;  %v1139_v43 = vrot.slane %v921_v1, 2  ;;  %v141_v2 = vld [vmem:[%s6859_s0 + $0x168] sm:$0xff] }
 0x196   :  { %v3716_v13 = vunpack.c.l.b16 %v3586_v4  ;;  %v842_v24 = vadd.f32 %v656_v38, %v360_v18  ;;  %v843_v46 = vadd.f32 %v658_v11, %v361_v25  ;;  %v1138_v16 = vsel %vm1075_vm5, %v1136_v5, %v1137_v47  ;;  %205 = vst.msk [vmem:[#allocation2 + $0x261] sm:$0xff] %vm15_vm0, %v141_v2 }
 0x197   :  { %v3717_v9 = vunpack.c.l.b16 %v3587_v55  ;;  %v1140_v15 = vsel %vm1075_vm5, %v1137_v47, %v1139_v43  ;;  %v1390_v20 = vmul.f32 %v4296_v17, %v5521_v54  ;;  %v1530_v19 = vmul.f32 %v4302_v22, %v5514_v57 }
 0x198   :  { %v1324_v27 = vadd.f32 %v1138_v16, %v842_v24  ;;  %v1325_v18 = vadd.f32 %v1140_v15, %v843_v46  ;;  %v1531_v14 = vmul.f32 %v4302_v22, %v5521_v54  ;;  %v1532_v32 = vmul.f32 %v4302_v22, %v5529_v8 }
 0x199   :  { %v3760_v23 = vpack.c.b16 %v3717_v9, %v3716_v13  ;;  %v1746_v12 = vrot.slane %v1530_v19, 1  ;;  %v2011_v21 = vmul.f32 %v4311_v31, %v5514_v57  ;;  %v2012_v30 = vmul.f32 %v4311_v31, %v5521_v54  ;;  %v140_v54 = vld [vmem:[%s6859_s0 + $0x160] sm:$0xff] }
 0x19a   :  { %v1453_v25 = vadd.f32 %v1389_v45, %v1324_v27  ;;  %v1454_v53 = vadd.f32 %v1390_v20, %v1325_v18  ;;  %v1747_v28 = vrot.slane %v1531_v14, 1  ;;  %v1749_v40 = vrot.slane %v1532_v32, 1  ;;  %204 = vst.msk [vmem:[#allocation2 + $0x259] sm:$0xff] %vm15_vm0, %v140_v54  ;;  %v4180_v32 = vld [vmem:[#allocation2 + $0x2d8] sm:$0xff] }
 0x19b   :  { %4130 = vmatmul.msk.bf16.gmra.mxu2 %vm15_vm0, %v3760_v23  ;;  %v2013_v63 = vmul.f32 %v4311_v31, %v5529_v8  ;;  %v2227_v59 = vrot.slane %v2011_v21, 2  ;;  %v2228_v56 = vrot.slane %v2012_v30, 2  ;;  %v2480_v57 = vmul.f32 %v4319_v36, %v5782_v44 }
 0x19c   :  { %v1748_v49 = vsel %vm593_vm4, %v1746_v12, %v1747_v28  ;;  %v1750_v61 = vsel %vm593_vm4, %v1747_v28, %v1749_v40  ;;  %v2481_v8 = vmul.f32 %v4319_v36, %v5789_v34  ;;  %v2621_v51 = vmul.f32 %v4321_v37, %v5782_v44  ;;  %v4181_v40 = vld [vmem:[#allocation2 + $0x2e0] sm:$0x3] }
 0x19d   :  { %v1934_v29 = vadd.f32 %v1748_v49, %v1453_v25  ;;  %v1935_v58 = vadd.f32 %v1750_v61, %v1454_v53  ;;  %v2229_v1 = vsel %vm1075_vm5, %v2227_v59, %v2228_v56  ;;  %v2230_v4 = vrot.slane %v2013_v63, 2 }
 0x19e   :  { %v2622_v5 = vmul.f32 %v4321_v37, %v5789_v34  ;;  %v2623_v47 = vmul.f32 %v4321_v37, %v5797_v41  ;;  %v2837_v45 = vrot.slane %v2621_v51, 1  ;;  %v3102_v55 = vmul.f32 %v4329_v42, %v5782_v44 }
 0x19f   :  { %v2231_v38 = vsel %vm1075_vm5, %v2228_v56, %v2230_v4  ;;  %v2415_v11 = vadd.f32 %v2229_v1, %v1934_v29  ;;  %v3103_v43 = vmul.f32 %v4329_v42, %v5789_v34  ;;  %v3104_v13 = vmul.f32 %v4329_v42, %v5797_v41 }
 0x1a0   :  { %v2416_v24 = vadd.f32 %v2231_v38, %v1935_v58  ;;  %v2838_v46 = vrot.slane %v2622_v5, 1  ;;  %v2840_v16 = vrot.slane %v2623_v47, 1  ;;  %v3318_v9 = vrot.slane %v3102_v55, 2 }
 0x1a1   :  { %v2544_v15 = vadd.f32 %v2480_v57, %v2415_v11  ;;  %v3319_v20 = vrot.slane %v3103_v43, 2  ;;  %v3321_v19 = vrot.slane %v3104_v13, 2  ;;  %v392_v62 = vmul.f32 %v4179_v3, %v4282_v10 }
 0x1a2   :  { %v2545_v27 = vadd.f32 %v2481_v8, %v2416_v24  ;;  %v2839_v18 = vsel %vm593_vm4, %v2837_v45, %v2838_v46  ;;  %v2841_v14 = vsel %vm593_vm4, %v2838_v46, %v2840_v16  ;;  %v393_v23 = vmul.f32 %v4180_v32, %v4282_v10 }
 0x1a3   :  { %v3025_v12 = vadd.f32 %v2839_v18, %v2544_v15  ;;  %v3320_v21 = vsel %vm1075_vm5, %v3318_v9, %v3319_v20  ;;  %v3322_v30 = vsel %vm1075_vm5, %v3319_v20, %v3321_v19  ;;  %v485_v25 = vmul.f32 %v4179_v3, %v4270_v6  ;;  %v5853_v15 = vld [vmem:[#allocation2 + $0x300] sm:$0xff]  ;;  %v5859_v18 = vld [vmem:[#allocation2 + $0x308] sm:$0xff] }
 0x1a4   :  { %v3026_v53 = vadd.f32 %v2841_v14, %v2545_v27  ;;  %v486_v28 = vmul.f32 %v4180_v32, %v4270_v6  ;;  %v487_v63 = vmul.f32 %v4181_v40, %v4270_v6  ;;  %v967_v59 = vmul.f32 %v4179_v3, %v4272_v7 }
 0x1a5   :  { %v3506_v56 = vadd.f32 %v3320_v21, %v3025_v12  ;;  %v734_v57 = vrot.slane %v485_v25, 1  ;;  %v968_v54 = vmul.f32 %v4180_v32, %v4272_v7  ;;  %v969_v2 = vmul.f32 %v4181_v40, %v4272_v7 }
 0x1a6   :  { %v3507_v49 = vadd.f32 %v3322_v30, %v3026_v53  ;;  %v735_v61 = vrot.slane %v486_v28, 1  ;;  %v737_v8 = vrot.slane %v487_v63, 1  ;;  %v1216_v51 = vrot.slane %v967_v59, 2  ;;  %v5866_v53 = vld [vmem:[#allocation2 + $0x310] sm:$0x3] }
 0x1a7   :  { %v3570_v29 = vpack.c.bf16 %v3506_v56, %v3506_v56  ;;  %v1217_v58 = vrot.slane %v968_v54, 2  ;;  %v1219_v1 = vrot.slane %v969_v2, 2  ;;  %v1421_v4 = vmul.f32 %v4296_v17, %v5585_v48  ;;  %v125_v54 = vld [vmem:[%s6859_s0 + $0xe8] sm:$0xff] }
 0x1a8   :  { %v3571_v5 = vpack.c.bf16 %v3507_v49, %v3507_v49  ;;  %v736_v47 = vsel %vm593_vm4, %v734_v57, %v735_v61  ;;  %v738_v45 = vsel %vm593_vm4, %v735_v61, %v737_v8  ;;  %v1422_v55 = vmul.f32 %v4296_v17, %v5591_v33  ;;  %189 = vst.msk [vmem:[#allocation2 + $0x171] sm:$0xff] %vm15_vm0, %v125_v54 }
 0x1a9   :  { %v3700_v38 = vunpack.c.l.b16 %v3570_v29  ;;  %v874_v11 = vadd.f32 %v736_v47, %v392_v62  ;;  %v875_v43 = vadd.f32 %v738_v45, %v393_v23  ;;  %v1218_v13 = vsel %vm1075_vm5, %v1216_v51, %v1217_v58 }
 0x1aa   :  { %v3701_v24 = vunpack.c.l.b16 %v3571_v5  ;;  %v1220_v46 = vsel %vm1075_vm5, %v1217_v58, %v1219_v1  ;;  %v1578_v16 = vmul.f32 %v4302_v22, %v5585_v48  ;;  %v1579_v9 = vmul.f32 %v4302_v22, %v5591_v33 }
 0x1ab   :  { %v1356_v20 = vadd.f32 %v1218_v13, %v874_v11  ;;  %v1357_v19 = vadd.f32 %v1220_v46, %v875_v43  ;;  %v1580_v3 = vmul.f32 %v4302_v22, %v5598_v52  ;;  %v2059_v62 = vmul.f32 %v4311_v31, %v5585_v48 }
 0x1ac   :  { %v3752_v27 = vpack.c.b16 %v3701_v24, %v3700_v38  ;;  %v1826_v14 = vrot.slane %v1578_v16, 1  ;;  %v1827_v32 = vrot.slane %v1579_v9, 1  ;;  %v2060_v23 = vmul.f32 %v4311_v31, %v5591_v33  ;;  %v4182_v16 = vld [vmem:[#allocation2 + $0x78] sm:$0xff] }
 0x1ad   :  { %v1485_v12 = vadd.f32 %v1421_v4, %v1356_v20  ;;  %v1486_v21 = vadd.f32 %v1422_v55, %v1357_v19  ;;  %v1829_v30 = vrot.slane %v1580_v3, 1  ;;  %v2061_v25 = vmul.f32 %v4311_v31, %v5598_v52  ;;  %v124_v52 = vld [vmem:[%s6859_s0 + $0xe0] sm:$0xff] }
 0x1ae   :  { %4122 = vmatmul.msk.bf16.gmra.mxu1 %vm15_vm0, %v3752_v27  ;;  %v1828_v48 = vsel %vm593_vm4, %v1826_v14, %v1827_v32  ;;  %v2307_v28 = vrot.slane %v2059_v62, 2  ;;  %v2308_v40 = vrot.slane %v2060_v23, 2  ;;  %v2512_v63 = vmul.f32 %v4319_v36, %v5853_v15  ;;  %188 = vst.msk [vmem:[#allocation2 + $0x169] sm:$0xff] %vm15_vm0, %v124_v52  ;;  %v4183_v62 = vld [vmem:[#allocation2 + $0x80] sm:$0xff] }
 0x1af   :  { %v1830_v59 = vsel %vm593_vm4, %v1827_v32, %v1829_v30  ;;  %v1966_v33 = vadd.f32 %v1828_v48, %v1485_v12  ;;  %v2310_v56 = vrot.slane %v2061_v25, 2  ;;  %v2513_v57 = vmul.f32 %v4319_v36, %v5859_v18  ;;  %v4184_v25 = vld [vmem:[#allocation2 + $0x88] sm:$0x3] }
 0x1b0   :  { %v1967_v2 = vadd.f32 %v1830_v59, %v1486_v21  ;;  %v2309_v49 = vsel %vm1075_vm5, %v2307_v28, %v2308_v40  ;;  %v2669_v61 = vmul.f32 %v4321_v37, %v5853_v15  ;;  %v2670_v8 = vmul.f32 %v4321_v37, %v5859_v18 }
 0x1b1   :  { %v2311_v51 = vsel %vm1075_vm5, %v2308_v40, %v2310_v56  ;;  %v2447_v29 = vadd.f32 %v2309_v49, %v1966_v33  ;;  %v2671_v58 = vmul.f32 %v4321_v37, %v5866_v53  ;;  %v3150_v1 = vmul.f32 %v4329_v42, %v5853_v15 }
 0x1b2   :  { %v2448_v4 = vadd.f32 %v2311_v51, %v1967_v2  ;;  %v2917_v5 = vrot.slane %v2669_v61, 1  ;;  %v2918_v47 = vrot.slane %v2670_v8, 1  ;;  %v3151_v45 = vmul.f32 %v4329_v42, %v5859_v18 }
 0x1b3   :  { %v2576_v55 = vadd.f32 %v2512_v63, %v2447_v29  ;;  %v2920_v38 = vrot.slane %v2671_v58, 1  ;;  %v3152_v11 = vmul.f32 %v4329_v42, %v5866_v53  ;;  %v3398_v43 = vrot.slane %v3150_v1, 2 }
 0x1b4   :  { %v2577_v13 = vadd.f32 %v2513_v57, %v2448_v4  ;;  %v2919_v24 = vsel %vm593_vm4, %v2917_v5, %v2918_v47  ;;  %v3399_v46 = vrot.slane %v3151_v45, 2  ;;  %v346_v9 = vmul.f32 %v4182_v16, %v4282_v10 }
 0x1b5   :  { %v2921_v20 = vsel %vm593_vm4, %v2918_v47, %v2920_v38  ;;  %v3057_v19 = vadd.f32 %v2919_v24, %v2576_v55  ;;  %v3401_v3 = vrot.slane %v3152_v11, 2  ;;  %v347_v27 = vmul.f32 %v4183_v62, %v4282_v10  ;;  %v5920_v24 = vld [vmem:[#allocation2 + $0xa8] sm:$0xff] }
 0x1b6   :  { %v3058_v14 = vadd.f32 %v2921_v20, %v2577_v13  ;;  %v3400_v32 = vsel %vm1075_vm5, %v3398_v43, %v3399_v46  ;;  %v416_v23 = vmul.f32 %v4182_v16, %v4270_v6  ;;  %v417_v12 = vmul.f32 %v4183_v62, %v4270_v6 }
 0x1b7   :  { %v3402_v21 = vsel %vm1075_vm5, %v3399_v46, %v3401_v3  ;;  %v3538_v30 = vadd.f32 %v3400_v32, %v3057_v19  ;;  %v418_v48 = vmul.f32 %v4184_v25, %v4270_v6  ;;  %v898_v28 = vmul.f32 %v4182_v16, %v4272_v7  ;;  %v5922_v46 = vld [vmem:[#allocation2 + $0xb0] sm:$0xff] }
 0x1b8   :  { %v3539_v40 = vadd.f32 %v3402_v21, %v3058_v14  ;;  %v619_v63 = vrot.slane %v416_v23, 1  ;;  %v620_v59 = vrot.slane %v417_v12, 1  ;;  %v899_v33 = vmul.f32 %v4183_v62, %v4272_v7  ;;  %v5931_v14 = vld [vmem:[#allocation2 + $0xb8] sm:$0x3] }
 0x1b9   :  { %v3602_v56 = vpack.c.bf16 %v3538_v30, %v3538_v30  ;;  %v622_v57 = vrot.slane %v418_v48, 1  ;;  %v900_v52 = vmul.f32 %v4184_v25, %v4272_v7  ;;  %v1101_v54 = vrot.slane %v898_v28, 2  ;;  %v157_v28 = vld [vmem:[%s6859_s0 + $0x1e8] sm:$0xff] }
 0x1ba   :  { %v3603_v2 = vpack.c.bf16 %v3539_v40, %v3539_v40  ;;  %v621_v49 = vsel %vm593_vm4, %v619_v63, %v620_v59  ;;  %v1102_v61 = vrot.slane %v899_v33, 2  ;;  %v1375_v8 = vmul.f32 %v4296_v17, %v5652_v35  ;;  %221 = vst.msk [vmem:[#allocation2 + $0x321] sm:$0xff] %vm15_vm0, %v157_v28 }
 0x1bb   :  { %v3732_v51 = vunpack.c.l.b16 %v3602_v56  ;;  %v623_v29 = vsel %vm593_vm4, %v620_v59, %v622_v57  ;;  %v828_v58 = vadd.f32 %v621_v49, %v346_v9  ;;  %v1104_v1 = vrot.slane %v900_v52, 2 }
 0x1bc   :  { %v3733_v4 = vunpack.c.l.b16 %v3603_v2  ;;  %v829_v5 = vadd.f32 %v623_v29, %v347_v27  ;;  %v1103_v47 = vsel %vm1075_vm5, %v1101_v54, %v1102_v61  ;;  %v1376_v45 = vmul.f32 %v4296_v17, %v5654_v39 }
 0x1bd   :  { %v1105_v55 = vsel %vm1075_vm5, %v1102_v61, %v1104_v1  ;;  %v1310_v38 = vadd.f32 %v1103_v47, %v828_v58  ;;  %v1509_v11 = vmul.f32 %v4302_v22, %v5652_v35  ;;  %v1510_v43 = vmul.f32 %v4302_v22, %v5654_v39  ;;  %v4185_v47 = vld [vmem:[#allocation2 + $0x228] sm:$0xff] }
 0x1be   :  { %v3768_v13 = vpack.c.b16 %v3733_v4, %v3732_v51  ;;  %v1311_v16 = vadd.f32 %v1105_v55, %v829_v5  ;;  %v1511_v9 = vmul.f32 %v4302_v22, %v5663_v60  ;;  %v1990_v20 = vmul.f32 %v4311_v31, %v5652_v35 }
 0x1bf   :  { %v1439_v19 = vadd.f32 %v1375_v8, %v1310_v38  ;;  %v1711_v3 = vrot.slane %v1509_v11, 1  ;;  %v1712_v62 = vrot.slane %v1510_v43, 1  ;;  %v1991_v27 = vmul.f32 %v4311_v31, %v5654_v39  ;;  %v156_v39 = vld [vmem:[%s6859_s0 + $0x1e0] sm:$0xff] }
 0x1c0   :  { %4138 = vmatmul.msk.bf16.gmra.mxu3 %vm15_vm0, %v3768_v13  ;;  %v1440_v32 = vadd.f32 %v1376_v45, %v1311_v16  ;;  %v1714_v23 = vrot.slane %v1511_v9, 1  ;;  %v1992_v12 = vmul.f32 %v4311_v31, %v5663_v60  ;;  %v2192_v21 = vrot.slane %v1990_v20, 2  ;;  %220 = vst.msk [vmem:[#allocation2 + $0x319] sm:$0xff] %vm15_vm0, %v156_v39  ;;  %v4186_v9 = vld [vmem:[#allocation2 + $0x230] sm:$0xff] }
 0x1c1   :  { %v1713_v30 = vsel %vm593_vm4, %v1711_v3, %v1712_v62  ;;  %v2193_v25 = vrot.slane %v1991_v27, 2  ;;  %v2466_v35 = vmul.f32 %v4319_v36, %v5920_v24  ;;  %v2467_v48 = vmul.f32 %v4319_v36, %v5922_v46 }
 0x1c2   :  { %v1715_v60 = vsel %vm593_vm4, %v1712_v62, %v1714_v23  ;;  %v1920_v40 = vadd.f32 %v1713_v30, %v1439_v19  ;;  %v2195_v63 = vrot.slane %v1992_v12, 2  ;;  %v2600_v59 = vmul.f32 %v4321_v37, %v5920_v24 }
 0x1c3   :  { %v1921_v33 = vadd.f32 %v1715_v60, %v1440_v32  ;;  %v2194_v56 = vsel %vm1075_vm5, %v2192_v21, %v2193_v25  ;;  %v2601_v57 = vmul.f32 %v4321_v37, %v5922_v46  ;;  %v2602_v52 = vmul.f32 %v4321_v37, %v5931_v14  ;;  %v4187_v32 = vld [vmem:[#allocation2 + $0x238] sm:$0x3] }
 0x1c4   :  { %v2196_v54 = vsel %vm1075_vm5, %v2193_v25, %v2195_v63  ;;  %v2401_v2 = vadd.f32 %v2194_v56, %v1920_v40  ;;  %v2802_v49 = vrot.slane %v2600_v59, 1  ;;  %v3081_v61 = vmul.f32 %v4329_v42, %v5920_v24 }
 0x1c5   :  { %v2402_v8 = vadd.f32 %v2196_v54, %v1921_v33  ;;  %v2803_v51 = vrot.slane %v2601_v57, 1  ;;  %v2805_v29 = vrot.slane %v2602_v52, 1  ;;  %v3082_v58 = vmul.f32 %v4329_v42, %v5922_v46 }
 0x1c6   :  { %v2530_v1 = vadd.f32 %v2466_v35, %v2401_v2  ;;  %v3083_v4 = vmul.f32 %v4329_v42, %v5931_v14  ;;  %v3283_v5 = vrot.slane %v3081_v61, 2  ;;  %v378_v45 = vmul.f32 %v4185_v47, %v4282_v10 }
 0x1c7   :  { %v2531_v55 = vadd.f32 %v2467_v48, %v2402_v8  ;;  %v2804_v38 = vsel %vm593_vm4, %v2802_v49, %v2803_v51  ;;  %v2806_v11 = vsel %vm593_vm4, %v2803_v51, %v2805_v29  ;;  %v3284_v43 = vrot.slane %v3082_v58, 2 }
 0x1c8   :  { %v3011_v13 = vadd.f32 %v2804_v38, %v2530_v1  ;;  %v3286_v16 = vrot.slane %v3083_v4, 2  ;;  %v379_v20 = vmul.f32 %v4186_v9, %v4282_v10  ;;  %v464_v19 = vmul.f32 %v4185_v47, %v4270_v6  ;;  %v5984_v1 = vld [vmem:[#allocation2 + $0x258] sm:$0xff]  ;;  %v5991_v38 = vld [vmem:[#allocation2 + $0x260] sm:$0xff] }
 0x1c9   :  { %v3012_v3 = vadd.f32 %v2806_v11, %v2531_v55  ;;  %v3285_v62 = vsel %vm1075_vm5, %v3283_v5, %v3284_v43  ;;  %v465_v27 = vmul.f32 %v4186_v9, %v4270_v6  ;;  %v466_v23 = vmul.f32 %v4187_v32, %v4270_v6 }
 0x1ca   :  { %v3287_v12 = vsel %vm1075_vm5, %v3284_v43, %v3286_v16  ;;  %v3492_v21 = vadd.f32 %v3285_v62, %v3011_v13  ;;  %v699_v30 = vrot.slane %v464_v19, 1  ;;  %v946_v25 = vmul.f32 %v4185_v47, %v4272_v7 }
 0x1cb   :  { %v3493_v35 = vadd.f32 %v3287_v12, %v3012_v3  ;;  %v700_v48 = vrot.slane %v465_v27, 1  ;;  %v702_v39 = vrot.slane %v466_v23, 1  ;;  %v947_v28 = vmul.f32 %v4186_v9, %v4272_v7  ;;  %v5998_v3 = vld [vmem:[#allocation2 + $0x268] sm:$0x3] }
 0x1cc   :  { %v3556_v60 = vpack.c.bf16 %v3492_v21, %v3492_v21  ;;  %v948_v40 = vmul.f32 %v4187_v32, %v4272_v7  ;;  %v1181_v63 = vrot.slane %v946_v25, 2  ;;  %v1407_v59 = vmul.f32 %v4296_v17, %v5716_v0 }
 0x1cd   :  { %v3557_v33 = vpack.c.bf16 %v3493_v35, %v3493_v35  ;;  %v701_v56 = vsel %vm593_vm4, %v699_v30, %v700_v48  ;;  %v703_v57 = vsel %vm593_vm4, %v700_v48, %v702_v39  ;;  %v1182_v52 = vrot.slane %v947_v28, 2 }
 0x1ce   :  { %v3686_v54 = vunpack.c.l.b16 %v3556_v60  ;;  %v860_v2 = vadd.f32 %v701_v56, %v378_v45  ;;  %v861_v49 = vadd.f32 %v703_v57, %v379_v20  ;;  %v1184_v61 = vrot.slane %v948_v40, 2 }
 0x1cf   :  { %v3687_v8 = vunpack.c.l.b16 %v3557_v33  ;;  %v1183_v51 = vsel %vm1075_vm5, %v1181_v63, %v1182_v52  ;;  %v1408_v29 = vmul.f32 %v4296_v17, %v5723_v26  ;;  %v1557_v58 = vmul.f32 %v4302_v22, %v5716_v0 }
 0x1d0   :  { %v1185_v4 = vsel %vm1075_vm5, %v1182_v52, %v1184_v61  ;;  %v1342_v5 = vadd.f32 %v1183_v51, %v860_v2  ;;  %v1558_v47 = vmul.f32 %v4302_v22, %v5723_v26  ;;  %v1559_v45 = vmul.f32 %v4302_v22, %v5730_v50 }
 0x1d1   :  { %v3745_v55 = vpack.c.b16 %v3687_v8, %v3686_v54  ;;  %v1343_v11 = vadd.f32 %v1185_v4, %v861_v49  ;;  %v1791_v43 = vrot.slane %v1557_v58, 1  ;;  %v2038_v13 = vmul.f32 %v4311_v31, %v5716_v0  ;;  %v4188_v8 = vld [vmem:[#allocation2 + $0x138] sm:$0xff] }
 0x1d2   :  { %v1471_v16 = vadd.f32 %v1407_v59, %v1342_v5  ;;  %v1792_v9 = vrot.slane %v1558_v47, 1  ;;  %v1794_v20 = vrot.slane %v1559_v45, 1  ;;  %v2039_v19 = vmul.f32 %v4311_v31, %v5723_v26 }
 0x1d3   :  { %4115 = vmatmul.msk.bf16.gmra.mxu0 %vm15_vm0, %v3745_v55  ;;  %v1472_v62 = vadd.f32 %v1408_v29, %v1343_v11  ;;  %v2040_v27 = vmul.f32 %v4311_v31, %v5730_v50  ;;  %v2272_v32 = vrot.slane %v2038_v13, 2  ;;  %v2498_v23 = vmul.f32 %v4319_v36, %v5984_v1  ;;  %v4189_v55 = vld [vmem:[#allocation2 + $0x140] sm:$0xff] }
 0x1d4   :  { %v1793_v0 = vsel %vm593_vm4, %v1791_v43, %v1792_v9  ;;  %v1795_v12 = vsel %vm593_vm4, %v1792_v9, %v1794_v20  ;;  %v2273_v21 = vrot.slane %v2039_v19, 2  ;;  %v2499_v26 = vmul.f32 %v4319_v36, %v5991_v38  ;;  %v4190_v20 = vld [vmem:[#allocation2 + $0x148] sm:$0x3] }
 0x1d5   :  { %v1952_v30 = vadd.f32 %v1793_v0, %v1471_v16  ;;  %v1953_v25 = vadd.f32 %v1795_v12, %v1472_v62  ;;  %v2275_v35 = vrot.slane %v2040_v27, 2  ;;  %v2648_v48 = vmul.f32 %v4321_v37, %v5984_v1 }
 0x1d6   :  { %v2274_v50 = vsel %vm1075_vm5, %v2272_v32, %v2273_v21  ;;  %v2649_v39 = vmul.f32 %v4321_v37, %v5991_v38  ;;  %v2650_v28 = vmul.f32 %v4321_v37, %v5998_v3  ;;  %v3129_v60 = vmul.f32 %v4329_v42, %v5984_v1 }
 0x1d7   :  { %v2276_v40 = vsel %vm1075_vm5, %v2273_v21, %v2275_v35  ;;  %v2433_v63 = vadd.f32 %v2274_v50, %v1952_v30  ;;  %v2882_v59 = vrot.slane %v2648_v48, 1  ;;  %v3130_v33 = vmul.f32 %v4329_v42, %v5991_v38 }
 0x1d8   :  { %v2434_v56 = vadd.f32 %v2276_v40, %v1953_v25  ;;  %v2883_v57 = vrot.slane %v2649_v39, 1  ;;  %v2885_v52 = vrot.slane %v2650_v28, 1  ;;  %v3131_v54 = vmul.f32 %v4329_v42, %v5998_v3 }
 0x1d9   :  { %v2562_v2 = vadd.f32 %v2498_v23, %v2433_v63  ;;  %v3363_v49 = vrot.slane %v3129_v60, 2  ;;  %v3364_v61 = vrot.slane %v3130_v33, 2  ;;  %v362_v51 = vmul.f32 %v4188_v8, %v4282_v10 }
 0x1da   :  { %v2563_v29 = vadd.f32 %v2499_v26, %v2434_v56  ;;  %v2884_v58 = vsel %vm593_vm4, %v2882_v59, %v2883_v57  ;;  %v2886_v4 = vsel %vm593_vm4, %v2883_v57, %v2885_v52  ;;  %v3366_v5 = vrot.slane %v3131_v54, 2 }
 0x1db   :  { %v3043_v47 = vadd.f32 %v2884_v58, %v2562_v2  ;;  %v3365_v45 = vsel %vm1075_vm5, %v3363_v49, %v3364_v61  ;;  %v363_v11 = vmul.f32 %v4189_v55, %v4282_v10  ;;  %v440_v43 = vmul.f32 %v4188_v8, %v4270_v6  ;;  %v6044_v2 = vld [vmem:[#allocation2 + $0x168] sm:$0xff]  ;;  %v6050_v58 = vld [vmem:[#allocation2 + $0x170] sm:$0xff] }
 0x1dc   :  { %v3044_v13 = vadd.f32 %v2886_v4, %v2563_v29  ;;  %v3367_v16 = vsel %vm1075_vm5, %v3364_v61, %v3366_v5  ;;  %v441_v9 = vmul.f32 %v4189_v55, %v4270_v6  ;;  %v442_v19 = vmul.f32 %v4190_v20, %v4270_v6 }
 0x1dd   :  { %v3524_v62 = vadd.f32 %v3365_v45, %v3043_v47  ;;  %v659_v27 = vrot.slane %v440_v43, 1  ;;  %v922_v32 = vmul.f32 %v4188_v8, %v4272_v7  ;;  %v923_v23 = vmul.f32 %v4189_v55, %v4272_v7 }
 0x1de   :  { %v3525_v0 = vadd.f32 %v3367_v16, %v3044_v13  ;;  %v660_v12 = vrot.slane %v441_v9, 1  ;;  %v662_v21 = vrot.slane %v442_v19, 1  ;;  %v924_v26 = vmul.f32 %v4190_v20, %v4272_v7  ;;  %v6057_v13 = vld [vmem:[#allocation2 + $0x178] sm:$0x3] }
 0x1df   :  { %v3588_v30 = vpack.c.bf16 %v3524_v62, %v3524_v62  ;;  %v1141_v25 = vrot.slane %v922_v32, 2  ;;  %v1142_v35 = vrot.slane %v923_v23, 2  ;;  %v1391_v48 = vmul.f32 %v4296_v17, %v5782_v44 }
 0x1e0   :  { %v3589_v50 = vpack.c.bf16 %v3525_v0, %v3525_v0  ;;  %v661_v39 = vsel %vm593_vm4, %v659_v27, %v660_v12  ;;  %v663_v28 = vsel %vm593_vm4, %v660_v12, %v662_v21  ;;  %v1144_v60 = vrot.slane %v924_v26, 2 }
 0x1e1   :  { %v3718_v40 = vunpack.c.l.b16 %v3588_v30  ;;  %v844_v63 = vadd.f32 %v661_v39, %v362_v51  ;;  %v845_v59 = vadd.f32 %v663_v28, %v363_v11  ;;  %v1143_v33 = vsel %vm1075_vm5, %v1141_v25, %v1142_v35 }
 0x1e2   :  { %v3719_v56 = vunpack.c.l.b16 %v3589_v50  ;;  %v1145_v57 = vsel %vm1075_vm5, %v1142_v35, %v1144_v60  ;;  %v1392_v52 = vmul.f32 %v4296_v17, %v5789_v34  ;;  %v1533_v54 = vmul.f32 %v4302_v22, %v5782_v44 }
 0x1e3   :  { %v1326_v49 = vadd.f32 %v1143_v33, %v844_v63  ;;  %v1327_v61 = vadd.f32 %v1145_v57, %v845_v59  ;;  %v1534_v8 = vmul.f32 %v4302_v22, %v5789_v34  ;;  %v1535_v51 = vmul.f32 %v4302_v22, %v5797_v41 }
 0x1e4   :  { %v3761_v29 = vpack.c.b16 %v3719_v56, %v3718_v40  ;;  %v1751_v4 = vrot.slane %v1533_v54, 1  ;;  %v2014_v5 = vmul.f32 %v4311_v31, %v5782_v44  ;;  %v2015_v47 = vmul.f32 %v4311_v31, %v5789_v34  ;;  %v4191_v56 = vld [vmem:[#allocation2 + $0x2e8] sm:$0xff] }
 0x1e5   :  { %v1455_v45 = vadd.f32 %v1391_v48, %v1326_v49  ;;  %v1456_v55 = vadd.f32 %v1392_v52, %v1327_v61  ;;  %v1752_v11 = vrot.slane %v1534_v8, 1  ;;  %v1754_v43 = vrot.slane %v1535_v51, 1  ;;  %v4192_v61 = vld [vmem:[#allocation2 + $0x2f0] sm:$0xff] }
 0x1e6   :  { %4131 = vmatmul.msk.bf16.gmra.mxu2 %vm15_vm0, %v3761_v29  ;;  %v2016_v16 = vmul.f32 %v4311_v31, %v5797_v41  ;;  %v2232_v9 = vrot.slane %v2014_v5, 2  ;;  %v2233_v20 = vrot.slane %v2015_v47, 2  ;;  %v2482_v19 = vmul.f32 %v4319_v36, %v6044_v2 }
 0x1e7   :  { %v1753_v44 = vsel %vm593_vm4, %v1751_v4, %v1752_v11  ;;  %v1755_v34 = vsel %vm593_vm4, %v1752_v11, %v1754_v43  ;;  %v2483_v62 = vmul.f32 %v4319_v36, %v6050_v58  ;;  %v2624_v27 = vmul.f32 %v4321_v37, %v6044_v2 }
 0x1e8   :  { %v1936_v32 = vadd.f32 %v1753_v44, %v1455_v45  ;;  %v1937_v23 = vadd.f32 %v1755_v34, %v1456_v55  ;;  %v2234_v0 = vsel %vm1075_vm5, %v2232_v9, %v2233_v20  ;;  %v2235_v41 = vrot.slane %v2016_v16, 2  ;;  %v4193_v55 = vld [vmem:[#allocation2 + $0x2f8] sm:$0x3] }
 0x1e9   :  { %v2625_v12 = vmul.f32 %v4321_v37, %v6050_v58  ;;  %v2626_v21 = vmul.f32 %v4321_v37, %v6057_v13  ;;  %v2842_v26 = vrot.slane %v2624_v27, 1  ;;  %v3105_v30 = vmul.f32 %v4329_v42, %v6044_v2 }
 0x1ea   :  { %v2236_v25 = vsel %vm1075_vm5, %v2233_v20, %v2235_v41  ;;  %v2417_v35 = vadd.f32 %v2234_v0, %v1936_v32  ;;  %v3106_v48 = vmul.f32 %v4329_v42, %v6050_v58  ;;  %v3107_v50 = vmul.f32 %v4329_v42, %v6057_v13 }
 0x1eb   :  { %v2418_v39 = vadd.f32 %v2236_v25, %v1937_v23  ;;  %v2843_v28 = vrot.slane %v2625_v12, 1  ;;  %v2845_v60 = vrot.slane %v2626_v21, 1  ;;  %v3323_v40 = vrot.slane %v3105_v30, 2 }
 0x1ec   :  { %v2546_v63 = vadd.f32 %v2482_v19, %v2417_v35  ;;  %v3324_v59 = vrot.slane %v3106_v48, 2  ;;  %v3326_v33 = vrot.slane %v3107_v50, 2  ;;  %v394_v57 = vmul.f32 %v4191_v56, %v4282_v10 }
 0x1ed   :  { %v2547_v52 = vadd.f32 %v2483_v62, %v2418_v39  ;;  %v2844_v54 = vsel %vm593_vm4, %v2842_v26, %v2843_v28  ;;  %v2846_v49 = vsel %vm593_vm4, %v2843_v28, %v2845_v60  ;;  %v395_v8 = vmul.f32 %v4192_v61, %v4282_v10 }
 0x1ee   :  { %v3027_v51 = vadd.f32 %v2844_v54, %v2546_v63  ;;  %v3325_v29 = vsel %vm1075_vm5, %v3323_v40, %v3324_v59  ;;  %v3327_v4 = vsel %vm1075_vm5, %v3324_v59, %v3326_v33  ;;  %v488_v5 = vmul.f32 %v4191_v56, %v4270_v6  ;;  %v6105_v63 = vld [vmem:[#allocation2 + $0x318] sm:$0xff]  ;;  %v6111_v54 = vld [vmem:[#allocation2 + $0x320] sm:$0xff] }
 0x1ef   :  { %v3028_v47 = vadd.f32 %v2846_v49, %v2547_v52  ;;  %v489_v45 = vmul.f32 %v4192_v61, %v4270_v6  ;;  %v490_v11 = vmul.f32 %v4193_v55, %v4270_v6  ;;  %v970_v43 = vmul.f32 %v4191_v56, %v4272_v7 }
 0x1f0   :  { %v3508_v16 = vadd.f32 %v3325_v29, %v3027_v51  ;;  %v739_v9 = vrot.slane %v488_v5, 1  ;;  %v971_v20 = vmul.f32 %v4192_v61, %v4272_v7  ;;  %v972_v19 = vmul.f32 %v4193_v55, %v4272_v7 }
 0x1f1   :  { %v3509_v44 = vadd.f32 %v3327_v4, %v3028_v47  ;;  %v740_v34 = vrot.slane %v489_v45, 1  ;;  %v742_v62 = vrot.slane %v490_v11, 1  ;;  %v1221_v27 = vrot.slane %v970_v43, 2  ;;  %v6118_v47 = vld [vmem:[#allocation2 + $0x328] sm:$0x3] }
 0x1f2   :  { %v3572_v32 = vpack.c.bf16 %v3508_v16, %v3508_v16  ;;  %v1222_v23 = vrot.slane %v971_v20, 2  ;;  %v1224_v0 = vrot.slane %v972_v19, 2  ;;  %v1423_v41 = vmul.f32 %v4296_v17, %v5853_v15  ;;  %v127_v20 = vld [vmem:[%s6859_s0 + $0xf8] sm:$0xff] }
 0x1f3   :  { %v3573_v12 = vpack.c.bf16 %v3509_v44, %v3509_v44  ;;  %v741_v21 = vsel %vm593_vm4, %v739_v9, %v740_v34  ;;  %v743_v26 = vsel %vm593_vm4, %v740_v34, %v742_v62  ;;  %v1424_v30 = vmul.f32 %v4296_v17, %v5859_v18  ;;  %191 = vst.msk [vmem:[#allocation2 + $0x189] sm:$0xff] %vm15_vm0, %v127_v20 }
 0x1f4   :  { %v3702_v25 = vunpack.c.l.b16 %v3572_v32  ;;  %v876_v35 = vadd.f32 %v741_v21, %v394_v57  ;;  %v877_v48 = vadd.f32 %v743_v26, %v395_v8  ;;  %v1223_v50 = vsel %vm1075_vm5, %v1221_v27, %v1222_v23 }
 0x1f5   :  { %v3703_v39 = vunpack.c.l.b16 %v3573_v12  ;;  %v1225_v28 = vsel %vm1075_vm5, %v1222_v23, %v1224_v0  ;;  %v1581_v60 = vmul.f32 %v4302_v22, %v5853_v15  ;;  %v1582_v40 = vmul.f32 %v4302_v22, %v5859_v18 }
 0x1f6   :  { %v1358_v59 = vadd.f32 %v1223_v50, %v876_v35  ;;  %v1359_v33 = vadd.f32 %v1225_v28, %v877_v48  ;;  %v1583_v56 = vmul.f32 %v4302_v22, %v5866_v53  ;;  %v2062_v57 = vmul.f32 %v4311_v31, %v5853_v15 }
 0x1f7   :  { %v3753_v52 = vpack.c.b16 %v3703_v39, %v3702_v25  ;;  %v1831_v49 = vrot.slane %v1581_v60, 1  ;;  %v1832_v61 = vrot.slane %v1582_v40, 1  ;;  %v2063_v8 = vmul.f32 %v4311_v31, %v5859_v18  ;;  %v4194_v60 = vld [vmem:[#allocation2 + $0x90] sm:$0xff] }
 0x1f8   :  { %v1487_v51 = vadd.f32 %v1423_v41, %v1358_v59  ;;  %v1488_v29 = vadd.f32 %v1424_v30, %v1359_v33  ;;  %v1834_v4 = vrot.slane %v1583_v56, 1  ;;  %v2064_v5 = vmul.f32 %v4311_v31, %v5866_v53  ;;  %v126_v53 = vld [vmem:[%s6859_s0 + $0xf0] sm:$0xff] }
 0x1f9   :  { %4123 = vmatmul.msk.bf16.gmra.mxu1 %vm15_vm0, %v3753_v52  ;;  %v1833_v15 = vsel %vm593_vm4, %v1831_v49, %v1832_v61  ;;  %v2312_v45 = vrot.slane %v2062_v57, 2  ;;  %v2313_v55 = vrot.slane %v2063_v8, 2  ;;  %v2514_v11 = vmul.f32 %v4319_v36, %v6105_v63  ;;  %190 = vst.msk [vmem:[#allocation2 + $0x181] sm:$0xff] %vm15_vm0, %v126_v53  ;;  %v4195_v57 = vld [vmem:[#allocation2 + $0x98] sm:$0xff] }
 0x1fa   :  { %v1835_v43 = vsel %vm593_vm4, %v1832_v61, %v1834_v4  ;;  %v1968_v18 = vadd.f32 %v1833_v15, %v1487_v51  ;;  %v2315_v16 = vrot.slane %v2064_v5, 2  ;;  %v2515_v9 = vmul.f32 %v4319_v36, %v6111_v54  ;;  %v4196_v5 = vld [vmem:[#allocation2 + $0xa0] sm:$0x3] }
 0x1fb   :  { %v1969_v19 = vadd.f32 %v1835_v43, %v1488_v29  ;;  %v2314_v44 = vsel %vm1075_vm5, %v2312_v45, %v2313_v55  ;;  %v2672_v34 = vmul.f32 %v4321_v37, %v6105_v63  ;;  %v2673_v62 = vmul.f32 %v4321_v37, %v6111_v54 }
 0x1fc   :  { %v2316_v27 = vsel %vm1075_vm5, %v2313_v55, %v2315_v16  ;;  %v2449_v32 = vadd.f32 %v2314_v44, %v1968_v18  ;;  %v2674_v23 = vmul.f32 %v4321_v37, %v6118_v47  ;;  %v3153_v0 = vmul.f32 %v4329_v42, %v6105_v63 }
 0x1fd   :  { %v2450_v41 = vadd.f32 %v2316_v27, %v1969_v19  ;;  %v2922_v12 = vrot.slane %v2672_v34, 1  ;;  %v2923_v21 = vrot.slane %v2673_v62, 1  ;;  %v3154_v26 = vmul.f32 %v4329_v42, %v6111_v54 }
 0x1fe   :  { %v2578_v30 = vadd.f32 %v2514_v11, %v2449_v32  ;;  %v2925_v25 = vrot.slane %v2674_v23, 1  ;;  %v3155_v35 = vmul.f32 %v4329_v42, %v6118_v47  ;;  %v3403_v48 = vrot.slane %v3153_v0, 2 }
 0x1ff   :  { %v2579_v50 = vadd.f32 %v2515_v9, %v2450_v41  ;;  %v2924_v39 = vsel %vm593_vm4, %v2922_v12, %v2923_v21  ;;  %v3404_v28 = vrot.slane %v3154_v26, 2  ;;  %v348_v40 = vmul.f32 %v4194_v60, %v4282_v10 }
 0x200   :  { %v2926_v59 = vsel %vm593_vm4, %v2923_v21, %v2925_v25  ;;  %v3059_v33 = vadd.f32 %v2924_v39, %v2578_v30  ;;  %v3406_v56 = vrot.slane %v3155_v35, 2  ;;  %v349_v52 = vmul.f32 %v4195_v57, %v4282_v10 }
 0x201   :  { %v3060_v49 = vadd.f32 %v2926_v59, %v2579_v50  ;;  %v3405_v61 = vsel %vm1075_vm5, %v3403_v48, %v3404_v28  ;;  %v419_v8 = vmul.f32 %v4194_v60, %v4270_v6  ;;  %v420_v51 = vmul.f32 %v4195_v57, %v4270_v6 }
 0x202   :  { %v3407_v29 = vsel %vm1075_vm5, %v3404_v28, %v3406_v56  ;;  %v3540_v4 = vadd.f32 %v3405_v61, %v3059_v33  ;;  %v421_v15 = vmul.f32 %v4196_v5, %v4270_v6  ;;  %v901_v45 = vmul.f32 %v4194_v60, %v4272_v7 }
 0x203   :  { %v3541_v55 = vadd.f32 %v3407_v29, %v3060_v49  ;;  %v624_v11 = vrot.slane %v419_v8, 1  ;;  %v625_v43 = vrot.slane %v420_v51, 1  ;;  %v902_v18 = vmul.f32 %v4195_v57, %v4272_v7  ;;  %v6182_v29 = vld [vmem:[#allocation2 + $0xc0] sm:$0xff] }
 0x204   :  { %v3604_v16 = vpack.c.bf16 %v3540_v4, %v3540_v4  ;;  %v627_v9 = vrot.slane %v421_v15, 1  ;;  %v903_v53 = vmul.f32 %v4196_v5, %v4272_v7  ;;  %v1106_v20 = vrot.slane %v901_v45, 2  ;;  %v6186_v4 = vld [vmem:[#allocation2 + $0xc8] sm:$0xff]  ;;  %v158_v5 = vld [vmem:[%s6859_s0 + $0x1f0] sm:$0xff] }
 0x205   :  { %v3605_v19 = vpack.c.bf16 %v3541_v55, %v3541_v55  ;;  %v626_v44 = vsel %vm593_vm4, %v624_v11, %v625_v43  ;;  %v1107_v34 = vrot.slane %v902_v18, 2  ;;  %v1377_v62 = vmul.f32 %v4296_v17, %v5920_v24  ;;  %222 = vst.msk [vmem:[#allocation2 + $0x331] sm:$0xff] %vm15_vm0, %v158_v5 }
 0x206   :  { %v3734_v27 = vunpack.c.l.b16 %v3604_v16  ;;  %v628_v32 = vsel %vm593_vm4, %v625_v43, %v627_v9  ;;  %v830_v23 = vadd.f32 %v626_v44, %v348_v40  ;;  %v1109_v0 = vrot.slane %v903_v53, 2  ;;  %v6203_v9 = vld [vmem:[#allocation2 + $0xd0] sm:$0x3] }
 0x207   :  { %v3735_v41 = vunpack.c.l.b16 %v3605_v19  ;;  %v831_v12 = vadd.f32 %v628_v32, %v349_v52  ;;  %v1108_v21 = vsel %vm1075_vm5, %v1106_v20, %v1107_v34  ;;  %v1378_v26 = vmul.f32 %v4296_v17, %v5922_v46 }
 0x208   :  { %v1110_v30 = vsel %vm1075_vm5, %v1107_v34, %v1109_v0  ;;  %v1312_v25 = vadd.f32 %v1108_v21, %v830_v23  ;;  %v1512_v35 = vmul.f32 %v4302_v22, %v5920_v24  ;;  %v1513_v48 = vmul.f32 %v4302_v22, %v5922_v46  ;;  %v4200_v21 = vld [vmem:[#allocation2 + $0x240] sm:$0xff] }
 0x209   :  { %v3769_v50 = vpack.c.b16 %v3735_v41, %v3734_v27  ;;  %v1313_v39 = vadd.f32 %v1110_v30, %v831_v12  ;;  %v1514_v28 = vmul.f32 %v4302_v22, %v5931_v14  ;;  %v1993_v60 = vmul.f32 %v4311_v31, %v5920_v24 }
 0x20a   :  { %v1441_v40 = vadd.f32 %v1377_v62, %v1312_v25  ;;  %v1716_v59 = vrot.slane %v1512_v35, 1  ;;  %v1717_v33 = vrot.slane %v1513_v48, 1  ;;  %v1994_v56 = vmul.f32 %v4311_v31, %v5922_v46 }
 0x20b   :  { %4139 = vmatmul.msk.bf16.gmra.mxu3 %vm15_vm0, %v3769_v50  ;;  %v1442_v57 = vadd.f32 %v1378_v26, %v1313_v39  ;;  %v1719_v52 = vrot.slane %v1514_v28, 1  ;;  %v1995_v49 = vmul.f32 %v4311_v31, %v5931_v14  ;;  %v2197_v61 = vrot.slane %v1993_v60, 2  ;;  %v159_v14 = vld [vmem:[%s6859_s0 + $0x1f8] sm:$0xff]  ;;  %v4201_v28 = vld [vmem:[#allocation2 + $0x248] sm:$0xff] }
 0x20c   :  { %v1718_v8 = vsel %vm593_vm4, %v1716_v59, %v1717_v33  ;;  %v2198_v51 = vrot.slane %v1994_v56, 2  ;;  %v2468_v24 = vmul.f32 %v6182_v29, %v4319_v36  ;;  %v2469_v46 = vmul.f32 %v6186_v4, %v4319_v36  ;;  %223 = vst.msk [vmem:[#allocation2 + $0x339] sm:$0xff] %vm15_vm0, %v159_v14 }
 0x20d   :  { %v1720_v15 = vsel %vm593_vm4, %v1717_v33, %v1719_v52  ;;  %v1922_v45 = vadd.f32 %v1718_v8, %v1441_v40  ;;  %v2200_v55 = vrot.slane %v1995_v49, 2  ;;  %v2603_v11 = vmul.f32 %v6182_v29, %v4321_v37 }
 0x20e   :  { %v1923_v43 = vadd.f32 %v1720_v15, %v1442_v57  ;;  %v2199_v18 = vsel %vm1075_vm5, %v2197_v61, %v2198_v51  ;;  %v2604_v16 = vmul.f32 %v6186_v4, %v4321_v37  ;;  %v2605_v53 = vmul.f32 %v6203_v9, %v4321_v37  ;;  %v4202_v57 = vld [vmem:[#allocation2 + $0x250] sm:$0x3] }
 0x20f   :  { %v2201_v20 = vsel %vm1075_vm5, %v2198_v51, %v2200_v55  ;;  %v2403_v19 = vadd.f32 %v2199_v18, %v1922_v45  ;;  %v2807_v44 = vrot.slane %v2603_v11, 1  ;;  %v3084_v34 = vmul.f32 %v6182_v29, %v4329_v42 }
 0x210   :  { %v2404_v62 = vadd.f32 %v2201_v20, %v1923_v43  ;;  %v2808_v27 = vrot.slane %v2604_v16, 1  ;;  %v2810_v32 = vrot.slane %v2605_v53, 1  ;;  %v3085_v23 = vmul.f32 %v6186_v4, %v4329_v42 }
 0x211   :  { %v2532_v0 = vadd.f32 %v2468_v24, %v2403_v19  ;;  %v3086_v41 = vmul.f32 %v6203_v9, %v4329_v42  ;;  %v3288_v12 = vrot.slane %v3084_v34, 2  ;;  %v380_v26 = vmul.f32 %v4200_v21, %v4282_v10 }
 0x212   :  { %v2533_v30 = vadd.f32 %v2469_v46, %v2404_v62  ;;  %v2809_v25 = vsel %vm593_vm4, %v2807_v44, %v2808_v27  ;;  %v2811_v35 = vsel %vm593_vm4, %v2808_v27, %v2810_v32  ;;  %v3289_v48 = vrot.slane %v3085_v23, 2 }
 0x213   :  { %v3013_v50 = vadd.f32 %v2809_v25, %v2532_v0  ;;  %v3291_v39 = vrot.slane %v3086_v41, 2  ;;  %v381_v60 = vmul.f32 %v4201_v28, %v4282_v10  ;;  %v467_v40 = vmul.f32 %v4200_v21, %v4270_v6 }
 0x214   :  { %v3014_v59 = vadd.f32 %v2811_v35, %v2533_v30  ;;  %v3290_v33 = vsel %vm1075_vm5, %v3288_v12, %v3289_v48  ;;  %v468_v56 = vmul.f32 %v4201_v28, %v4270_v6  ;;  %v469_v52 = vmul.f32 %v4202_v57, %v4270_v6 }
 0x215   :  { %v3292_v49 = vsel %vm1075_vm5, %v3289_v48, %v3291_v39  ;;  %v3494_v61 = vadd.f32 %v3290_v33, %v3013_v50  ;;  %v704_v8 = vrot.slane %v467_v40, 1  ;;  %v949_v51 = vmul.f32 %v4200_v21, %v4272_v7  ;;  %v6248_v33 = vld [vmem:[#allocation2 + $0x270] sm:$0xff] }
 0x216   :  { %v3495_v24 = vadd.f32 %v3292_v49, %v3014_v59  ;;  %v705_v46 = vrot.slane %v468_v56, 1  ;;  %v707_v5 = vrot.slane %v469_v52, 1  ;;  %v950_v14 = vmul.f32 %v4201_v28, %v4272_v7  ;;  %v6254_v49 = vld [vmem:[#allocation2 + $0x278] sm:$0xff] }
 0x217   :  { %v3558_v15 = vpack.c.bf16 %v3494_v61, %v3494_v61  ;;  %v951_v45 = vmul.f32 %v4202_v57, %v4272_v7  ;;  %v1186_v55 = vrot.slane %v949_v51, 2  ;;  %v1409_v11 = vmul.f32 %v4296_v17, %v5984_v1 }
 0x218   :  { %v3559_v43 = vpack.c.bf16 %v3495_v24, %v3495_v24  ;;  %v706_v18 = vsel %vm593_vm4, %v704_v8, %v705_v46  ;;  %v708_v16 = vsel %vm593_vm4, %v705_v46, %v707_v5  ;;  %v1187_v53 = vrot.slane %v950_v14, 2  ;;  %v6263_v5 = vld [vmem:[#allocation2 + $0x280] sm:$0x3] }
 0x219   :  { %v3688_v20 = vunpack.c.l.b16 %v3558_v15  ;;  %v862_v19 = vadd.f32 %v706_v18, %v380_v26  ;;  %v863_v44 = vadd.f32 %v708_v16, %v381_v60  ;;  %v1189_v34 = vrot.slane %v951_v45, 2 }
 0x21a   :  { %v3689_v62 = vunpack.c.l.b16 %v3559_v43  ;;  %v1188_v27 = vsel %vm1075_vm5, %v1186_v55, %v1187_v53  ;;  %v1410_v32 = vmul.f32 %v4296_v17, %v5991_v38  ;;  %v1560_v23 = vmul.f32 %v4302_v22, %v5984_v1 }
 0x21b   :  { %v1190_v0 = vsel %vm1075_vm5, %v1187_v53, %v1189_v34  ;;  %v1344_v41 = vadd.f32 %v1188_v27, %v862_v19  ;;  %v1561_v12 = vmul.f32 %v4302_v22, %v5991_v38  ;;  %v1562_v21 = vmul.f32 %v4302_v22, %v5998_v3 }
 0x21c   :  { %v3746_v26 = vpack.c.b16 %v3689_v62, %v3688_v20  ;;  %v1345_v30 = vadd.f32 %v1190_v0, %v863_v44  ;;  %v1796_v25 = vrot.slane %v1560_v23, 1  ;;  %v2041_v35 = vmul.f32 %v4311_v31, %v5984_v1  ;;  %v4206_v62 = vld [vmem:[#allocation2 + $0x150] sm:$0xff] }
 0x21d   :  { %v1473_v48 = vadd.f32 %v1409_v11, %v1344_v41  ;;  %v1797_v50 = vrot.slane %v1561_v12, 1  ;;  %v1799_v39 = vrot.slane %v1562_v21, 1  ;;  %v2042_v28 = vmul.f32 %v4311_v31, %v5991_v38 }
 0x21e   :  { %4116 = vmatmul.msk.bf16.gmra.mxu0 %vm15_vm0, %v3746_v26  ;;  %v1474_v60 = vadd.f32 %v1410_v32, %v1345_v30  ;;  %v2043_v40 = vmul.f32 %v4311_v31, %v5998_v3  ;;  %v2277_v59 = vrot.slane %v2041_v35, 2  ;;  %v2500_v56 = vmul.f32 %v6248_v33, %v4319_v36  ;;  %v4207_v26 = vld [vmem:[#allocation2 + $0x158] sm:$0xff] }
 0x21f   :  { %v1798_v1 = vsel %vm593_vm4, %v1796_v25, %v1797_v50  ;;  %v1800_v57 = vsel %vm593_vm4, %v1797_v50, %v1799_v39  ;;  %v2278_v52 = vrot.slane %v2042_v28, 2  ;;  %v2501_v38 = vmul.f32 %v6254_v49, %v4319_v36  ;;  %v4208_v39 = vld [vmem:[#allocation2 + $0x160] sm:$0x3] }
 0x220   :  { %v1954_v61 = vadd.f32 %v1798_v1, %v1473_v48  ;;  %v1955_v8 = vadd.f32 %v1800_v57, %v1474_v60  ;;  %v2280_v51 = vrot.slane %v2043_v40, 2  ;;  %v2651_v3 = vmul.f32 %v6248_v33, %v4321_v37 }
 0x221   :  { %v2279_v24 = vsel %vm1075_vm5, %v2277_v59, %v2278_v52  ;;  %v2652_v46 = vmul.f32 %v6254_v49, %v4321_v37  ;;  %v2653_v14 = vmul.f32 %v6263_v5, %v4321_v37  ;;  %v3132_v15 = vmul.f32 %v6248_v33, %v4329_v42 }
 0x222   :  { %v2281_v45 = vsel %vm1075_vm5, %v2278_v52, %v2280_v51  ;;  %v2435_v55 = vadd.f32 %v2279_v24, %v1954_v61  ;;  %v2887_v11 = vrot.slane %v2651_v3, 1  ;;  %v3133_v43 = vmul.f32 %v6254_v49, %v4329_v42 }
 0x223   :  { %v2436_v18 = vadd.f32 %v2281_v45, %v1955_v8  ;;  %v2888_v16 = vrot.slane %v2652_v46, 1  ;;  %v2890_v53 = vrot.slane %v2653_v14, 1  ;;  %v3134_v20 = vmul.f32 %v6263_v5, %v4329_v42 }
 0x224   :  { %v2564_v19 = vadd.f32 %v2500_v56, %v2435_v55  ;;  %v3368_v44 = vrot.slane %v3132_v15, 2  ;;  %v3369_v34 = vrot.slane %v3133_v43, 2  ;;  %v364_v27 = vmul.f32 %v4206_v62, %v4282_v10 }
 0x225   :  { %v2565_v32 = vadd.f32 %v2501_v38, %v2436_v18  ;;  %v2889_v23 = vsel %vm593_vm4, %v2887_v11, %v2888_v16  ;;  %v2891_v0 = vsel %vm593_vm4, %v2888_v16, %v2890_v53  ;;  %v3371_v41 = vrot.slane %v3134_v20, 2 }
 0x226   :  { %v3045_v12 = vadd.f32 %v2889_v23, %v2564_v19  ;;  %v3370_v21 = vsel %vm1075_vm5, %v3368_v44, %v3369_v34  ;;  %v365_v30 = vmul.f32 %v4207_v26, %v4282_v10  ;;  %v443_v25 = vmul.f32 %v4206_v62, %v4270_v6  ;;  %v6296_v19 = vld [vmem:[#allocation2 + $0x180] sm:$0xff]  ;;  %v6302_v23 = vld [vmem:[#allocation2 + $0x188] sm:$0xff] }
 0x227   :  { %v3046_v35 = vadd.f32 %v2891_v0, %v2565_v32  ;;  %v3372_v48 = vsel %vm1075_vm5, %v3369_v34, %v3371_v41  ;;  %v444_v50 = vmul.f32 %v4207_v26, %v4270_v6  ;;  %v445_v28 = vmul.f32 %v4208_v39, %v4270_v6 }
 0x228   :  { %v3526_v60 = vadd.f32 %v3370_v21, %v3045_v12  ;;  %v664_v40 = vrot.slane %v443_v25, 1  ;;  %v925_v59 = vmul.f32 %v4206_v62, %v4272_v7  ;;  %v926_v56 = vmul.f32 %v4207_v26, %v4272_v7 }
 0x229   :  { %v3527_v1 = vadd.f32 %v3372_v48, %v3046_v35  ;;  %v665_v57 = vrot.slane %v444_v50, 1  ;;  %v667_v52 = vrot.slane %v445_v28, 1  ;;  %v927_v38 = vmul.f32 %v4208_v39, %v4272_v7  ;;  %v6309_v35 = vld [vmem:[#allocation2 + $0x190] sm:$0x3] }
 0x22a   :  { %v3590_v61 = vpack.c.bf16 %v3526_v60, %v3526_v60  ;;  %v1146_v8 = vrot.slane %v925_v59, 2  ;;  %v1147_v51 = vrot.slane %v926_v56, 2  ;;  %v1393_v3 = vmul.f32 %v4296_v17, %v6044_v2 }
 0x22b   :  { %v3591_v24 = vpack.c.bf16 %v3527_v1, %v3527_v1  ;;  %v666_v46 = vsel %vm593_vm4, %v664_v40, %v665_v57  ;;  %v668_v14 = vsel %vm593_vm4, %v665_v57, %v667_v52  ;;  %v1149_v15 = vrot.slane %v927_v38, 2 }
 0x22c   :  { %v3720_v45 = vunpack.c.l.b16 %v3590_v61  ;;  %v846_v55 = vadd.f32 %v666_v46, %v364_v27  ;;  %v847_v11 = vadd.f32 %v668_v14, %v365_v30  ;;  %v1148_v43 = vsel %vm1075_vm5, %v1146_v8, %v1147_v51 }
 0x22d   :  { %v3721_v18 = vunpack.c.l.b16 %v3591_v24  ;;  %v1150_v16 = vsel %vm1075_vm5, %v1147_v51, %v1149_v15  ;;  %v1394_v53 = vmul.f32 %v4296_v17, %v6050_v58  ;;  %v1536_v20 = vmul.f32 %v4302_v22, %v6044_v2 }
 0x22e   :  { %v1328_v44 = vadd.f32 %v1148_v43, %v846_v55  ;;  %v1329_v34 = vadd.f32 %v1150_v16, %v847_v11  ;;  %v1537_v62 = vmul.f32 %v4302_v22, %v6050_v58  ;;  %v1538_v27 = vmul.f32 %v4302_v22, %v6057_v13 }
 0x22f   :  { %v3762_v32 = vpack.c.b16 %v3721_v18, %v3720_v45  ;;  %v1756_v0 = vrot.slane %v1536_v20, 1  ;;  %v2017_v41 = vmul.f32 %v4311_v31, %v6044_v2  ;;  %v2018_v12 = vmul.f32 %v4311_v31, %v6050_v58  ;;  %v4209_v18 = vld [vmem:[#allocation2 + $0x300] sm:$0xff] }
 0x230   :  { %v1457_v21 = vadd.f32 %v1393_v3, %v1328_v44  ;;  %v1458_v26 = vadd.f32 %v1394_v53, %v1329_v34  ;;  %v1757_v30 = vrot.slane %v1537_v62, 1  ;;  %v1759_v25 = vrot.slane %v1538_v27, 1  ;;  %v4210_v34 = vld [vmem:[#allocation2 + $0x308] sm:$0xff] }
 0x231   :  { %4132 = vmatmul.msk.bf16.gmra.mxu2 %vm15_vm0, %v3762_v32  ;;  %v2019_v48 = vmul.f32 %v4311_v31, %v6057_v13  ;;  %v2237_v50 = vrot.slane %v2017_v41, 2  ;;  %v2238_v39 = vrot.slane %v2018_v12, 2  ;;  %v2484_v28 = vmul.f32 %v4319_v36, %v6296_v19 }
 0x232   :  { %v1758_v2 = vsel %vm593_vm4, %v1756_v0, %v1757_v30  ;;  %v1760_v58 = vsel %vm593_vm4, %v1757_v30, %v1759_v25  ;;  %v2485_v60 = vmul.f32 %v4319_v36, %v6302_v23  ;;  %v2627_v40 = vmul.f32 %v4321_v37, %v6296_v19 }
 0x233   :  { %v1938_v59 = vadd.f32 %v1758_v2, %v1457_v21  ;;  %v1939_v56 = vadd.f32 %v1760_v58, %v1458_v26  ;;  %v2239_v1 = vsel %vm1075_vm5, %v2237_v50, %v2238_v39  ;;  %v2240_v13 = vrot.slane %v2019_v48, 2  ;;  %v4211_v26 = vld [vmem:[#allocation2 + $0x310] sm:$0x3] }
 0x234   :  { %v2628_v57 = vmul.f32 %v4321_v37, %v6302_v23  ;;  %v2629_v52 = vmul.f32 %v4321_v37, %v6309_v35  ;;  %v2847_v38 = vrot.slane %v2627_v40, 1  ;;  %v3108_v61 = vmul.f32 %v4329_v42, %v6296_v19 }
 0x235   :  { %v2241_v8 = vsel %vm1075_vm5, %v2238_v39, %v2240_v13  ;;  %v2419_v51 = vadd.f32 %v2239_v1, %v1938_v59  ;;  %v3109_v3 = vmul.f32 %v4329_v42, %v6302_v23  ;;  %v3110_v24 = vmul.f32 %v4329_v42, %v6309_v35 }
 0x236   :  { %v2420_v46 = vadd.f32 %v2241_v8, %v1939_v56  ;;  %v2848_v14 = vrot.slane %v2628_v57, 1  ;;  %v2850_v15 = vrot.slane %v2629_v52, 1  ;;  %v3328_v45 = vrot.slane %v3108_v61, 2 }
 0x237   :  { %v2548_v55 = vadd.f32 %v2484_v28, %v2419_v51  ;;  %v3329_v11 = vrot.slane %v3109_v3, 2  ;;  %v3331_v43 = vrot.slane %v3110_v24, 2  ;;  %v396_v16 = vmul.f32 %v4209_v18, %v4282_v10 }
 0x238   :  { %v2549_v53 = vadd.f32 %v2485_v60, %v2420_v46  ;;  %v2849_v20 = vsel %vm593_vm4, %v2847_v38, %v2848_v14  ;;  %v2851_v44 = vsel %vm593_vm4, %v2848_v14, %v2850_v15  ;;  %v397_v62 = vmul.f32 %v4210_v34, %v4282_v10 }
 0x239   :  { %v3029_v27 = vadd.f32 %v2849_v20, %v2548_v55  ;;  %v3330_v32 = vsel %vm1075_vm5, %v3328_v45, %v3329_v11  ;;  %v3332_v0 = vsel %vm1075_vm5, %v3329_v11, %v3331_v43  ;;  %v491_v41 = vmul.f32 %v4209_v18, %v4270_v6  ;;  %v6357_v55 = vld [vmem:[#allocation2 + $0x330] sm:$0xff]  ;;  %v6363_v20 = vld [vmem:[#allocation2 + $0x338] sm:$0xff] }
 0x23a   :  { %v3030_v12 = vadd.f32 %v2851_v44, %v2549_v53  ;;  %v492_v21 = vmul.f32 %v4210_v34, %v4270_v6  ;;  %v493_v30 = vmul.f32 %v4211_v26, %v4270_v6  ;;  %v973_v25 = vmul.f32 %v4209_v18, %v4272_v7 }
 0x23b   :  { %v3510_v48 = vadd.f32 %v3330_v32, %v3029_v27  ;;  %v744_v50 = vrot.slane %v491_v41, 1  ;;  %v974_v39 = vmul.f32 %v4210_v34, %v4272_v7  ;;  %v975_v28 = vmul.f32 %v4211_v26, %v4272_v7 }
 0x23c   :  { %v3511_v2 = vadd.f32 %v3332_v0, %v3030_v12  ;;  %v745_v58 = vrot.slane %v492_v21, 1  ;;  %v747_v60 = vrot.slane %v493_v30, 1  ;;  %v1226_v40 = vrot.slane %v973_v25, 2  ;;  %v6370_v12 = vld [vmem:[#allocation2 + $0x340] sm:$0x3] }
 0x23d   :  { %v3574_v59 = vpack.c.bf16 %v3510_v48, %v3510_v48  ;;  %v1227_v56 = vrot.slane %v974_v39, 2  ;;  %v1229_v1 = vrot.slane %v975_v28, 2  ;;  %v1425_v13 = vmul.f32 %v4296_v17, %v6105_v63 }
 0x23e   :  { %v3575_v57 = vpack.c.bf16 %v3511_v2, %v3511_v2  ;;  %v746_v52 = vsel %vm593_vm4, %v744_v50, %v745_v58  ;;  %v748_v38 = vsel %vm593_vm4, %v745_v58, %v747_v60  ;;  %v1426_v61 = vmul.f32 %v4296_v17, %v6111_v54 }
 0x23f   :  { %v3704_v8 = vunpack.c.l.b16 %v3574_v59  ;;  %v878_v51 = vadd.f32 %v746_v52, %v396_v16  ;;  %v879_v3 = vadd.f32 %v748_v38, %v397_v62  ;;  %v1228_v24 = vsel %vm1075_vm5, %v1226_v40, %v1227_v56 }
 0x240   :  { %v3705_v46 = vunpack.c.l.b16 %v3575_v57  ;;  %v1230_v14 = vsel %vm1075_vm5, %v1227_v56, %v1229_v1  ;;  %v1584_v15 = vmul.f32 %v4302_v22, %v6105_v63  ;;  %v1585_v45 = vmul.f32 %v4302_v22, %v6111_v54 }
 0x241   :  { %v1360_v11 = vadd.f32 %v1228_v24, %v878_v51  ;;  %v1361_v43 = vadd.f32 %v1230_v14, %v879_v3  ;;  %v1586_v18 = vmul.f32 %v4302_v22, %v6118_v47  ;;  %v2065_v16 = vmul.f32 %v4311_v31, %v6105_v63 }
 0x242   :  { %v3754_v53 = vpack.c.b16 %v3705_v46, %v3704_v8  ;;  %v1836_v44 = vrot.slane %v1584_v15, 1  ;;  %v1837_v34 = vrot.slane %v1585_v45, 1  ;;  %v2066_v62 = vmul.f32 %v4311_v31, %v6111_v54  ;;  %v4212_v46 = vld [vmem:[#allocation2 + $0xa8] sm:$0xff] }
 0x243   :  { %v1489_v27 = vadd.f32 %v1425_v13, %v1360_v11  ;;  %v1490_v32 = vadd.f32 %v1426_v61, %v1361_v43  ;;  %v1839_v0 = vrot.slane %v1586_v18, 1  ;;  %v2067_v41 = vmul.f32 %v4311_v31, %v6118_v47  ;;  %v4213_v43 = vld [vmem:[#allocation2 + $0xb0] sm:$0xff] }
 0x244   :  { %4124 = vmatmul.msk.bf16.gmra.mxu1 %vm15_vm0, %v3754_v53  ;;  %v1838_v63 = vsel %vm593_vm4, %v1836_v44, %v1837_v34  ;;  %v2317_v21 = vrot.slane %v2065_v16, 2  ;;  %v2318_v26 = vrot.slane %v2066_v62, 2  ;;  %v2516_v30 = vmul.f32 %v4319_v36, %v6357_v55 }
 0x245   :  { %v1840_v25 = vsel %vm593_vm4, %v1837_v34, %v1839_v0  ;;  %v1970_v54 = vadd.f32 %v1838_v63, %v1489_v27  ;;  %v2320_v48 = vrot.slane %v2067_v41, 2  ;;  %v2517_v50 = vmul.f32 %v4319_v36, %v6363_v20 }
 0x246   :  { %v1971_v39 = vadd.f32 %v1840_v25, %v1490_v32  ;;  %v2319_v47 = vsel %vm1075_vm5, %v2317_v21, %v2318_v26  ;;  %v2675_v28 = vmul.f32 %v4321_v37, %v6357_v55  ;;  %v2676_v2 = vmul.f32 %v4321_v37, %v6363_v20  ;;  %v4214_v32 = vld [vmem:[#allocation2 + $0xb8] sm:$0x3] }
 0x247   :  { %v2321_v58 = vsel %vm1075_vm5, %v2318_v26, %v2320_v48  ;;  %v2451_v60 = vadd.f32 %v2319_v47, %v1970_v54  ;;  %v2677_v40 = vmul.f32 %v4321_v37, %v6370_v12  ;;  %v3156_v59 = vmul.f32 %v4329_v42, %v6357_v55 }
 0x248   :  { %v2452_v56 = vadd.f32 %v2321_v58, %v1971_v39  ;;  %v2927_v1 = vrot.slane %v2675_v28, 1  ;;  %v2928_v13 = vrot.slane %v2676_v2, 1  ;;  %v3157_v57 = vmul.f32 %v4329_v42, %v6363_v20 }
 0x249   :  { %v2580_v52 = vadd.f32 %v2516_v30, %v2451_v60  ;;  %v2930_v38 = vrot.slane %v2677_v40, 1  ;;  %v3158_v61 = vmul.f32 %v4329_v42, %v6370_v12  ;;  %v3408_v8 = vrot.slane %v3156_v59, 2 }
 0x24a   :  { %v2581_v51 = vadd.f32 %v2517_v50, %v2452_v56  ;;  %v2929_v3 = vsel %vm593_vm4, %v2927_v1, %v2928_v13  ;;  %v3409_v24 = vrot.slane %v3157_v57, 2  ;;  %v350_v14 = vmul.f32 %v4212_v46, %v4282_v10 }
 0x24b   :  { %v2931_v15 = vsel %vm593_vm4, %v2928_v13, %v2930_v38  ;;  %v3061_v45 = vadd.f32 %v2929_v3, %v2580_v52  ;;  %v3411_v11 = vrot.slane %v3158_v61, 2  ;;  %v351_v18 = vmul.f32 %v4213_v43, %v4282_v10 }
 0x24c   :  { %v3062_v16 = vadd.f32 %v2931_v15, %v2581_v51  ;;  %v3410_v53 = vsel %vm1075_vm5, %v3408_v8, %v3409_v24  ;;  %v422_v44 = vmul.f32 %v4212_v46, %v4270_v6  ;;  %v423_v34 = vmul.f32 %v4213_v43, %v4270_v6 }
 0x24d   :  { %v3412_v62 = vsel %vm1075_vm5, %v3409_v24, %v3411_v11  ;;  %v3542_v27 = vadd.f32 %v3410_v53, %v3061_v45  ;;  %v424_v0 = vmul.f32 %v4214_v32, %v4270_v6  ;;  %v904_v41 = vmul.f32 %v4212_v46, %v4272_v7 }
 0x24e   :  { %v3543_v63 = vadd.f32 %v3412_v62, %v3062_v16  ;;  %v629_v21 = vrot.slane %v422_v44, 1  ;;  %v630_v26 = vrot.slane %v423_v34, 1  ;;  %v905_v30 = vmul.f32 %v4213_v43, %v4272_v7  ;;  %v4215_v62 = vld [vmem:[#allocation2 + $0xd8] sm:$0xff] }
 0x24f   :  { %v3606_v25 = vpack.c.bf16 %v3542_v27, %v3542_v27  ;;  %v632_v54 = vrot.slane %v424_v0, 1  ;;  %v906_v48 = vmul.f32 %v4214_v32, %v4272_v7  ;;  %v1111_v50 = vrot.slane %v904_v41, 2  ;;  %v4216_v27 = vld [vmem:[#allocation2 + $0xe0] sm:$0xff] }
 0x250   :  { %v3607_v39 = vpack.c.bf16 %v3543_v63, %v3543_v63  ;;  %v631_v47 = vsel %vm593_vm4, %v629_v21, %v630_v26  ;;  %v1112_v28 = vrot.slane %v905_v30, 2  ;;  %v1379_v2 = vmul.f32 %v6182_v29, %v4296_v17  ;;  %v4217_v30 = vld [vmem:[#allocation2 + $0xe8] sm:$0x3] }
 0x251   :  { %v3736_v58 = vunpack.c.l.b16 %v3606_v25  ;;  %v633_v60 = vsel %vm593_vm4, %v630_v26, %v632_v54  ;;  %v832_v40 = vadd.f32 %v631_v47, %v350_v14  ;;  %v1114_v59 = vrot.slane %v906_v48, 2 }
 0x252   :  { %v3737_v56 = vunpack.c.l.b16 %v3607_v39  ;;  %v833_v1 = vadd.f32 %v633_v60, %v351_v18  ;;  %v1113_v13 = vsel %vm1075_vm5, %v1111_v50, %v1112_v28  ;;  %v1380_v57 = vmul.f32 %v6186_v4, %v4296_v17 }
 0x253   :  { %v1115_v52 = vsel %vm1075_vm5, %v1112_v28, %v1114_v59  ;;  %v1314_v38 = vadd.f32 %v1113_v13, %v832_v40  ;;  %v1515_v61 = vmul.f32 %v6182_v29, %v4302_v22  ;;  %v1516_v8 = vmul.f32 %v6186_v4, %v4302_v22 }
 0x254   :  { %v3770_v51 = vpack.c.b16 %v3737_v56, %v3736_v58  ;;  %v1315_v3 = vadd.f32 %v1115_v52, %v833_v1  ;;  %v1517_v24 = vmul.f32 %v6203_v9, %v4302_v22  ;;  %v1996_v46 = vmul.f32 %v6182_v29, %v4311_v31  ;;  %v4218_v56 = vld [vmem:[#allocation2 + $0x258] sm:$0xff] }
 0x255   :  { %v1443_v14 = vadd.f32 %v1379_v2, %v1314_v38  ;;  %v1721_v15 = vrot.slane %v1515_v61, 1  ;;  %v1722_v45 = vrot.slane %v1516_v8, 1  ;;  %v1997_v11 = vmul.f32 %v6186_v4, %v4311_v31 }
 0x256   :  { %4140 = vmatmul.msk.bf16.gmra.mxu3 %vm15_vm0, %v3770_v51  ;;  %v1444_v43 = vadd.f32 %v1380_v57, %v1315_v3  ;;  %v1724_v18 = vrot.slane %v1517_v24, 1  ;;  %v1998_v16 = vmul.f32 %v6203_v9, %v4311_v31  ;;  %v2202_v53 = vrot.slane %v1996_v46, 2  ;;  %v4219_v51 = vld [vmem:[#allocation2 + $0x260] sm:$0xff] }
 0x257   :  { %v1723_v44 = vsel %vm593_vm4, %v1721_v15, %v1722_v45  ;;  %v2203_v34 = vrot.slane %v1997_v11, 2  ;;  %v2470_v29 = vmul.f32 %v4215_v62, %v4319_v36  ;;  %v2471_v32 = vmul.f32 %v4216_v27, %v4319_v36 }
 0x258   :  { %v1725_v0 = vsel %vm593_vm4, %v1722_v45, %v1724_v18  ;;  %v1924_v4 = vadd.f32 %v1723_v44, %v1443_v14  ;;  %v2205_v41 = vrot.slane %v1998_v16, 2  ;;  %v2606_v63 = vmul.f32 %v4215_v62, %v4321_v37  ;;  %v4220_v45 = vld [vmem:[#allocation2 + $0x268] sm:$0x3] }
 0x259   :  { %v1925_v21 = vadd.f32 %v1725_v0, %v1444_v43  ;;  %v2204_v26 = vsel %vm1075_vm5, %v2202_v53, %v2203_v34  ;;  %v2607_v9 = vmul.f32 %v4216_v27, %v4321_v37  ;;  %v2608_v25 = vmul.f32 %v4217_v30, %v4321_v37 }
 0x25a   :  { %v2206_v54 = vsel %vm1075_vm5, %v2203_v34, %v2205_v41  ;;  %v2405_v48 = vadd.f32 %v2204_v26, %v1924_v4  ;;  %v2812_v50 = vrot.slane %v2606_v63, 1  ;;  %v3087_v39 = vmul.f32 %v4215_v62, %v4329_v42 }
 0x25b   :  { %v2406_v47 = vadd.f32 %v2206_v54, %v1925_v21  ;;  %v2813_v28 = vrot.slane %v2607_v9, 1  ;;  %v2815_v2 = vrot.slane %v2608_v25, 1  ;;  %v3088_v58 = vmul.f32 %v4216_v27, %v4329_v42 }
 0x25c   :  { %v2534_v60 = vadd.f32 %v2470_v29, %v2405_v48  ;;  %v3089_v40 = vmul.f32 %v4217_v30, %v4329_v42  ;;  %v3293_v59 = vrot.slane %v3087_v39, 2  ;;  %v382_v1 = vmul.f32 %v4218_v56, %v4282_v10 }
 0x25d   :  { %v2535_v13 = vadd.f32 %v2471_v32, %v2406_v47  ;;  %v2814_v57 = vsel %vm593_vm4, %v2812_v50, %v2813_v28  ;;  %v2816_v52 = vsel %vm593_vm4, %v2813_v28, %v2815_v2  ;;  %v3294_v38 = vrot.slane %v3088_v58, 2 }
 0x25e   :  { %v3015_v61 = vadd.f32 %v2814_v57, %v2534_v60  ;;  %v3296_v8 = vrot.slane %v3089_v40, 2  ;;  %v383_v3 = vmul.f32 %v4219_v51, %v4282_v10  ;;  %v470_v24 = vmul.f32 %v4218_v56, %v4270_v6 }
 0x25f   :  { %v3016_v46 = vadd.f32 %v2816_v52, %v2535_v13  ;;  %v3295_v14 = vsel %vm1075_vm5, %v3293_v59, %v3294_v38  ;;  %v471_v15 = vmul.f32 %v4219_v51, %v4270_v6  ;;  %v472_v11 = vmul.f32 %v4220_v45, %v4270_v6 }
 0x260   :  { %v3297_v43 = vsel %vm1075_vm5, %v3294_v38, %v3296_v8  ;;  %v3496_v18 = vadd.f32 %v3295_v14, %v3015_v61  ;;  %v709_v16 = vrot.slane %v470_v24, 1  ;;  %v952_v53 = vmul.f32 %v4218_v56, %v4272_v7 }
 0x261   :  { %v3497_v44 = vadd.f32 %v3297_v43, %v3016_v46  ;;  %v710_v34 = vrot.slane %v471_v15, 1  ;;  %v712_v62 = vrot.slane %v472_v11, 1  ;;  %v953_v29 = vmul.f32 %v4219_v51, %v4272_v7  ;;  %v4222_v15 = vld [vmem:[#allocation2 + $0x290] sm:$0xff] }
 0x262   :  { %v3560_v27 = vpack.c.bf16 %v3496_v18, %v3496_v18  ;;  %v954_v32 = vmul.f32 %v4220_v45, %v4272_v7  ;;  %v1191_v0 = vrot.slane %v952_v53, 2  ;;  %v1411_v4 = vmul.f32 %v6248_v33, %v4296_v17  ;;  %v4223_v53 = vld [vmem:[#allocation2 + $0x298] sm:$0x3] }
 0x263   :  { %v3561_v41 = vpack.c.bf16 %v3497_v44, %v3497_v44  ;;  %v711_v63 = vsel %vm593_vm4, %v709_v16, %v710_v34  ;;  %v713_v21 = vsel %vm593_vm4, %v710_v34, %v712_v62  ;;  %v1192_v26 = vrot.slane %v953_v29, 2 }
 0x264   :  { %v3690_v9 = vunpack.c.l.b16 %v3560_v27  ;;  %v864_v30 = vadd.f32 %v711_v63, %v382_v1  ;;  %v865_v25 = vadd.f32 %v713_v21, %v383_v3  ;;  %v1194_v54 = vrot.slane %v954_v32, 2  ;;  %v4221_v3 = vld [vmem:[#allocation2 + $0x288] sm:$0xff] }
 0x265   :  { %v3691_v48 = vunpack.c.l.b16 %v3561_v41  ;;  %v1193_v50 = vsel %vm1075_vm5, %v1191_v0, %v1192_v26  ;;  %v1412_v39 = vmul.f32 %v6254_v49, %v4296_v17  ;;  %v1563_v47 = vmul.f32 %v6248_v33, %v4302_v22 }
 0x266   :  { %v1195_v28 = vsel %vm1075_vm5, %v1192_v26, %v1194_v54  ;;  %v1346_v2 = vadd.f32 %v1193_v50, %v864_v30  ;;  %v1564_v58 = vmul.f32 %v6254_v49, %v4302_v22  ;;  %v1565_v60 = vmul.f32 %v6263_v5, %v4302_v22  ;;  %v4224_v30 = vld [vmem:[#allocation2 + $0x168] sm:$0xff] }
 0x267   :  { %v3747_v40 = vpack.c.b16 %v3691_v48, %v3690_v9  ;;  %v1347_v59 = vadd.f32 %v1195_v28, %v865_v25  ;;  %v1801_v56 = vrot.slane %v1563_v47, 1  ;;  %v2044_v1 = vmul.f32 %v6248_v33, %v4311_v31 }
 0x268   :  { %v1475_v13 = vadd.f32 %v1411_v4, %v1346_v2  ;;  %v1802_v57 = vrot.slane %v1564_v58, 1  ;;  %v1804_v52 = vrot.slane %v1565_v60, 1  ;;  %v2045_v38 = vmul.f32 %v6254_v49, %v4311_v31  ;;  %v4225_v2 = vld [vmem:[#allocation2 + $0x170] sm:$0xff] }
 0x269   :  { %4117 = vmatmul.msk.bf16.gmra.mxu0 %vm15_vm0, %v3747_v40  ;;  %v1476_v61 = vadd.f32 %v1412_v39, %v1347_v59  ;;  %v2046_v8 = vmul.f32 %v6263_v5, %v4311_v31  ;;  %v2282_v51 = vrot.slane %v2044_v1, 2  ;;  %v2502_v24 = vmul.f32 %v4221_v3, %v4319_v36  ;;  %v4226_v1 = vld [vmem:[#allocation2 + $0x178] sm:$0x3] }
 0x26a   :  { %v1803_v46 = vsel %vm593_vm4, %v1801_v56, %v1802_v57  ;;  %v1805_v33 = vsel %vm593_vm4, %v1802_v57, %v1804_v52  ;;  %v2283_v14 = vrot.slane %v2045_v38, 2  ;;  %v2503_v45 = vmul.f32 %v4222_v15, %v4319_v36 }
 0x26b   :  { %v1956_v11 = vadd.f32 %v1803_v46, %v1475_v13  ;;  %v1957_v49 = vadd.f32 %v1805_v33, %v1476_v61  ;;  %v2285_v43 = vrot.slane %v2046_v8, 2  ;;  %v2654_v18 = vmul.f32 %v4221_v3, %v4321_v37 }
 0x26c   :  { %v2284_v16 = vsel %vm1075_vm5, %v2282_v51, %v2283_v14  ;;  %v2655_v5 = vmul.f32 %v4222_v15, %v4321_v37  ;;  %v2656_v44 = vmul.f32 %v4223_v53, %v4321_v37  ;;  %v3135_v34 = vmul.f32 %v4221_v3, %v4329_v42 }
 0x26d   :  { %v2286_v62 = vsel %vm1075_vm5, %v2283_v14, %v2285_v43  ;;  %v2437_v29 = vadd.f32 %v2284_v16, %v1956_v11  ;;  %v2892_v27 = vrot.slane %v2654_v18, 1  ;;  %v3136_v32 = vmul.f32 %v4222_v15, %v4329_v42 }
 0x26e   :  { %v2438_v0 = vadd.f32 %v2286_v62, %v1957_v49  ;;  %v2893_v4 = vrot.slane %v2655_v5, 1  ;;  %v2895_v41 = vrot.slane %v2656_v44, 1  ;;  %v3137_v63 = vmul.f32 %v4223_v53, %v4329_v42 }
 0x26f   :  { %v2566_v21 = vadd.f32 %v2502_v24, %v2437_v29  ;;  %v3373_v26 = vrot.slane %v3135_v34, 2  ;;  %v3374_v9 = vrot.slane %v3136_v32, 2  ;;  %v366_v25 = vmul.f32 %v4224_v30, %v4282_v10 }
 0x270   :  { %v2567_v54 = vadd.f32 %v2503_v45, %v2438_v0  ;;  %v2894_v48 = vsel %vm593_vm4, %v2892_v27, %v2893_v4  ;;  %v2896_v50 = vsel %vm593_vm4, %v2893_v4, %v2895_v41  ;;  %v3376_v39 = vrot.slane %v3137_v63, 2  ;;  %v275_v27 = vld [vmem:[#allocation2 + $0x198] sm:$0xff] }
 0x271   :  { %v3047_v47 = vadd.f32 %v2894_v48, %v2566_v21  ;;  %v3375_v28 = vsel %vm1075_vm5, %v3373_v26, %v3374_v9  ;;  %v367_v58 = vmul.f32 %v4225_v2, %v4282_v10  ;;  %v446_v60 = vmul.f32 %v4224_v30, %v4270_v6  ;;  %v276_v21 = vld [vmem:[#allocation2 + $0x1a0] sm:$0xff] }
 0x272   :  { %v3048_v40 = vadd.f32 %v2896_v50, %v2567_v54  ;;  %v3377_v59 = vsel %vm1075_vm5, %v3374_v9, %v3376_v39  ;;  %v447_v56 = vmul.f32 %v4225_v2, %v4270_v6  ;;  %v448_v13 = vmul.f32 %v4226_v1, %v4270_v6  ;;  %v277_v39 = vld [vmem:[#allocation2 + $0x1a8] sm:$0x3] }
 0x273   :  { %v3528_v57 = vadd.f32 %v3375_v28, %v3047_v47  ;;  %v669_v52 = vrot.slane %v446_v60, 1  ;;  %v928_v38 = vmul.f32 %v4224_v30, %v4272_v7  ;;  %v929_v61 = vmul.f32 %v4225_v2, %v4272_v7 }
 0x274   :  { %v3529_v8 = vadd.f32 %v3377_v59, %v3048_v40  ;;  %v670_v51 = vrot.slane %v447_v56, 1  ;;  %v672_v3 = vrot.slane %v448_v13, 1  ;;  %v930_v24 = vmul.f32 %v4226_v1, %v4272_v7 }
 0x275   :  { %v3592_v46 = vpack.c.bf16 %v3528_v57, %v3528_v57  ;;  %v1151_v33 = vrot.slane %v928_v38, 2  ;;  %v1152_v14 = vrot.slane %v929_v61, 2  ;;  %v1395_v15 = vmul.f32 %v4296_v17, %v6296_v19 }
 0x276   :  { %v3593_v45 = vpack.c.bf16 %v3529_v8, %v3529_v8  ;;  %v671_v11 = vsel %vm593_vm4, %v669_v52, %v670_v51  ;;  %v673_v49 = vsel %vm593_vm4, %v670_v51, %v672_v3  ;;  %v1154_v43 = vrot.slane %v930_v24, 2 }
 0x277   :  { %v3722_v18 = vunpack.c.l.b16 %v3592_v46  ;;  %v848_v16 = vadd.f32 %v671_v11, %v366_v25  ;;  %v849_v5 = vadd.f32 %v673_v49, %v367_v58  ;;  %v1153_v53 = vsel %vm1075_vm5, %v1151_v33, %v1152_v14 }
 0x278   :  { %v3723_v44 = vunpack.c.l.b16 %v3593_v45  ;;  %v1155_v34 = vsel %vm1075_vm5, %v1152_v14, %v1154_v43  ;;  %v1396_v62 = vmul.f32 %v4296_v17, %v6302_v23  ;;  %v1539_v29 = vmul.f32 %v4302_v22, %v6296_v19  ;;  %v6529_v45 = vpop.f32.mrf.mxu1 }
 0x279   :  { %v1330_v32 = vadd.f32 %v1153_v53, %v848_v16  ;;  %v1331_v0 = vadd.f32 %v1155_v34, %v849_v5  ;;  %v1540_v4 = vmul.f32 %v4302_v22, %v6302_v23  ;;  %v1541_v41 = vmul.f32 %v4302_v22, %v6309_v35  ;;  %v6532_v5 = vpop.f32.mrf.mxu2  ;;  %v6534_v53 = vpop.f32.mrf.mxu3  ;;  %4058 = vst.msk [vmem:[%s6860_s3 + $0x80] sm:$0xff] %vm4041_vm6, %v6529_v45 }
 0x27a   :  { %v3763_v63 = vpack.c.b16 %v3723_v44, %v3722_v18  ;;  %v1761_v26 = vrot.slane %v1539_v29, 1  ;;  %v2020_v9 = vmul.f32 %v4311_v31, %v6296_v19  ;;  %v2021_v30 = vmul.f32 %v4311_v31, %v6302_v23  ;;  %v4227_v18 = vld [vmem:[#allocation2 + $0x318] sm:$0xff]  ;;  %v4228_v29 = vld [vmem:[#allocation2 + $0x320] sm:$0xff]  ;;  %4074 = vst.msk [vmem:[%s6860_s3 + $0x100] sm:$0xff] %vm4041_vm6, %v6532_v5 }
 0x27b   :  { %v1459_v25 = vadd.f32 %v1395_v15, %v1330_v32  ;;  %v1460_v54 = vadd.f32 %v1396_v62, %v1331_v0  ;;  %v1762_v48 = vrot.slane %v1540_v4, 1  ;;  %v1764_v50 = vrot.slane %v1541_v41, 1  ;;  %v6527_v15 = vpop.f32.mrf.mxu0  ;;  %4090 = vst.msk [vmem:[%s6860_s3 + $0x180] sm:$0xff] %vm4041_vm6, %v6534_v53 }
 0x27c   :  { %4133 = vmatmul.msk.bf16.gmra.mxu2 %vm15_vm0, %v3763_v63  ;;  %v2022_v47 = vmul.f32 %v4311_v31, %v6309_v35  ;;  %v2242_v28 = vrot.slane %v2020_v9, 2  ;;  %v2243_v2 = vrot.slane %v2021_v30, 2  ;;  %v2486_v58 = vmul.f32 %v4319_v36, %v275_v27  ;;  %4042 = vst.msk [vmem:[%s6860_s3] sm:$0xff] %vm4041_vm6, %v6527_v15 }
 0x27d   :  { %v1763_v60 = vsel %vm593_vm4, %v1761_v26, %v1762_v48  ;;  %v1765_v19 = vsel %vm593_vm4, %v1762_v48, %v1764_v50  ;;  %v2487_v23 = vmul.f32 %v4319_v36, %v276_v21  ;;  %v2630_v40 = vmul.f32 %v4321_v37, %v275_v27  ;;  %v4229_v26 = vld [vmem:[#allocation2 + $0x328] sm:$0x3] }
 0x27e   :  { %v1940_v59 = vadd.f32 %v1763_v60, %v1459_v25  ;;  %v1941_v56 = vadd.f32 %v1765_v19, %v1460_v54  ;;  %v2244_v1 = vsel %vm1075_vm5, %v2242_v28, %v2243_v2  ;;  %v2245_v13 = vrot.slane %v2022_v47, 2 }
 0x27f   :  { %v2631_v57 = vmul.f32 %v4321_v37, %v276_v21  ;;  %v2632_v35 = vmul.f32 %v4321_v37, %v277_v39  ;;  %v2852_v52 = vrot.slane %v2630_v40, 1  ;;  %v3111_v38 = vmul.f32 %v4329_v42, %v275_v27 }
 0x280   :  { %v2246_v61 = vsel %vm1075_vm5, %v2243_v2, %v2245_v13  ;;  %v2421_v8 = vadd.f32 %v2244_v1, %v1940_v59  ;;  %v3112_v51 = vmul.f32 %v4329_v42, %v276_v21  ;;  %v3113_v3 = vmul.f32 %v4329_v42, %v277_v39 }
 0x281   :  { %v2422_v24 = vadd.f32 %v2246_v61, %v1941_v56  ;;  %v2853_v46 = vrot.slane %v2631_v57, 1  ;;  %v2855_v33 = vrot.slane %v2632_v35, 1  ;;  %v3333_v14 = vrot.slane %v3111_v38, 2  ;;  %v6560_v38 = vpop.f32.mrf.mxu3 }
 0x282   :  { %v2550_v11 = vadd.f32 %v2486_v58, %v2421_v8  ;;  %v3334_v49 = vrot.slane %v3112_v51, 2  ;;  %v3336_v43 = vrot.slane %v3113_v3, 2  ;;  %v398_v16 = vmul.f32 %v4227_v18, %v4282_v10  ;;  %v329_v3 = vld [vmem:[#allocation2 + $0x348] sm:$0xff]  ;;  %4091 = vst.msk [vmem:[%s6860_s3 + $0x188] sm:$0xff] %vm4041_vm6, %v6560_v38 }
 0x283   :  { %v2551_v44 = vadd.f32 %v2487_v23, %v2422_v24  ;;  %v2854_v34 = vsel %vm593_vm4, %v2852_v52, %v2853_v46  ;;  %v2856_v62 = vsel %vm593_vm4, %v2853_v46, %v2855_v33  ;;  %v399_v27 = vmul.f32 %v4228_v29, %v4282_v10  ;;  %v6553_v56 = vpop.f32.mrf.mxu0  ;;  %v6558_v52 = vpop.f32.mrf.mxu2 }
 0x284   :  { %v3031_v32 = vadd.f32 %v2854_v34, %v2550_v11  ;;  %v3335_v0 = vsel %vm1075_vm5, %v3333_v14, %v3334_v49  ;;  %v3337_v4 = vsel %vm1075_vm5, %v3334_v49, %v3336_v43  ;;  %v494_v41 = vmul.f32 %v4227_v18, %v4270_v6  ;;  %v330_v49 = vld [vmem:[#allocation2 + $0x350] sm:$0xff]  ;;  %4043 = vst.msk [vmem:[%s6860_s3 + $0x8] sm:$0xff] %vm4041_vm6, %v6553_v56 }
 0x285   :  { %v3032_v63 = vadd.f32 %v2856_v62, %v2551_v44  ;;  %v495_v21 = vmul.f32 %v4228_v29, %v4270_v6  ;;  %v496_v9 = vmul.f32 %v4229_v26, %v4270_v6  ;;  %v976_v30 = vmul.f32 %v4227_v18, %v4272_v7  ;;  %4075 = vst.msk [vmem:[%s6860_s3 + $0x108] sm:$0xff] %vm4041_vm6, %v6558_v52 }
 0x286   :  { %v3512_v25 = vadd.f32 %v3335_v0, %v3031_v32  ;;  %v749_v54 = vrot.slane %v494_v41, 1  ;;  %v977_v48 = vmul.f32 %v4228_v29, %v4272_v7  ;;  %v978_v10 = vmul.f32 %v4229_v26, %v4272_v7  ;;  %v6555_v7 = vpop.f32.mrf.mxu1 }
 0x287   :  { %v3513_v50 = vadd.f32 %v3337_v4, %v3032_v63  ;;  %v750_v39 = vrot.slane %v495_v21, 1  ;;  %v752_v47 = vrot.slane %v496_v9, 1  ;;  %v1231_v28 = vrot.slane %v976_v30, 2  ;;  %4059 = vst.msk [vmem:[%s6860_s3 + $0x88] sm:$0xff] %vm4041_vm6, %v6555_v7 }
 0x288   :  { %v3576_v2 = vpack.c.bf16 %v3512_v25, %v3512_v25  ;;  %v1232_v58 = vrot.slane %v977_v48, 2  ;;  %v1234_v60 = vrot.slane %v978_v10, 2  ;;  %v1427_v19 = vmul.f32 %v4296_v17, %v6357_v55 }
 0x289   :  { %v3577_v23 = vpack.c.bf16 %v3513_v50, %v3513_v50  ;;  %v751_v6 = vsel %vm593_vm4, %v749_v54, %v750_v39  ;;  %v753_v40 = vsel %vm593_vm4, %v750_v39, %v752_v47  ;;  %v1428_v59 = vmul.f32 %v4296_v17, %v6363_v20  ;;  %v4006_v39 = vpop.f32.mrf.mxu3 }
 0x28a   :  { %v3706_v1 = vunpack.c.l.b16 %v3576_v2  ;;  %v880_v13 = vadd.f32 %v751_v6, %v398_v16  ;;  %v881_v57 = vadd.f32 %v753_v40, %v399_v27  ;;  %v1233_v35 = vsel %vm1075_vm5, %v1231_v28, %v1232_v58  ;;  %v331_v27 = vld [vmem:[#allocation2 + $0x358] sm:$0x3]  ;;  %4092 = vst.msk [vmem:[%s6860_s3 + $0x190] sm:$0xff] %vm4041_vm6, %v4006_v39 }
 0x28b   :  { %v3707_v61 = vunpack.c.l.b16 %v3577_v23  ;;  %v1235_v8 = vsel %vm1075_vm5, %v1232_v58, %v1234_v60  ;;  %v1587_v51 = vmul.f32 %v4302_v22, %v6357_v55  ;;  %v1588_v17 = vmul.f32 %v4302_v22, %v6363_v20  ;;  %v3886_v9 = vpop.f32.mrf.mxu0  ;;  %v3966_v50 = vpop.f32.mrf.mxu2 }
 0x28c   :  { %v1362_v24 = vadd.f32 %v1233_v35, %v880_v13  ;;  %v1363_v46 = vadd.f32 %v1235_v8, %v881_v57  ;;  %v1589_v33 = vmul.f32 %v4302_v22, %v6370_v12  ;;  %v2068_v14 = vmul.f32 %v4311_v31, %v6357_v55  ;;  %4044 = vst.msk [vmem:[%s6860_s3 + $0x10] sm:$0xff] %vm4041_vm6, %v3886_v9 }
 0x28d   :  { %v3755_v11 = vpack.c.b16 %v3707_v61, %v3706_v1  ;;  %v1841_v43 = vrot.slane %v1587_v51, 1  ;;  %v1842_v18 = vrot.slane %v1588_v17, 1  ;;  %v2069_v16 = vmul.f32 %v4311_v31, %v6363_v20  ;;  %4076 = vst.msk [vmem:[%s6860_s3 + $0x110] sm:$0xff] %vm4041_vm6, %v3966_v50 }
 0x28e   :  { %v1491_v44 = vadd.f32 %v1427_v19, %v1362_v24  ;;  %v1492_v34 = vadd.f32 %v1428_v59, %v1363_v46  ;;  %v1844_v62 = vrot.slane %v1589_v33, 1  ;;  %v2070_v29 = vmul.f32 %v4311_v31, %v6370_v12  ;;  %v3926_v30 = vpop.f32.mrf.mxu1 }
 0x28f   :  { %4125 = vmatmul.msk.bf16.gmra.mxu1 %vm15_vm0, %v3755_v11  ;;  %v1843_v22 = vsel %vm593_vm4, %v1841_v43, %v1842_v18  ;;  %v2322_v32 = vrot.slane %v2068_v14, 2  ;;  %v2323_v55 = vrot.slane %v2069_v16, 2  ;;  %v2518_v0 = vmul.f32 %v4319_v36, %v329_v3  ;;  %4060 = vst.msk [vmem:[%s6860_s3 + $0x90] sm:$0xff] %vm4041_vm6, %v3926_v30 }
 0x290   :  { %v1845_v4 = vsel %vm593_vm4, %v1842_v18, %v1844_v62  ;;  %v1972_v41 = vadd.f32 %v1843_v22, %v1491_v44  ;;  %v2325_v63 = vrot.slane %v2070_v29, 2  ;;  %v2519_v20 = vmul.f32 %v4319_v36, %v330_v49 }
 0x291   :  { %v1973_v21 = vadd.f32 %v1845_v4, %v1492_v34  ;;  %v2324_v26 = vsel %vm1075_vm5, %v2322_v32, %v2323_v55  ;;  %v2678_v31 = vmul.f32 %v4321_v37, %v329_v3  ;;  %v2679_v12 = vmul.f32 %v4321_v37, %v330_v49 }
 0x292   :  { %v2326_v25 = vsel %vm1075_vm5, %v2323_v55, %v2325_v63  ;;  %v2453_v54 = vadd.f32 %v2324_v26, %v1972_v41  ;;  %v2680_v48 = vmul.f32 %v4321_v37, %v331_v27  ;;  %v3159_v10 = vmul.f32 %v4329_v42, %v329_v3  ;;  %v4008_v3 = vpop.f32.mrf.mxu3 }
 0x293   :  { %v2454_v47 = vadd.f32 %v2326_v25, %v1973_v21  ;;  %v2932_v36 = vrot.slane %v2678_v31, 1  ;;  %v2933_v28 = vrot.slane %v2679_v12, 1  ;;  %v3160_v2 = vmul.f32 %v4329_v42, %v330_v49  ;;  %v3888_v15 = vpop.f32.mrf.mxu0  ;;  %v3968_v45 = vpop.f32.mrf.mxu2  ;;  %4093 = vst.msk [vmem:[%s6860_s3 + $0x198] sm:$0xff] %vm4041_vm6, %v4008_v3 }
 0x294   :  { %v2582_v58 = vadd.f32 %v2518_v0, %v2453_v54  ;;  %v2935_v60 = vrot.slane %v2680_v48, 1  ;;  %v3161_v19 = vmul.f32 %v4329_v42, %v331_v27  ;;  %v3413_v23 = vrot.slane %v3159_v10, 2  ;;  %4045 = vst.msk [vmem:[%s6860_s3 + $0x18] sm:$0xff] %vm4041_vm6, %v3888_v15 }
 0x295   :  { %v2583_v6 = vadd.f32 %v2519_v20, %v2454_v47  ;;  %v2934_v40 = vsel %vm593_vm4, %v2932_v36, %v2933_v28  ;;  %v3414_v59 = vrot.slane %v3160_v2, 2  ;;  %4077 = vst.msk [vmem:[%s6860_s3 + $0x118] sm:$0xff] %vm4041_vm6, %v3968_v45 }
 0x296   :  { %v2936_v37 = vsel %vm593_vm4, %v2933_v28, %v2935_v60  ;;  %v3063_v1 = vadd.f32 %v2934_v40, %v2582_v58  ;;  %v3416_v13 = vrot.slane %v3161_v19, 2  ;;  %v3928_v51 = vpop.f32.mrf.mxu1 }
 0x297   :  { %v3064_v57 = vadd.f32 %v2936_v37, %v2583_v6  ;;  %v3415_v35 = vsel %vm1075_vm5, %v3413_v23, %v3414_v59  ;;  %4061 = vst.msk [vmem:[%s6860_s3 + $0x98] sm:$0xff] %vm4041_vm6, %v3928_v51 }
 0x298   :  { %v3417_v42 = vsel %vm1075_vm5, %v3414_v59, %v3416_v13  ;;  %v3544_v61 = vadd.f32 %v3415_v35, %v3063_v1 }
 0x299   :  { %v3545_v8 = vadd.f32 %v3417_v42, %v3064_v57 }
 0x29a   :  { %v3608_v17 = vpack.c.bf16 %v3544_v61, %v3544_v61  ;;  %v4011_v46 = vpop.f32.mrf.mxu3 }
 0x29b   :  { %v3609_v24 = vpack.c.bf16 %v3545_v8, %v3545_v8  ;;  %v3891_v7 = vpop.f32.mrf.mxu0  ;;  %v3971_v38 = vpop.f32.mrf.mxu2  ;;  %4094 = vst.msk [vmem:[%s6860_s3 + $0x1a0] sm:$0xff] %vm4041_vm6, %v4011_v46 }
 0x29c   :  { %v3738_v5 = vunpack.c.l.b16 %v3608_v17  ;;  %4046 = vst.msk [vmem:[%s6860_s3 + $0x20] sm:$0xff] %vm4041_vm6, %v3891_v7 }
 0x29d   :  { %v3739_v53 = vunpack.c.l.b16 %v3609_v24  ;;  %4078 = vst.msk [vmem:[%s6860_s3 + $0x120] sm:$0xff] %vm4041_vm6, %v3971_v38 }
 0x29e   :  { %v3931_v52 = vpop.f32.mrf.mxu1 }
 0x29f   :  { %v3771_v56 = vpack.c.b16 %v3739_v53, %v3738_v5  ;;  %4062 = vst.msk [vmem:[%s6860_s3 + $0xa0] sm:$0xff] %vm4041_vm6, %v3931_v52 }
 0x2a1   :  { %4141 = vmatmul.msk.bf16.gmra.mxu3 %vm15_vm0, %v3771_v56 }
 0x2a2   :  { %v4013_v49 = vpop.f32.mrf.mxu3 }
 0x2a3   :  { %v3893_v33 = vpop.f32.mrf.mxu0  ;;  %v3973_v11 = vpop.f32.mrf.mxu2  ;;  %4095 = vst.msk [vmem:[%s6860_s3 + $0x1a8] sm:$0xff] %vm4041_vm6, %v4013_v49 }
 0x2a4   :  { %4047 = vst.msk [vmem:[%s6860_s3 + $0x28] sm:$0xff] %vm4041_vm6, %v3893_v33 }
 0x2a5   :  { %4079 = vst.msk [vmem:[%s6860_s3 + $0x128] sm:$0xff] %vm4041_vm6, %v3973_v11 }
 0x2a6   :  { %v3933_v14 = vpop.f32.mrf.mxu1 }
 0x2a7   :  { %4063 = vst.msk [vmem:[%s6860_s3 + $0xa8] sm:$0xff] %vm4041_vm6, %v3933_v14 }
 0x2aa   :  { %v4016_v44 = vpop.f32.mrf.mxu3 }
 0x2ab   :  { %v3896_v43 = vpop.f32.mrf.mxu0  ;;  %v3976_v16 = vpop.f32.mrf.mxu2  ;;  %4096 = vst.msk [vmem:[%s6860_s3 + $0x1b0] sm:$0xff] %vm4041_vm6, %v4016_v44 }
 0x2ac   :  { %4048 = vst.msk [vmem:[%s6860_s3 + $0x30] sm:$0xff] %vm4041_vm6, %v3896_v43 }
 0x2ad   :  { %4080 = vst.msk [vmem:[%s6860_s3 + $0x130] sm:$0xff] %vm4041_vm6, %v3976_v16 }
 0x2ae   :  { %v3936_v18 = vpop.f32.mrf.mxu1 }
 0x2af   :  { %4064 = vst.msk [vmem:[%s6860_s3 + $0xb0] sm:$0xff] %vm4041_vm6, %v3936_v18 }
 0x2b2   :  { %v4018_v27 = vpop.f32.mrf.mxu3 }
 0x2b3   :  { %v3898_v34 = vpop.f32.mrf.mxu0  ;;  %v3978_v29 = vpop.f32.mrf.mxu2  ;;  %4097 = vst.msk [vmem:[%s6860_s3 + $0x1b8] sm:$0xff] %vm4041_vm6, %v4018_v27 }
 0x2b4   :  { %4049 = vst.msk [vmem:[%s6860_s3 + $0x38] sm:$0xff] %vm4041_vm6, %v3898_v34 }
 0x2b5   :  { %4081 = vst.msk [vmem:[%s6860_s3 + $0x138] sm:$0xff] %vm4041_vm6, %v3978_v29 }
 0x2b6   :  { %v3938_v62 = vpop.f32.mrf.mxu1 }
 0x2b7   :  { %4065 = vst.msk [vmem:[%s6860_s3 + $0xb8] sm:$0xff] %vm4041_vm6, %v3938_v62 }
 0x2ba   :  { %v4021_v0 = vpop.f32.mrf.mxu3 }
 0x2bb   :  { %v3901_v22 = vpop.f32.mrf.mxu0  ;;  %v3981_v55 = vpop.f32.mrf.mxu2  ;;  %4098 = vst.msk [vmem:[%s6860_s3 + $0x1c0] sm:$0xff] %vm4041_vm6, %v4021_v0 }
 0x2bc   :  { %4050 = vst.msk [vmem:[%s6860_s3 + $0x40] sm:$0xff] %vm4041_vm6, %v3901_v22 }
 0x2bd   :  { %4082 = vst.msk [vmem:[%s6860_s3 + $0x140] sm:$0xff] %vm4041_vm6, %v3981_v55 }
 0x2be   :  { %v3941_v32 = vpop.f32.mrf.mxu1 }
 0x2bf   :  { %4066 = vst.msk [vmem:[%s6860_s3 + $0xc0] sm:$0xff] %vm4041_vm6, %v3941_v32 }
 0x2c2   :  { %v4023_v20 = vpop.f32.mrf.mxu3 }
 0x2c3   :  { %v3903_v4 = vpop.f32.mrf.mxu0  ;;  %v3983_v63 = vpop.f32.mrf.mxu2  ;;  %4099 = vst.msk [vmem:[%s6860_s3 + $0x1c8] sm:$0xff] %vm4041_vm6, %v4023_v20 }
 0x2c4   :  { %4051 = vst.msk [vmem:[%s6860_s3 + $0x48] sm:$0xff] %vm4041_vm6, %v3903_v4 }
 0x2c5   :  { %4083 = vst.msk [vmem:[%s6860_s3 + $0x148] sm:$0xff] %vm4041_vm6, %v3983_v63 }
 0x2c6   :  { %v3943_v41 = vpop.f32.mrf.mxu1 }
 0x2c7   :  { %4067 = vst.msk [vmem:[%s6860_s3 + $0xc8] sm:$0xff] %vm4041_vm6, %v3943_v41 }
 0x2ca   :  { %v4026_v12 = vpop.f32.mrf.mxu3 }
 0x2cb   :  { %v3906_v21 = vpop.f32.mrf.mxu0  ;;  %v3986_v31 = vpop.f32.mrf.mxu2  ;;  %4100 = vst.msk [vmem:[%s6860_s3 + $0x1d0] sm:$0xff] %vm4041_vm6, %v4026_v12 }
 0x2cc   :  { %4052 = vst.msk [vmem:[%s6860_s3 + $0x50] sm:$0xff] %vm4041_vm6, %v3906_v21 }
 0x2cd   :  { %4084 = vst.msk [vmem:[%s6860_s3 + $0x150] sm:$0xff] %vm4041_vm6, %v3986_v31 }
 0x2ce   :  { %v3946_v26 = vpop.f32.mrf.mxu1 }
 0x2cf   :  { %4068 = vst.msk [vmem:[%s6860_s3 + $0xd0] sm:$0xff] %vm4041_vm6, %v3946_v26 }
 0x2d2   :  { %v4028_v54 = vpop.f32.mrf.mxu3 }
 0x2d3   :  { %v3908_v9 = vpop.f32.mrf.mxu0  ;;  %v3988_v25 = vpop.f32.mrf.mxu2  ;;  %4101 = vst.msk [vmem:[%s6860_s3 + $0x1d8] sm:$0xff] %vm4041_vm6, %v4028_v54 }
 0x2d4   :  { %4053 = vst.msk [vmem:[%s6860_s3 + $0x58] sm:$0xff] %vm4041_vm6, %v3908_v9 }
 0x2d5   :  { %4085 = vst.msk [vmem:[%s6860_s3 + $0x158] sm:$0xff] %vm4041_vm6, %v3988_v25 }
 0x2d6   :  { %v3948_v30 = vpop.f32.mrf.mxu1 }
 0x2d7   :  { %4069 = vst.msk [vmem:[%s6860_s3 + $0xd8] sm:$0xff] %vm4041_vm6, %v3948_v30 }
 0x2da   :  { %v4031_v39 = vpop.f32.mrf.mxu3 }
 0x2db   :  { %v3911_v48 = vpop.f32.mrf.mxu0  ;;  %v3991_v50 = vpop.f32.mrf.mxu2  ;;  %4102 = vst.msk [vmem:[%s6860_s3 + $0x1e0] sm:$0xff] %vm4041_vm6, %v4031_v39 }
 0x2dc   :  { %4054 = vst.msk [vmem:[%s6860_s3 + $0x60] sm:$0xff] %vm4041_vm6, %v3911_v48 }
 0x2dd   :  { %4086 = vst.msk [vmem:[%s6860_s3 + $0x160] sm:$0xff] %vm4041_vm6, %v3991_v50 }
 0x2de   :  { %v3951_v10 = vpop.f32.mrf.mxu1 }
 0x2df   :  { %4070 = vst.msk [vmem:[%s6860_s3 + $0xe0] sm:$0xff] %vm4041_vm6, %v3951_v10 }
 0x2e2   :  { %v4033_v2 = vpop.f32.mrf.mxu3 }
 0x2e3   :  { %v3913_v47 = vpop.f32.mrf.mxu0  ;;  %v3993_v28 = vpop.f32.mrf.mxu2  ;;  %4103 = vst.msk [vmem:[%s6860_s3 + $0x1e8] sm:$0xff] %vm4041_vm6, %v4033_v2 }
 0x2e4   :  { %4055 = vst.msk [vmem:[%s6860_s3 + $0x68] sm:$0xff] %vm4041_vm6, %v3913_v47 }
 0x2e5   :  { %4087 = vst.msk [vmem:[%s6860_s3 + $0x168] sm:$0xff] %vm4041_vm6, %v3993_v28 }
 0x2e6   :  { %v3953_v36 = vpop.f32.mrf.mxu1 }
 0x2e7   :  { %4071 = vst.msk [vmem:[%s6860_s3 + $0xe8] sm:$0xff] %vm4041_vm6, %v3953_v36 }
 0x2eb   :  { %v3916_v58 = vpop.f32.mrf.mxu0 }
 0x2ec   :  { %4056 = vst.msk [vmem:[%s6860_s3 + $0x70] sm:$0xff] %vm4041_vm6, %v3916_v58 }
 0x2f3   :  { %v3918_v19 = vpop.f32.mrf.mxu0 }
 0x2f4   :  { %4057 = vst.msk [vmem:[%s6860_s3 + $0x78] sm:$0xff] %vm4041_vm6, %v3918_v19 }
 0x2ff   :  { %v3996_v60 = vpop.f32.mrf.mxu2 }
 0x300   :  { %4088 = vst.msk [vmem:[%s6860_s3 + $0x170] sm:$0xff] %vm4041_vm6, %v3996_v60 }
 0x307   :  { %v3998_v23 = vpop.f32.mrf.mxu2 }
 0x308   :  { %4089 = vst.msk [vmem:[%s6860_s3 + $0x178] sm:$0xff] %vm4041_vm6, %v3998_v23 }
 0x30c   :  { %v3956_v6 = vpop.f32.mrf.mxu1 }
 0x30d   :  { %4072 = vst.msk [vmem:[%s6860_s3 + $0xf0] sm:$0xff] %vm4041_vm6, %v3956_v6 }
 0x314   :  { %v3958_v40 = vpop.f32.mrf.mxu1 }
 0x315   :  { %4073 = vst.msk [vmem:[%s6860_s3 + $0xf8] sm:$0xff] %vm4041_vm6, %v3958_v40 }
 0x324   :  { %v4036_v59 = vpop.f32.mrf.mxu3 }
 0x325   :  { %4104 = vst.msk [vmem:[%s6860_s3 + $0x1f0] sm:$0xff] %vm4041_vm6, %v4036_v59 }
 0x32c   :  { %v4038_v37 = vpop.f32.mrf.mxu3 }
 0x32d   :  { %4105 = vst.msk [vmem:[%s6860_s3 + $0x1f8] sm:$0xff] %vm4041_vm6, %v4038_v37 }

</bundles_post_ra>
